<compile_context>
chip_gen: v7x
topology: tpu7x:2x2x1
jax: 0.10.0
libtpu: 0.0.40
codegen_flags: <defaults>
</compile_context>

<pallas_src>
import jax
import jax.numpy as jnp
from jax.experimental import pallas as pl
from jax.experimental.pallas import tpu as pltpu

IMG = 100
NUM_CLASSES = 3      # TODO(synk): len(class_names) comes from ImageFolder; fixed to 3 here.
K_FC = 32 * 25 * 25          # 20000 flattened features
K_FC_PAD = 20480             # padded to a multiple of 128 so FC1 can be K-tiled
FC_TK = 2560                 # FC1 K-tile (K_FC_PAD / 8) -> 8 double-buffered weight chunks


# ----------------------------------------------------------------------------
# Pallas kernels
# ----------------------------------------------------------------------------
def _conv_relu_pool_kernel(x_ref, w_ref, b_ref, o_ref):
    """Fused 3x3 conv (as matmul) + bias + ReLU + 2x2 max-pool for one image.

    x_ref: (1, 4, K, P)  patches; axis 1 = pool-window position (ph*2+pw),
                         K = Cin*9 taps, P = Hh*Wh pooled pixels (lane-dense).
    w_ref: (Cout, K)     torch Conv2d weight reshaped.
    b_ref: (Cout, 1)
    o_ref: (1, Cout, P)  pooled activations (NCHW order per image).
    """
    w = w_ref[...]
    m = jnp.dot(w, x_ref[0, 0], preferred_element_type=jnp.float32)
    for p in range(1, 4):
        m = jnp.maximum(
            m, jnp.dot(w, x_ref[0, p], preferred_element_type=jnp.float32))
    # max-pool commutes with the (monotonic) ReLU and the per-channel bias.
    o_ref[0] = jnp.maximum(m + b_ref[...], 0.0).astype(o_ref.dtype)


def conv_relu_pool(patches, wmat, bias):
    """patches: (N, 4, K, P) -> pooled activations (N, Cout, P), f32."""
    N, _, K, P = patches.shape
    Cout = wmat.shape[0]
    return pl.pallas_call(
        _conv_relu_pool_kernel,
        out_shape=jax.ShapeDtypeStruct((N, Cout, P), jnp.float32),
        grid=(N,),
        in_specs=[
            pl.BlockSpec((1, 4, K, P), lambda n: (n, 0, 0, 0)),
            pl.BlockSpec((Cout, K), lambda n: (0, 0)),
            pl.BlockSpec((Cout, 1), lambda n: (0, 0)),
        ],
        out_specs=pl.BlockSpec((1, Cout, P), lambda n: (n, 0, 0)),
        compiler_params=pltpu.CompilerParams(dimension_semantics=("parallel",)),
    )(patches, wmat, bias)


def _classifier_kernel(x_ref, w1_ref, b1_ref, w2_ref, b2_ref, o_ref, acc_ref):
    """Fused Linear(K,64) + ReLU + Linear(64,NC).

    Grid = K tiles of FC1; bf16 weight chunks stream from HBM and accumulate
    into an f32 VMEM scratch; the tiny FC2 runs in the last-step epilogue.
    """
    k = pl.program_id(0)

    @pl.when(k == 0)
    def _():
        acc_ref[...] = jnp.zeros_like(acc_ref)

    acc_ref[...] += jnp.dot(x_ref[...], w1_ref[...].astype(jnp.float32),
                            preferred_element_type=jnp.float32)

    @pl.when(k == pl.num_programs(0) - 1)
    def _():
        h = jnp.maximum(acc_ref[...] + b1_ref[...], 0.0)
        o_ref[...] = (jnp.dot(h, w2_ref[...], preferred_element_type=jnp.float32)
                      + b2_ref[...]).astype(o_ref.dtype)


def classifier(flat, w1t, b1, w2t, b2, *, tk=FC_TK):
    B, Kp = flat.shape
    H = w1t.shape[1]
    NC = w2t.shape[1]
    assert Kp % tk == 0
    return pl.pallas_call(
        _classifier_kernel,
        out_shape=jax.ShapeDtypeStruct((B, NC), jnp.float32),
        grid=(Kp // tk,),
        in_specs=[
            pl.BlockSpec((B, tk), lambda k: (0, k)),
            pl.BlockSpec((tk, H), lambda k: (k, 0)),
            pl.BlockSpec((1, H), lambda k: (0, 0)),
            pl.BlockSpec((H, NC), lambda k: (0, 0)),
            pl.BlockSpec((1, NC), lambda k: (0, 0)),
        ],
        out_specs=pl.BlockSpec((B, NC), lambda k: (0, 0)),
        scratch_shapes=[pltpu.VMEM((B, H), jnp.float32)],
        compiler_params=pltpu.CompilerParams(dimension_semantics=("arbitrary",)),
    )(flat, w1t, b1, w2t, b2)


# ----------------------------------------------------------------------------
# XLA-side data plumbing: merged im2col + pool-window gather (NCHW in/out)
# ----------------------------------------------------------------------------
def _pool_window_patches(x_nchw):
    """(N, C, H, W) -> (N, 4, C*9, (H//2)*(W//2)) patches for a fused
    conv3x3(pad=1)+ReLU+maxpool2 stage.

    patches[n, ph*2+pw, c*9+dy*3+dx, h2*Wh+w2] = xpad[n, c, 2*h2+ph+dy, 2*w2+pw+dx]
    """
    N, C, H, W = x_nchw.shape
    Hh, Wh = H // 2, W // 2
    xp = jnp.pad(x_nchw, ((0, 0), (0, 0), (1, 1), (1, 1)))
    slabs = []
    for ph in range(2):
        for pw in range(2):
            for dy in range(3):
                for dx in range(3):
                    s, t = ph + dy, pw + dx
                    slabs.append(xp[:, :, s:s + 2 * Hh - 1:2, t:t + 2 * Wh - 1:2])
    arr = jnp.stack(slabs).reshape(4, 9, N, C, Hh, Wh)
    arr = arr.transpose(2, 0, 3, 1, 4, 5)            # (N, 4, C, 9, Hh, Wh)
    return arr.reshape(N, 4, C * 9, Hh * Wh)


# ----------------------------------------------------------------------------
# Deterministic parameter init (torch-like uniform(-1/sqrt(fan_in), +))
# ----------------------------------------------------------------------------
def init_params(key):
    ks = jax.random.split(key, 8)

    def u(k, shape, fan_in):
        bound = 1.0 / (fan_in ** 0.5)
        return jax.random.uniform(k, shape, jnp.float32, -bound, bound)

    # Torch-layout parameters (as nn.Conv2d / nn.Linear would hold them).
    w1 = u(ks[0], (16, 3, 3, 3), 3 * 9)
    b1 = u(ks[1], (16,), 3 * 9)
    w2 = u(ks[2], (32, 16, 3, 3), 16 * 9)
    b2 = u(ks[3], (32,), 16 * 9)
    wf1 = u(ks[4], (64, K_FC), K_FC)
    bf1 = u(ks[5], (64,), K_FC)
    wf2 = u(ks[6], (NUM_CLASSES, 64), 64)
    bf2 = u(ks[7], (NUM_CLASSES,), 64)

    # One-time re-layouts for the kernels (outside the jitted forward):
    #  * conv weights flattened to (Cout, Cin*9), matching patch column order
    #  * wf1 pre-transposed to (K, 64), zero-padded to K_FC_PAD, cast to bf16
    #    (halves the single largest HBM transfer; accumulation stays f32)
    #  * wf2 pre-transposed to (64, NUM_CLASSES)
    wf1_t = jnp.zeros((K_FC_PAD, 64), jnp.float32).at[:K_FC].set(wf1.T)
    return dict(
        wm1=w1.reshape(16, 3 * 9),
        b1=b1.reshape(16, 1),
        wm2=w2.reshape(32, 16 * 9),
        b2=b2.reshape(32, 1),
        wf1_t=wf1_t.astype(jnp.bfloat16),
        bf1=bf1.reshape(1, 64),
        wf2_t=wf2.T,
        bf2=bf2.reshape(1, NUM_CLASSES),
    )


# ----------------------------------------------------------------------------
# Forward pass (mirrors FruitCNN.forward)
# ----------------------------------------------------------------------------
@jax.jit
def fruit_cnn_forward(params, x_nchw):
    N = x_nchw.shape[0]
    # features: two fused conv + ReLU + maxpool stages, NCHW throughout
    p1 = _pool_window_patches(x_nchw)                      # (N, 4,  27, 2500)
    y1 = conv_relu_pool(p1, params["wm1"], params["b1"])   # (N, 16, 2500)
    p2 = _pool_window_patches(y1.reshape(N, 16, 50, 50))   # (N, 4, 144,  625)
    y2 = conv_relu_pool(p2, params["wm2"], params["b2"])   # (N, 32,  625)
    # classifier: flatten is a free reshape in torch's NCHW channel-major order
    flat = y2.reshape(N, K_FC)
    flat = jnp.pad(flat, ((0, 0), (0, K_FC_PAD - K_FC)))   # zero-pad K to 20480
    logits = classifier(flat, params["wf1_t"], params["bf1"],
                        params["wf2_t"], params["bf2"])
    return logits                                          # (N, NUM_CLASSES)


if __name__ == "__main__":
    key = jax.random.PRNGKey(0)
    pkey, xkey = jax.random.split(key)
    params = init_params(pkey)
    x = jax.random.normal(xkey, (2, 3, IMG, IMG), jnp.float32)  # NCHW, like PyTorch
    logits = fruit_cnn_forward(params, x)
    jax.block_until_ready(logits)
    assert logits.shape == (2, NUM_CLASSES)
    assert bool(jnp.all(jnp.isfinite(logits)))
    print("KERNEL_OK")
</pallas_src>

<mosaic_0001>
module attributes {stable_mosaic.version = 11 : i64} {
  func.func @_conv_relu_pool_kernel(%arg0: i32, %arg1: memref<1x4x27x2500xf32, #tpu.memory_space<vmem>>, %arg2: memref<16x27xf32, #tpu.memory_space<vmem>>, %arg3: memref<16x1xf32, #tpu.memory_space<vmem>>, %arg4: memref<1x16x2500xf32, #tpu.memory_space<vmem>>) attributes {dimension_semantics = [#tpu.dimension_semantics<parallel>], iteration_bounds = array<i64: 2>, scalar_prefetch = 0 : i64, scratch_operands = 0 : i64, tpu.core_type = #tpu.core_type<tc>, window_params = [{transform_indices = @transform_0, window_bounds = array<i64: 1, 4, 27, 2500>}, {pipeline_mode = #tpu.pipeline_mode<synchronous>, transform_indices = @transform_1, window_bounds = array<i64: 16, 27>}, {pipeline_mode = #tpu.pipeline_mode<synchronous>, transform_indices = @transform_2, window_bounds = array<i64: 16, 1>}, {transform_indices = @transform_3, window_bounds = array<i64: 1, 16, 2500>}]} {
    %c0 = arith.constant 0 : index
    %c0_0 = arith.constant 0 : index
    %0 = vector.load %arg2[%c0, %c0_0] : memref<16x27xf32, #tpu.memory_space<vmem>>, vector<16x27xf32>
    %c0_1 = arith.constant 0 : index
    %c0_2 = arith.constant 0 : index
    %c0_3 = arith.constant 0 : index
    %c0_4 = arith.constant 0 : index
    %1 = vector.load %arg1[%c0_1, %c0_2, %c0_3, %c0_4] : memref<1x4x27x2500xf32, #tpu.memory_space<vmem>>, vector<1x1x27x2500xf32>
    %2 = vector.shape_cast %1 : vector<1x1x27x2500xf32> to vector<27x2500xf32>
    %cst = arith.constant dense<0.000000e+00> : vector<16x2500xf32>
    %3 = tpu.matmul %0, %2, %cst {dimension_numbers = #tpu.dot_dimension_numbers<[1], [0], [0], [1], [0, 0, 1, 1], [], []>} : vector<16x27xf32>, vector<27x2500xf32>, vector<16x2500xf32> -> vector<16x2500xf32>
    %c0_5 = arith.constant 0 : index
    %c1 = arith.constant 1 : index
    %c0_6 = arith.constant 0 : index
    %c0_7 = arith.constant 0 : index
    %4 = vector.load %arg1[%c0_5, %c1, %c0_6, %c0_7] : memref<1x4x27x2500xf32, #tpu.memory_space<vmem>>, vector<1x1x27x2500xf32>
    %5 = vector.shape_cast %4 : vector<1x1x27x2500xf32> to vector<27x2500xf32>
    %cst_8 = arith.constant dense<0.000000e+00> : vector<16x2500xf32>
    %6 = tpu.matmul %0, %5, %cst_8 {dimension_numbers = #tpu.dot_dimension_numbers<[1], [0], [0], [1], [0, 0, 1, 1], [], []>} : vector<16x27xf32>, vector<27x2500xf32>, vector<16x2500xf32> -> vector<16x2500xf32>
    %7 = arith.maximumf %3, %6 : vector<16x2500xf32>
    %c0_9 = arith.constant 0 : index
    %c2 = arith.constant 2 : index
    %c0_10 = arith.constant 0 : index
    %c0_11 = arith.constant 0 : index
    %8 = vector.load %arg1[%c0_9, %c2, %c0_10, %c0_11] : memref<1x4x27x2500xf32, #tpu.memory_space<vmem>>, vector<1x1x27x2500xf32>
    %9 = vector.shape_cast %8 : vector<1x1x27x2500xf32> to vector<27x2500xf32>
    %cst_12 = arith.constant dense<0.000000e+00> : vector<16x2500xf32>
    %10 = tpu.matmul %0, %9, %cst_12 {dimension_numbers = #tpu.dot_dimension_numbers<[1], [0], [0], [1], [0, 0, 1, 1], [], []>} : vector<16x27xf32>, vector<27x2500xf32>, vector<16x2500xf32> -> vector<16x2500xf32>
    %11 = arith.maximumf %7, %10 : vector<16x2500xf32>
    %c0_13 = arith.constant 0 : index
    %c3 = arith.constant 3 : index
    %c0_14 = arith.constant 0 : index
    %c0_15 = arith.constant 0 : index
    %12 = vector.load %arg1[%c0_13, %c3, %c0_14, %c0_15] : memref<1x4x27x2500xf32, #tpu.memory_space<vmem>>, vector<1x1x27x2500xf32>
    %13 = vector.shape_cast %12 : vector<1x1x27x2500xf32> to vector<27x2500xf32>
    %cst_16 = arith.constant dense<0.000000e+00> : vector<16x2500xf32>
    %14 = tpu.matmul %0, %13, %cst_16 {dimension_numbers = #tpu.dot_dimension_numbers<[1], [0], [0], [1], [0, 0, 1, 1], [], []>} : vector<16x27xf32>, vector<27x2500xf32>, vector<16x2500xf32> -> vector<16x2500xf32>
    %15 = arith.maximumf %11, %14 : vector<16x2500xf32>
    %c0_17 = arith.constant 0 : index
    %c0_18 = arith.constant 0 : index
    %16 = vector.load %arg3[%c0_17, %c0_18] : memref<16x1xf32, #tpu.memory_space<vmem>>, vector<16x1xf32>
    %17 = vector.broadcast %16 : vector<16x1xf32> to vector<16x2500xf32>
    %18 = arith.addf %15, %17 : vector<16x2500xf32>
    %cst_19 = arith.constant 0.000000e+00 : f32
    %19 = vector.broadcast %cst_19 : f32 to vector<16x2500xf32>
    %20 = arith.maximumf %18, %19 : vector<16x2500xf32>
    %c0_20 = arith.constant 0 : index
    %c0_21 = arith.constant 0 : index
    %c0_22 = arith.constant 0 : index
    %21 = vector.load %arg4[%c0_20, %c0_21, %c0_22] : memref<1x16x2500xf32, #tpu.memory_space<vmem>>, vector<1x16x2500xf32>
    %22 = vector.shape_cast %21 : vector<1x16x2500xf32> to vector<16x2500xf32>
    %23 = vector.shape_cast %20 : vector<16x2500xf32> to vector<1x16x2500xf32>
    tpu.vector_store %arg4[%c0_20, %c0_21, %c0_22], %23 {strides = array<i32>} : memref<1x16x2500xf32, #tpu.memory_space<vmem>>, vector<1x16x2500xf32>,
    return
  }
  func.func @transform_0(%arg0: i32) -> (i32, i32, i32, i32) {
    %c0_i32 = arith.constant 0 : i32
    %c0_i32_0 = arith.constant 0 : i32
    %c0_i32_1 = arith.constant 0 : i32
    %c0_i32_2 = arith.constant 0 : i32
    return %arg0, %c0_i32, %c0_i32_0, %c0_i32_1 : i32, i32, i32, i32
  }
  func.func @transform_1(%arg0: i32) -> (i32, i32) {
    %c0_i32 = arith.constant 0 : i32
    %c0_i32_0 = arith.constant 0 : i32
    %c0_i32_1 = arith.constant 0 : i32
    return %c0_i32, %c0_i32_0 : i32, i32
  }
  func.func @transform_2(%arg0: i32) -> (i32, i32) {
    %c0_i32 = arith.constant 0 : i32
    %c0_i32_0 = arith.constant 0 : i32
    %c0_i32_1 = arith.constant 0 : i32
    return %c0_i32, %c0_i32_0 : i32, i32
  }
  func.func @transform_3(%arg0: i32) -> (i32, i32, i32) {
    %c0_i32 = arith.constant 0 : i32
    %c0_i32_0 = arith.constant 0 : i32
    %c0_i32_1 = arith.constant 0 : i32
    return %arg0, %c0_i32, %c0_i32_0 : i32, i32, i32
  }
}

module attributes {stable_mosaic.version = 11 : i64} {
  func.func @_conv_relu_pool_kernel(%arg0: i32, %arg1: memref<1x4x144x625xf32, #tpu.memory_space<vmem>>, %arg2: memref<32x144xf32, #tpu.memory_space<vmem>>, %arg3: memref<32x1xf32, #tpu.memory_space<vmem>>, %arg4: memref<1x32x625xf32, #tpu.memory_space<vmem>>) attributes {dimension_semantics = [#tpu.dimension_semantics<parallel>], iteration_bounds = array<i64: 2>, scalar_prefetch = 0 : i64, scratch_operands = 0 : i64, tpu.core_type = #tpu.core_type<tc>, window_params = [{transform_indices = @transform_0, window_bounds = array<i64: 1, 4, 144, 625>}, {pipeline_mode = #tpu.pipeline_mode<synchronous>, transform_indices = @transform_1, window_bounds = array<i64: 32, 144>}, {pipeline_mode = #tpu.pipeline_mode<synchronous>, transform_indices = @transform_2, window_bounds = array<i64: 32, 1>}, {transform_indices = @transform_3, window_bounds = array<i64: 1, 32, 625>}]} {
    %c0 = arith.constant 0 : index
    %c0_0 = arith.constant 0 : index
    %0 = vector.load %arg2[%c0, %c0_0] : memref<32x144xf32, #tpu.memory_space<vmem>>, vector<32x144xf32>
    %c0_1 = arith.constant 0 : index
    %c0_2 = arith.constant 0 : index
    %c0_3 = arith.constant 0 : index
    %c0_4 = arith.constant 0 : index
    %1 = vector.load %arg1[%c0_1, %c0_2, %c0_3, %c0_4] : memref<1x4x144x625xf32, #tpu.memory_space<vmem>>, vector<1x1x144x625xf32>
    %2 = vector.shape_cast %1 : vector<1x1x144x625xf32> to vector<144x625xf32>
    %cst = arith.constant dense<0.000000e+00> : vector<32x625xf32>
    %3 = tpu.matmul %0, %2, %cst {dimension_numbers = #tpu.dot_dimension_numbers<[1], [0], [0], [1], [0, 0, 1, 1], [], []>} : vector<32x144xf32>, vector<144x625xf32>, vector<32x625xf32> -> vector<32x625xf32>
    %c0_5 = arith.constant 0 : index
    %c1 = arith.constant 1 : index
    %c0_6 = arith.constant 0 : index
    %c0_7 = arith.constant 0 : index
    %4 = vector.load %arg1[%c0_5, %c1, %c0_6, %c0_7] : memref<1x4x144x625xf32, #tpu.memory_space<vmem>>, vector<1x1x144x625xf32>
    %5 = vector.shape_cast %4 : vector<1x1x144x625xf32> to vector<144x625xf32>
    %cst_8 = arith.constant dense<0.000000e+00> : vector<32x625xf32>
    %6 = tpu.matmul %0, %5, %cst_8 {dimension_numbers = #tpu.dot_dimension_numbers<[1], [0], [0], [1], [0, 0, 1, 1], [], []>} : vector<32x144xf32>, vector<144x625xf32>, vector<32x625xf32> -> vector<32x625xf32>
    %7 = arith.maximumf %3, %6 : vector<32x625xf32>
    %c0_9 = arith.constant 0 : index
    %c2 = arith.constant 2 : index
    %c0_10 = arith.constant 0 : index
    %c0_11 = arith.constant 0 : index
    %8 = vector.load %arg1[%c0_9, %c2, %c0_10, %c0_11] : memref<1x4x144x625xf32, #tpu.memory_space<vmem>>, vector<1x1x144x625xf32>
    %9 = vector.shape_cast %8 : vector<1x1x144x625xf32> to vector<144x625xf32>
    %cst_12 = arith.constant dense<0.000000e+00> : vector<32x625xf32>
    %10 = tpu.matmul %0, %9, %cst_12 {dimension_numbers = #tpu.dot_dimension_numbers<[1], [0], [0], [1], [0, 0, 1, 1], [], []>} : vector<32x144xf32>, vector<144x625xf32>, vector<32x625xf32> -> vector<32x625xf32>
    %11 = arith.maximumf %7, %10 : vector<32x625xf32>
    %c0_13 = arith.constant 0 : index
    %c3 = arith.constant 3 : index
    %c0_14 = arith.constant 0 : index
    %c0_15 = arith.constant 0 : index
    %12 = vector.load %arg1[%c0_13, %c3, %c0_14, %c0_15] : memref<1x4x144x625xf32, #tpu.memory_space<vmem>>, vector<1x1x144x625xf32>
    %13 = vector.shape_cast %12 : vector<1x1x144x625xf32> to vector<144x625xf32>
    %cst_16 = arith.constant dense<0.000000e+00> : vector<32x625xf32>
    %14 = tpu.matmul %0, %13, %cst_16 {dimension_numbers = #tpu.dot_dimension_numbers<[1], [0], [0], [1], [0, 0, 1, 1], [], []>} : vector<32x144xf32>, vector<144x625xf32>, vector<32x625xf32> -> vector<32x625xf32>
    %15 = arith.maximumf %11, %14 : vector<32x625xf32>
    %c0_17 = arith.constant 0 : index
    %c0_18 = arith.constant 0 : index
    %16 = vector.load %arg3[%c0_17, %c0_18] : memref<32x1xf32, #tpu.memory_space<vmem>>, vector<32x1xf32>
    %17 = vector.broadcast %16 : vector<32x1xf32> to vector<32x625xf32>
    %18 = arith.addf %15, %17 : vector<32x625xf32>
    %cst_19 = arith.constant 0.000000e+00 : f32
    %19 = vector.broadcast %cst_19 : f32 to vector<32x625xf32>
    %20 = arith.maximumf %18, %19 : vector<32x625xf32>
    %c0_20 = arith.constant 0 : index
    %c0_21 = arith.constant 0 : index
    %c0_22 = arith.constant 0 : index
    %21 = vector.load %arg4[%c0_20, %c0_21, %c0_22] : memref<1x32x625xf32, #tpu.memory_space<vmem>>, vector<1x32x625xf32>
    %22 = vector.shape_cast %21 : vector<1x32x625xf32> to vector<32x625xf32>
    %23 = vector.shape_cast %20 : vector<32x625xf32> to vector<1x32x625xf32>
    tpu.vector_store %arg4[%c0_20, %c0_21, %c0_22], %23 {strides = array<i32>} : memref<1x32x625xf32, #tpu.memory_space<vmem>>, vector<1x32x625xf32>,
    return
  }
  func.func @transform_0(%arg0: i32) -> (i32, i32, i32, i32) {
    %c0_i32 = arith.constant 0 : i32
    %c0_i32_0 = arith.constant 0 : i32
    %c0_i32_1 = arith.constant 0 : i32
    %c0_i32_2 = arith.constant 0 : i32
    return %arg0, %c0_i32, %c0_i32_0, %c0_i32_1 : i32, i32, i32, i32
  }
  func.func @transform_1(%arg0: i32) -> (i32, i32) {
    %c0_i32 = arith.constant 0 : i32
    %c0_i32_0 = arith.constant 0 : i32
    %c0_i32_1 = arith.constant 0 : i32
    return %c0_i32, %c0_i32_0 : i32, i32
  }
  func.func @transform_2(%arg0: i32) -> (i32, i32) {
    %c0_i32 = arith.constant 0 : i32
    %c0_i32_0 = arith.constant 0 : i32
    %c0_i32_1 = arith.constant 0 : i32
    return %c0_i32, %c0_i32_0 : i32, i32
  }
  func.func @transform_3(%arg0: i32) -> (i32, i32, i32) {
    %c0_i32 = arith.constant 0 : i32
    %c0_i32_0 = arith.constant 0 : i32
    %c0_i32_1 = arith.constant 0 : i32
    return %arg0, %c0_i32, %c0_i32_0 : i32, i32, i32
  }
}

module attributes {stable_mosaic.version = 11 : i64} {
  func.func @_classifier_kernel(%arg0: i32, %arg1: memref<2x2560xf32, #tpu.memory_space<vmem>>, %arg2: memref<2560x64xbf16, #tpu.memory_space<vmem>>, %arg3: memref<1x64xf32, #tpu.memory_space<vmem>>, %arg4: memref<64x3xf32, #tpu.memory_space<vmem>>, %arg5: memref<1x3xf32, #tpu.memory_space<vmem>>, %arg6: memref<2x3xf32, #tpu.memory_space<vmem>>, %arg7: memref<2x64xf32, #tpu.memory_space<vmem>>) attributes {dimension_semantics = [#tpu.dimension_semantics<arbitrary>], iteration_bounds = array<i64: 8>, scalar_prefetch = 0 : i64, scratch_operands = 1 : i64, tpu.core_type = #tpu.core_type<tc>, window_params = [{transform_indices = @transform_0, window_bounds = array<i64: 2, 2560>}, {transform_indices = @transform_1, window_bounds = array<i64: 2560, 64>}, {pipeline_mode = #tpu.pipeline_mode<synchronous>, transform_indices = @transform_2, window_bounds = array<i64: 1, 64>}, {pipeline_mode = #tpu.pipeline_mode<synchronous>, transform_indices = @transform_3, window_bounds = array<i64: 64, 3>}, {pipeline_mode = #tpu.pipeline_mode<synchronous>, transform_indices = @transform_4, window_bounds = array<i64: 1, 3>}, {pipeline_mode = #tpu.pipeline_mode<synchronous>, transform_indices = @transform_5, window_bounds = array<i64: 2, 3>}]} {
    %c0_i32 = arith.constant 0 : i32
    %0 = arith.cmpi eq, %arg0, %c0_i32 : i32
    %1 = arith.extui %0 : i1 to i32
    %c0_i32_0 = arith.constant 0 : i32
    %2 = arith.cmpi ne, %1, %c0_i32_0 : i32
    scf.if %2 {
      %cst_9 = arith.constant 0.000000e+00 : f32
      %13 = vector.broadcast %cst_9 : f32 to vector<2x64xf32>
      %c0_10 = arith.constant 0 : index
      %c0_11 = arith.constant 0 : index
      %14 = vector.load %arg7[%c0_10, %c0_11] : memref<2x64xf32, #tpu.memory_space<vmem>>, vector<2x64xf32>
      tpu.vector_store %arg7[%c0_10, %c0_11], %13 {strides = array<i32>} : memref<2x64xf32, #tpu.memory_space<vmem>>, vector<2x64xf32>,
    } else {
    }
    %c0 = arith.constant 0 : index
    %c0_1 = arith.constant 0 : index
    %3 = vector.load %arg7[%c0, %c0_1] : memref<2x64xf32, #tpu.memory_space<vmem>>, vector<2x64xf32>
    %c0_2 = arith.constant 0 : index
    %c0_3 = arith.constant 0 : index
    %4 = vector.load %arg1[%c0_2, %c0_3] : memref<2x2560xf32, #tpu.memory_space<vmem>>, vector<2x2560xf32>
    %c0_4 = arith.constant 0 : index
    %c0_5 = arith.constant 0 : index
    %5 = vector.load %arg2[%c0_4, %c0_5] : memref<2560x64xbf16, #tpu.memory_space<vmem>>, vector<2560x64xbf16>
    %6 = arith.extf %5 : vector<2560x64xbf16> to vector<2560x64xf32>
    %cst = arith.constant dense<0.000000e+00> : vector<2x64xf32>
    %7 = tpu.matmul %4, %6, %cst {dimension_numbers = #tpu.dot_dimension_numbers<[1], [0], [0], [1], [0, 0, 1, 1], [], []>} : vector<2x2560xf32>, vector<2560x64xf32>, vector<2x64xf32> -> vector<2x64xf32>
    %8 = arith.addf %3, %7 : vector<2x64xf32>
    %c0_6 = arith.constant 0 : index
    %c0_7 = arith.constant 0 : index
    %9 = vector.load %arg7[%c0_6, %c0_7] : memref<2x64xf32, #tpu.memory_space<vmem>>, vector<2x64xf32>
    tpu.vector_store %arg7[%c0_6, %c0_7], %8 {strides = array<i32>} : memref<2x64xf32, #tpu.memory_space<vmem>>, vector<2x64xf32>,
    %c7_i32 = arith.constant 7 : i32
    %10 = arith.cmpi eq, %arg0, %c7_i32 : i32
    %11 = arith.extui %10 : i1 to i32
    %c0_i32_8 = arith.constant 0 : i32
    %12 = arith.cmpi ne, %11, %c0_i32_8 : i32
    scf.if %12 {
      %c0_9 = arith.constant 0 : index
      %c0_10 = arith.constant 0 : index
      %13 = vector.load %arg7[%c0_9, %c0_10] : memref<2x64xf32, #tpu.memory_space<vmem>>, vector<2x64xf32>
      %c0_11 = arith.constant 0 : index
      %c0_12 = arith.constant 0 : index
      %14 = vector.load %arg3[%c0_11, %c0_12] : memref<1x64xf32, #tpu.memory_space<vmem>>, vector<1x64xf32>
      %15 = vector.broadcast %14 : vector<1x64xf32> to vector<2x64xf32>
      %16 = arith.addf %13, %15 : vector<2x64xf32>
      %cst_13 = arith.constant 0.000000e+00 : f32
      %17 = vector.broadcast %cst_13 : f32 to vector<2x64xf32>
      %18 = arith.maximumf %16, %17 : vector<2x64xf32>
      %c0_14 = arith.constant 0 : index
      %c0_15 = arith.constant 0 : index
      %19 = vector.load %arg4[%c0_14, %c0_15] : memref<64x3xf32, #tpu.memory_space<vmem>>, vector<64x3xf32>
      %cst_16 = arith.constant dense<0.000000e+00> : vector<2x3xf32>
      %20 = tpu.matmul %18, %19, %cst_16 {dimension_numbers = #tpu.dot_dimension_numbers<[1], [0], [0], [1], [0, 0, 1, 1], [], []>} : vector<2x64xf32>, vector<64x3xf32>, vector<2x3xf32> -> vector<2x3xf32>
      %c0_17 = arith.constant 0 : index
      %c0_18 = arith.constant 0 : index
      %21 = vector.load %arg5[%c0_17, %c0_18] : memref<1x3xf32, #tpu.memory_space<vmem>>, vector<1x3xf32>
      %22 = vector.broadcast %21 : vector<1x3xf32> to vector<2x3xf32>
      %23 = arith.addf %20, %22 : vector<2x3xf32>
      %c0_19 = arith.constant 0 : index
      %c0_20 = arith.constant 0 : index
      %24 = vector.load %arg6[%c0_19, %c0_20] : memref<2x3xf32, #tpu.memory_space<vmem>>, vector<2x3xf32>
      tpu.vector_store %arg6[%c0_19, %c0_20], %23 {strides = array<i32>} : memref<2x3xf32, #tpu.memory_space<vmem>>, vector<2x3xf32>,
    } else {
    }
    return
  }
  func.func @transform_0(%arg0: i32) -> (i32, i32) {
    %c0_i32 = arith.constant 0 : i32
    %c0_i32_0 = arith.constant 0 : i32
    return %c0_i32, %arg0 : i32, i32
  }
  func.func @transform_1(%arg0: i32) -> (i32, i32) {
    %c0_i32 = arith.constant 0 : i32
    %c0_i32_0 = arith.constant 0 : i32
    return %arg0, %c0_i32 : i32, i32
  }
  func.func @transform_2(%arg0: i32) -> (i32, i32) {
    %c0_i32 = arith.constant 0 : i32
    %c0_i32_0 = arith.constant 0 : i32
    %c0_i32_1 = arith.constant 0 : i32
    return %c0_i32, %c0_i32_0 : i32, i32
  }
  func.func @transform_3(%arg0: i32) -> (i32, i32) {
    %c0_i32 = arith.constant 0 : i32
    %c0_i32_0 = arith.constant 0 : i32
    %c0_i32_1 = arith.constant 0 : i32
    return %c0_i32, %c0_i32_0 : i32, i32
  }
  func.func @transform_4(%arg0: i32) -> (i32, i32) {
    %c0_i32 = arith.constant 0 : i32
    %c0_i32_0 = arith.constant 0 : i32
    %c0_i32_1 = arith.constant 0 : i32
    return %c0_i32, %c0_i32_0 : i32, i32
  }
  func.func @transform_5(%arg0: i32) -> (i32, i32) {
    %c0_i32 = arith.constant 0 : i32
    %c0_i32_0 = arith.constant 0 : i32
    %c0_i32_1 = arith.constant 0 : i32
    return %c0_i32, %c0_i32_0 : i32, i32
  }
}

</mosaic_0001>

<bundles_post_ra>
// kernel: fruit_cnn_forward.3
= control target key start
LH: loop header
LB: loop body
LE: loop exit
PB: predicated region body
PF: predicated region fallthrough
CT: control target
= control target key end

     0   :  { %s4988_s12 = smov 0   ;;  %s6329_s0 = inlined_call_operand.vmem [shape: f32[2,4,27,2500], index: 0, kind: input, shape index: {}]   ;;  %s6330_s1 = inlined_call_operand.vmem [shape: f32[16,27], index: 1, kind: input, shape index: {}]   ;;  %s6331_s2 = inlined_call_operand.vmem [shape: f32[16,1], index: 2, kind: input, shape index: {}]   ;;  %s6332_s3 = inlined_call_operand.vmem [shape: f32[2,16,2500], index: 3, kind: output, shape index: {}]  }
   0x1 LB: > { %s4132_s13 = sadd.s32 4294967295, %s4963_s12   ;;  %p4136_p0 = scmp.ge.s32.totalorder %s4963_s12, 1  ;;  %s4963_s12 = sphi %s4988_s12, %s13_s12  }
   0x2   : > { %p137_p1 = scmp.lt.s32.totalorder %s4963_s12, 3 }
   0x4   : > { %p138_p2 = pnand %p4136_p0, %p137_p1 }
   0x6   : > { %141 = sbr.rel (%p138_p2) target bundleno = 408 (0x198), region = 32 }
   0xd   : > { %p161_p3 = scmp.lt.s32.totalorder %s4132_s13, 1  ;;  %v4965_v0 = vmov 0.0   ;;  %vm260_vm0 = vcmask 1042432   ;;  %vm4966_vm1 = vmmov 1   ;;  %v5035_v28 = vld [vmem:[%s6330_s1] sm:$0xff]  ;;  %vm253_vm3 = vcmask 220160  }
   0xe   : > { %385 = vmatprep.mubr.f32.mxu0 %v4965_v0  ;;  %462 = vmatprep.mubr.f32.mxu1 %v4965_v0  ;;  %vm5006_vm2 = vmpackc.low %vm260_vm0, %vm4966_vm1  ;;  %v5064_v51 = vld [vmem:[%s6330_s1 + $0x8] sm:$0xff]  ;;  %vm4055_vm4 = vcmask 556032  }
   0xf   : > { %s6460_s13 = smov (!%p161_p3, %s4132_s13), 1  ;;  %v3945_v1 = vld [vmem:[%s6331_s2 + $0x8] sm:$0xff] }
  0x10   : > { %s4941_s14 = smul.u32 2560, %s6460_s13 }
  0x11   : > { %s4942_s30 = smul.u32 320, %s6460_s13 }
  0x12   : > { %s5004_s17 = scalar_lea.vmem %s6329_s0, %s4941_s14 }
  0x13   : > { %v174_v2 = vld [vmem:[%s5004_s17 + $0x8] sm:$0xff]  ;;  %v176_v4 = vld [vmem:[%s5004_s17 + $0x18] sm:$0xff]  ;;  %v173_v7 = vld [vmem:[%s5004_s17] sm:$0xff]  ;;  %s6205_s6 = scalar_lea.vmem %s6332_s3, %s4942_s30 }
  0x14   : > { %v194_v3 = vld [vmem:[%s5004_s17 + $0xa8] sm:$0xff]  ;;  %v196_v6 = vld [vmem:[%s5004_s17 + $0xb8] sm:$0xff]  ;;  %v193_v8 = vld [vmem:[%s5004_s17 + $0xa0] sm:$0xff] }
  0x15   : > { %v4541_v5 = vpack.c.bf16 %v194_v3, %v174_v2  ;;  %v4551_v9 = vpack.c.bf16 %v196_v6, %v176_v4  ;;  %v4543_v10 = vpack.c.bf16 %v193_v8, %v173_v7  ;;  %v175_v11 = vld [vmem:[%s5004_s17 + $0x10] sm:$0xff]  ;;  %v214_v13 = vld [vmem:[%s5004_s17 + $0x148] sm:$0xff]  ;;  %v216_v16 = vld [vmem:[%s5004_s17 + $0x158] sm:$0xff] }
  0x16   : > { %v195_v12 = vld [vmem:[%s5004_s17 + $0xb0] sm:$0xff]  ;;  %v234_v15 = vld [vmem:[%s5004_s17 + $0x1e8] sm:$0x7]  ;;  %v236_v17 = vld [vmem:[%s5004_s17 + $0x1f8] sm:$0x7] }
  0x17   : > { %4542 = vmatprep.subr.bf16.mxu0 %v4541_v5  ;;  %v4553_v14 = vpack.c.bf16 %v195_v12, %v175_v11  ;;  %4552 = vmatprep.subr.bf16.mxu1 %v4551_v9  ;;  %v4545_v18 = vpack.c.bf16 %v234_v15, %v214_v13  ;;  %v4555_v19 = vpack.c.bf16 %v236_v17, %v216_v16  ;;  %v213_v20 = vld [vmem:[%s5004_s17 + $0x140] sm:$0xff]  ;;  %v215_v22 = vld [vmem:[%s5004_s17 + $0x150] sm:$0xff]  ;;  %v178_v25 = vld [vmem:[%s5004_s17 + $0x28] sm:$0xff] }
  0x18   : > { %4544 = vmatpush1.bf16.msra.mxu0 %v4543_v10  ;;  %v233_v21 = vld [vmem:[%s5004_s17 + $0x1e0] sm:$0x7]  ;;  %v235_v24 = vld [vmem:[%s5004_s17 + $0x1f0] sm:$0x7]  ;;  %v198_v26 = vld [vmem:[%s5004_s17 + $0xc8] sm:$0xff] }
  0x19   : > { %4554 = vmatpush1.bf16.msra.mxu1 %v4553_v14  ;;  %v4548_v23 = vpack.c.bf16 %v233_v21, %v213_v20  ;;  %4547 = vmatprep.subr.msk.bf16.mxu0 %vm5006_vm2, %v4545_v18  ;;  %v4558_v27 = vpack.c.bf16 %v235_v24, %v215_v22  ;;  %v4561_v29 = vpack.c.bf16 %v198_v26, %v178_v25  ;;  %v180_v30 = vld [vmem:[%s5004_s17 + $0x38] sm:$0xff]  ;;  %v177_v32 = vld [vmem:[%s5004_s17 + $0x20] sm:$0xff]  ;;  %v179_v35 = vld [vmem:[%s5004_s17 + $0x30] sm:$0xff] }
  0x1a   : > { %4557 = vmatprep.subr.msk.bf16.mxu1 %vm5006_vm2, %v4555_v19  ;;  %v200_v31 = vld [vmem:[%s5004_s17 + $0xd8] sm:$0xff]  ;;  %v197_v34 = vld [vmem:[%s5004_s17 + $0xc0] sm:$0xff]  ;;  %v199_v36 = vld [vmem:[%s5004_s17 + $0xd0] sm:$0xff] }
  0x1b   : > { %v4571_v33 = vpack.c.bf16 %v200_v31, %v180_v30  ;;  %v4563_v37 = vpack.c.bf16 %v197_v34, %v177_v32  ;;  %v218_v38 = vld [vmem:[%s5004_s17 + $0x168] sm:$0xff]  ;;  %v220_v40 = vld [vmem:[%s5004_s17 + $0x178] sm:$0xff]  ;;  %v4573_v41 = vpack.c.bf16 %v199_v36, %v179_v35  ;;  %v217_v43 = vld [vmem:[%s5004_s17 + $0x160] sm:$0xff] }
  0x1c   : > { %4550 = vmatpush1.bf16.msk.msra.mxu0 %vm5006_vm2, %v4548_v23  ;;  %v238_v39 = vld [vmem:[%s5004_s17 + $0x208] sm:$0x7]  ;;  %v240_v42 = vld [vmem:[%s5004_s17 + $0x218] sm:$0x7]  ;;  %v237_v44 = vld [vmem:[%s5004_s17 + $0x200] sm:$0x7] }
  0x1d   : > { %4560 = vmatpush1.bf16.msk.msra.mxu1 %vm5006_vm2, %v4558_v27  ;;  %4562 = vmatprep.subr.bf16.mxu0 %v4561_v29  ;;  %v4565_v45 = vpack.c.bf16 %v238_v39, %v218_v38  ;;  %v219_v46 = vld [vmem:[%s5004_s17 + $0x170] sm:$0xff]  ;;  %v4575_v48 = vpack.c.bf16 %v240_v42, %v220_v40  ;;  %v182_v49 = vld [vmem:[%s5004_s17 + $0x48] sm:$0xff]  ;;  %v4568_v52 = vpack.c.bf16 %v237_v44, %v217_v43  ;;  %v184_v53 = vld [vmem:[%s5004_s17 + $0x58] sm:$0xff] }
  0x1e   : > { %4572 = vmatprep.subr.bf16.mxu1 %v4571_v33  ;;  %v239_v47 = vld [vmem:[%s5004_s17 + $0x210] sm:$0x7]  ;;  %v202_v50 = vld [vmem:[%s5004_s17 + $0xe8] sm:$0xff]  ;;  %v204_v54 = vld [vmem:[%s5004_s17 + $0xf8] sm:$0xff] }
  0x1f   : > { %4141 = vmatmul.mubr.msk.f32.vlgmr.msra.gmra.mrb[0].mxu0 %vm253_vm3, %v5035_v28  ;;  %v4578_v55 = vpack.c.bf16 %v239_v47, %v219_v46  ;;  %v181_v56 = vld [vmem:[%s5004_s17 + $0x40] sm:$0xff]  ;;  %v4581_v58 = vpack.c.bf16 %v202_v50, %v182_v49  ;;  %v183_v59 = vld [vmem:[%s5004_s17 + $0x50] sm:$0xff]  ;;  %v4591_v61 = vpack.c.bf16 %v204_v54, %v184_v53  ;;  %v222_v62 = vld [vmem:[%s5004_s17 + $0x188] sm:$0xff] }
  0x20   : > { %4145 = vmatmul.mubr.msk.f32.vlgmr.msra.gmra.mrb[0].mxu1 %vm253_vm3, %v5035_v28  ;;  %4564 = vmatpush1.bf16.msra.mxu0 %v4563_v37  ;;  %v201_v57 = vld [vmem:[%s5004_s17 + $0xe0] sm:$0xff]  ;;  %v203_v60 = vld [vmem:[%s5004_s17 + $0xf0] sm:$0xff]  ;;  %v242_v63 = vld [vmem:[%s5004_s17 + $0x228] sm:$0x7] }
  0x21   : > { %4574 = vmatpush1.bf16.msra.mxu1 %v4573_v41  ;;  %391 = vmatprep.mubr.f32.mxu0 %v4965_v0  ;;  %v4583_v2 = vpack.c.bf16 %v201_v57, %v181_v56  ;;  %v224_v3 = vld [vmem:[%s5004_s17 + $0x198] sm:$0xff]  ;;  %v4593_v5 = vpack.c.bf16 %v203_v60, %v183_v59  ;;  %v221_v6 = vld [vmem:[%s5004_s17 + $0x180] sm:$0xff]  ;;  %v4585_v8 = vpack.c.bf16 %v242_v63, %v222_v62  ;;  %v223_v9 = vld [vmem:[%s5004_s17 + $0x190] sm:$0xff] }
  0x22   : > { %468 = vmatprep.mubr.f32.mxu1 %v4965_v0  ;;  %4567 = vmatprep.subr.msk.bf16.mxu0 %vm5006_vm2, %v4565_v45  ;;  %v244_v4 = vld [vmem:[%s5004_s17 + $0x238] sm:$0x7]  ;;  %v241_v7 = vld [vmem:[%s5004_s17 + $0x220] sm:$0x7]  ;;  %v243_v10 = vld [vmem:[%s5004_s17 + $0x230] sm:$0x7] }
  0x23   : > { %4142 = vmatmul.mubr.msk.f32.gmra.mrb[2].mxu0 %vm253_vm3, %v5064_v51  ;;  %4577 = vmatprep.subr.msk.bf16.mxu1 %vm5006_vm2, %v4575_v48  ;;  %v4595_v11 = vpack.c.bf16 %v244_v4, %v224_v3  ;;  %v186_v12 = vld [vmem:[%s5004_s17 + $0x68] sm:$0xff]  ;;  %v4588_v14 = vpack.c.bf16 %v241_v7, %v221_v6  ;;  %v188_v15 = vld [vmem:[%s5004_s17 + $0x78] sm:$0xff]  ;;  %v4598_v17 = vpack.c.bf16 %v243_v10, %v223_v9  ;;  %v185_v18 = vld [vmem:[%s5004_s17 + $0x60] sm:$0xff] }
  0x24   : > { %4146 = vmatmul.mubr.msk.f32.gmra.mrb[2].mxu1 %vm253_vm3, %v5064_v51  ;;  %4570 = vmatpush1.bf16.msk.msra.mxu0 %vm5006_vm2, %v4568_v52  ;;  %v206_v13 = vld [vmem:[%s5004_s17 + $0x108] sm:$0xff]  ;;  %v208_v16 = vld [vmem:[%s5004_s17 + $0x118] sm:$0xff]  ;;  %v205_v19 = vld [vmem:[%s5004_s17 + $0x100] sm:$0xff] }
  0x25   : > { %4580 = vmatpush1.bf16.msk.msra.mxu1 %vm5006_vm2, %v4578_v55  ;;  %539 = vmatprep.mubr.f32.mxu0 %v4965_v0  ;;  %v4601_v20 = vpack.c.bf16 %v206_v13, %v186_v12  ;;  %v187_v21 = vld [vmem:[%s5004_s17 + $0x70] sm:$0xff]  ;;  %v4611_v23 = vpack.c.bf16 %v208_v16, %v188_v15  ;;  %v226_v24 = vld [vmem:[%s5004_s17 + $0x1a8] sm:$0xff]  ;;  %v4603_v26 = vpack.c.bf16 %v205_v19, %v185_v18  ;;  %v228_v27 = vld [vmem:[%s5004_s17 + $0x1b8] sm:$0xff] }
  0x26   : > { %616 = vmatprep.mubr.f32.mxu1 %v4965_v0  ;;  %4582 = vmatprep.subr.bf16.mxu0 %v4581_v58  ;;  %v207_v22 = vld [vmem:[%s5004_s17 + $0x110] sm:$0xff]  ;;  %v246_v25 = vld [vmem:[%s5004_s17 + $0x248] sm:$0x7]  ;;  %v248_v29 = vld [vmem:[%s5004_s17 + $0x258] sm:$0x7] }
  0x27   : > { %4149 = vmatmul.mubr.msk.f32.vlgmr.msra.gmra.mrb[4].mxu0 %vm253_vm3, %v5035_v28  ;;  %4592 = vmatprep.subr.bf16.mxu1 %v4591_v61  ;;  %v4613_v30 = vpack.c.bf16 %v207_v22, %v187_v21  ;;  %v225_v31 = vld [vmem:[%s5004_s17 + $0x1a0] sm:$0xff]  ;;  %v4605_v33 = vpack.c.bf16 %v246_v25, %v226_v24  ;;  %v227_v34 = vld [vmem:[%s5004_s17 + $0x1b0] sm:$0xff]  ;;  %v4615_v36 = vpack.c.bf16 %v248_v29, %v228_v27  ;;  %v190_v37 = vld [vmem:[%s5004_s17 + $0x88] sm:$0xff] }
  0x28   : > { %4153 = vmatmul.mubr.msk.f32.vlgmr.msra.gmra.mrb[4].mxu1 %vm253_vm3, %v5035_v28  ;;  %4584 = vmatpush1.bf16.msra.mxu0 %v4583_v2  ;;  %v245_v32 = vld [vmem:[%s5004_s17 + $0x240] sm:$0x7]  ;;  %v247_v35 = vld [vmem:[%s5004_s17 + $0x250] sm:$0x7]  ;;  %v210_v38 = vld [vmem:[%s5004_s17 + $0x128] sm:$0xff] }
  0x29   : > { %4594 = vmatpush1.bf16.msra.mxu1 %v4593_v5  ;;  %545 = vmatprep.mubr.f32.mxu0 %v4965_v0  ;;  %v4608_v39 = vpack.c.bf16 %v245_v32, %v225_v31  ;;  %v192_v40 = vld [vmem:[%s5004_s17 + $0x98] sm:$0xff]  ;;  %v4618_v42 = vpack.c.bf16 %v247_v35, %v227_v34  ;;  %v189_v43 = vld [vmem:[%s5004_s17 + $0x80] sm:$0xff]  ;;  %v4621_v45 = vpack.c.bf16 %v210_v38, %v190_v37  ;;  %v191_v46 = vld [vmem:[%s5004_s17 + $0x90] sm:$0xff] }
  0x2a   : > { %622 = vmatprep.mubr.f32.mxu1 %v4965_v0  ;;  %4587 = vmatprep.subr.msk.bf16.mxu0 %vm5006_vm2, %v4585_v8  ;;  %v212_v41 = vld [vmem:[%s5004_s17 + $0x138] sm:$0xff]  ;;  %v209_v44 = vld [vmem:[%s5004_s17 + $0x120] sm:$0xff]  ;;  %v211_v47 = vld [vmem:[%s5004_s17 + $0x130] sm:$0xff] }
  0x2b   : > { %4150 = vmatmul.mubr.msk.f32.gmra.mrb[6].mxu0 %vm253_vm3, %v5064_v51  ;;  %4597 = vmatprep.subr.msk.bf16.mxu1 %vm5006_vm2, %v4595_v11  ;;  %v4631_v48 = vpack.c.bf16 %v212_v41, %v192_v40  ;;  %v230_v49 = vld [vmem:[%s5004_s17 + $0x1c8] sm:$0xff]  ;;  %v4623_v52 = vpack.c.bf16 %v209_v44, %v189_v43  ;;  %v232_v53 = vld [vmem:[%s5004_s17 + $0x1d8] sm:$0xff]  ;;  %v4633_v55 = vpack.c.bf16 %v211_v47, %v191_v46  ;;  %v229_v56 = vld [vmem:[%s5004_s17 + $0x1c0] sm:$0xff] }
  0x2c   : > { %4154 = vmatmul.mubr.msk.f32.gmra.mrb[6].mxu1 %vm253_vm3, %v5064_v51  ;;  %4590 = vmatpush1.bf16.msk.msra.mxu0 %vm5006_vm2, %v4588_v14  ;;  %v250_v50 = vld [vmem:[%s5004_s17 + $0x268] sm:$0x7]  ;;  %v252_v54 = vld [vmem:[%s5004_s17 + $0x278] sm:$0x7]  ;;  %v249_v57 = vld [vmem:[%s5004_s17 + $0x260] sm:$0x7] }
  0x2d   : > { %4600 = vmatpush1.bf16.msk.msra.mxu1 %vm5006_vm2, %v4598_v17  ;;  %693 = vmatprep.mubr.f32.mxu0 %v4965_v0  ;;  %v4625_v58 = vpack.c.bf16 %v250_v50, %v230_v49  ;;  %v231_v59 = vld [vmem:[%s5004_s17 + $0x1d0] sm:$0xff]  ;;  %v4635_v61 = vpack.c.bf16 %v252_v54, %v232_v53  ;;  %v4180_v62 = vld [vmem:[%s5004_s17 + $0x288] sm:$0xff]  ;;  %v4628_v2 = vpack.c.bf16 %v249_v57, %v229_v56  ;;  %v4182_v3 = vld [vmem:[%s5004_s17 + $0x298] sm:$0xff] }
  0x2e   : > { %770 = vmatprep.mubr.f32.mxu1 %v4965_v0  ;;  %4602 = vmatprep.subr.bf16.mxu0 %v4601_v20  ;;  %v251_v60 = vld [vmem:[%s5004_s17 + $0x270] sm:$0x7]  ;;  %v4200_v63 = vld [vmem:[%s5004_s17 + $0x328] sm:$0xff]  ;;  %v4202_v4 = vld [vmem:[%s5004_s17 + $0x338] sm:$0xff] }
  0x2f   : > { %4157 = vmatmul.mubr.msk.f32.vlgmr.msra.gmra.mrb[8].mxu0 %vm253_vm3, %v5035_v28  ;;  %4612 = vmatprep.subr.bf16.mxu1 %v4611_v23  ;;  %v4638_v5 = vpack.c.bf16 %v251_v60, %v231_v59  ;;  %v4179_v6 = vld [vmem:[%s5004_s17 + $0x280] sm:$0xff]  ;;  %v4641_v8 = vpack.c.bf16 %v4200_v63, %v4180_v62  ;;  %v4181_v9 = vld [vmem:[%s5004_s17 + $0x290] sm:$0xff]  ;;  %v4651_v11 = vpack.c.bf16 %v4202_v4, %v4182_v3  ;;  %v4220_v12 = vld [vmem:[%s5004_s17 + $0x3c8] sm:$0xff] }
  0x30   : > { %4161 = vmatmul.mubr.msk.f32.vlgmr.msra.gmra.mrb[8].mxu1 %vm253_vm3, %v5035_v28  ;;  %4604 = vmatpush1.bf16.msra.mxu0 %v4603_v26  ;;  %v4199_v7 = vld [vmem:[%s5004_s17 + $0x320] sm:$0xff]  ;;  %v4201_v10 = vld [vmem:[%s5004_s17 + $0x330] sm:$0xff]  ;;  %v4240_v13 = vld [vmem:[%s5004_s17 + $0x468] sm:$0x7] }
  0x31   : > { %4614 = vmatpush1.bf16.msra.mxu1 %v4613_v30  ;;  %699 = vmatprep.mubr.f32.mxu0 %v4965_v0  ;;  %v4643_v14 = vpack.c.bf16 %v4199_v7, %v4179_v6  ;;  %v4222_v15 = vld [vmem:[%s5004_s17 + $0x3d8] sm:$0xff]  ;;  %v4653_v17 = vpack.c.bf16 %v4201_v10, %v4181_v9  ;;  %v4219_v18 = vld [vmem:[%s5004_s17 + $0x3c0] sm:$0xff]  ;;  %v4645_v20 = vpack.c.bf16 %v4240_v13, %v4220_v12  ;;  %v4221_v21 = vld [vmem:[%s5004_s17 + $0x3d0] sm:$0xff] }
  0x32   : > { %776 = vmatprep.mubr.f32.mxu1 %v4965_v0  ;;  %4607 = vmatprep.subr.msk.bf16.mxu0 %vm5006_vm2, %v4605_v33  ;;  %v4242_v16 = vld [vmem:[%s5004_s17 + $0x478] sm:$0x7]  ;;  %v4239_v19 = vld [vmem:[%s5004_s17 + $0x460] sm:$0x7]  ;;  %v4241_v22 = vld [vmem:[%s5004_s17 + $0x470] sm:$0x7] }
  0x33   : > { %4158 = vmatmul.mubr.msk.f32.gmra.mrb[10].mxu0 %vm253_vm3, %v5064_v51  ;;  %4617 = vmatprep.subr.msk.bf16.mxu1 %vm5006_vm2, %v4615_v36  ;;  %v4655_v23 = vpack.c.bf16 %v4242_v16, %v4222_v15  ;;  %v4184_v24 = vld [vmem:[%s5004_s17 + $0x2a8] sm:$0xff]  ;;  %v4648_v26 = vpack.c.bf16 %v4239_v19, %v4219_v18  ;;  %v4186_v27 = vld [vmem:[%s5004_s17 + $0x2b8] sm:$0xff]  ;;  %v4658_v30 = vpack.c.bf16 %v4241_v22, %v4221_v21  ;;  %v4183_v31 = vld [vmem:[%s5004_s17 + $0x2a0] sm:$0xff] }
  0x34   : > { %4162 = vmatmul.mubr.msk.f32.gmra.mrb[10].mxu1 %vm253_vm3, %v5064_v51  ;;  %4610 = vmatpush1.bf16.msk.msra.mxu0 %vm5006_vm2, %v4608_v39  ;;  %v4204_v25 = vld [vmem:[%s5004_s17 + $0x348] sm:$0xff]  ;;  %v4206_v29 = vld [vmem:[%s5004_s17 + $0x358] sm:$0xff]  ;;  %v4203_v32 = vld [vmem:[%s5004_s17 + $0x340] sm:$0xff] }
  0x35   : > { %4620 = vmatpush1.bf16.msk.msra.mxu1 %vm5006_vm2, %v4618_v42  ;;  %847 = vmatprep.mubr.f32.mxu0 %v4965_v0  ;;  %v4661_v33 = vpack.c.bf16 %v4204_v25, %v4184_v24  ;;  %v4185_v34 = vld [vmem:[%s5004_s17 + $0x2b0] sm:$0xff]  ;;  %v4671_v36 = vpack.c.bf16 %v4206_v29, %v4186_v27  ;;  %v4224_v37 = vld [vmem:[%s5004_s17 + $0x3e8] sm:$0xff]  ;;  %v4663_v39 = vpack.c.bf16 %v4203_v32, %v4183_v31  ;;  %v4226_v40 = vld [vmem:[%s5004_s17 + $0x3f8] sm:$0xff] }
  0x36   : > { %924 = vmatprep.mubr.f32.mxu1 %v4965_v0  ;;  %4622 = vmatprep.subr.bf16.mxu0 %v4621_v45  ;;  %v4205_v35 = vld [vmem:[%s5004_s17 + $0x350] sm:$0xff]  ;;  %v4244_v38 = vld [vmem:[%s5004_s17 + $0x488] sm:$0x7]  ;;  %v4246_v41 = vld [vmem:[%s5004_s17 + $0x498] sm:$0x7] }
  0x37   : > { %4165 = vmatmul.mubr.msk.f32.vlgmr.msra.gmra.mrb[12].mxu0 %vm253_vm3, %v5035_v28  ;;  %4632 = vmatprep.subr.bf16.mxu1 %v4631_v48  ;;  %v4673_v42 = vpack.c.bf16 %v4205_v35, %v4185_v34  ;;  %v4223_v43 = vld [vmem:[%s5004_s17 + $0x3e0] sm:$0xff]  ;;  %v4665_v45 = vpack.c.bf16 %v4244_v38, %v4224_v37  ;;  %v4225_v46 = vld [vmem:[%s5004_s17 + $0x3f0] sm:$0xff]  ;;  %v4675_v48 = vpack.c.bf16 %v4246_v41, %v4226_v40  ;;  %v4188_v49 = vld [vmem:[%s5004_s17 + $0x2c8] sm:$0xff] }
  0x38   : > { %4169 = vmatmul.mubr.msk.f32.vlgmr.msra.gmra.mrb[12].mxu1 %vm253_vm3, %v5035_v28  ;;  %4624 = vmatpush1.bf16.msra.mxu0 %v4623_v52  ;;  %v4243_v44 = vld [vmem:[%s5004_s17 + $0x480] sm:$0x7]  ;;  %v4245_v47 = vld [vmem:[%s5004_s17 + $0x490] sm:$0x7]  ;;  %v4208_v50 = vld [vmem:[%s5004_s17 + $0x368] sm:$0xff] }
  0x39   : > { %4634 = vmatpush1.bf16.msra.mxu1 %v4633_v55  ;;  %853 = vmatprep.mubr.f32.mxu0 %v4965_v0  ;;  %v4668_v52 = vpack.c.bf16 %v4243_v44, %v4223_v43  ;;  %v4190_v53 = vld [vmem:[%s5004_s17 + $0x2d8] sm:$0xff]  ;;  %v4678_v55 = vpack.c.bf16 %v4245_v47, %v4225_v46  ;;  %v4187_v56 = vld [vmem:[%s5004_s17 + $0x2c0] sm:$0xff]  ;;  %v4189_v59 = vld [vmem:[%s5004_s17 + $0x2d0] sm:$0xff] }
  0x3a   : > { %930 = vmatprep.mubr.f32.mxu1 %v4965_v0  ;;  %4627 = vmatprep.subr.msk.bf16.mxu0 %vm5006_vm2, %v4625_v58  ;;  %v4210_v54 = vld [vmem:[%s5004_s17 + $0x378] sm:$0xff]  ;;  %v4207_v57 = vld [vmem:[%s5004_s17 + $0x360] sm:$0xff]  ;;  %v4681_v58 = vpack.c.bf16 %v4208_v50, %v4188_v49  ;;  %v4209_v60 = vld [vmem:[%s5004_s17 + $0x370] sm:$0xff] }
  0x3b   : > { %4166 = vmatmul.mubr.msk.f32.gmra.mrb[14].mxu0 %vm253_vm3, %v5064_v51  ;;  %4637 = vmatprep.subr.msk.bf16.mxu1 %vm5006_vm2, %v4635_v61  ;;  %v4691_v61 = vpack.c.bf16 %v4210_v54, %v4190_v53  ;;  %v4228_v62 = vld [vmem:[%s5004_s17 + $0x408] sm:$0xff]  ;;  %v4230_v3 = vld [vmem:[%s5004_s17 + $0x418] sm:$0xff]  ;;  %v4227_v6 = vld [vmem:[%s5004_s17 + $0x400] sm:$0xff] }
  0x3c   : > { %4170 = vmatmul.mubr.msk.f32.gmra.mrb[14].mxu1 %vm253_vm3, %v5064_v51  ;;  %4630 = vmatpush1.bf16.msk.msra.mxu0 %vm5006_vm2, %v4628_v2  ;;  %v4248_v63 = vld [vmem:[%s5004_s17 + $0x4a8] sm:$0x7]  ;;  %v4683_v2 = vpack.c.bf16 %v4207_v57, %v4187_v56  ;;  %v4250_v4 = vld [vmem:[%s5004_s17 + $0x4b8] sm:$0x7]  ;;  %v4247_v7 = vld [vmem:[%s5004_s17 + $0x4a0] sm:$0x7] }
  0x3d   : > { %4640 = vmatpush1.bf16.msk.msra.mxu1 %vm5006_vm2, %v4638_v5  ;;  %1001 = vmatprep.mubr.f32.mxu0 %v4965_v0  ;;  %v4693_v5 = vpack.c.bf16 %v4209_v60, %v4189_v59  ;;  %v4229_v9 = vld [vmem:[%s5004_s17 + $0x410] sm:$0xff]  ;;  %v4192_v12 = vld [vmem:[%s5004_s17 + $0x2e8] sm:$0xff]  ;;  %v4194_v15 = vld [vmem:[%s5004_s17 + $0x2f8] sm:$0xff] }
  0x3e   : > { %1078 = vmatprep.mubr.f32.mxu1 %v4965_v0  ;;  %4642 = vmatprep.subr.bf16.mxu0 %v4641_v8  ;;  %v4685_v8 = vpack.c.bf16 %v4248_v63, %v4228_v62  ;;  %v4249_v10 = vld [vmem:[%s5004_s17 + $0x4b0] sm:$0x7]  ;;  %v4212_v13 = vld [vmem:[%s5004_s17 + $0x388] sm:$0xff]  ;;  %v4214_v16 = vld [vmem:[%s5004_s17 + $0x398] sm:$0xff] }
  0x3f   : > { %4173 = vmatmul.mubr.msk.f32.vlgmr.msra.gmra.mrb[16].mxu0 %vm253_vm3, %v5035_v28  ;;  %4652 = vmatprep.subr.bf16.mxu1 %v4651_v11  ;;  %v4695_v11 = vpack.c.bf16 %v4250_v4, %v4230_v3  ;;  %v4191_v18 = vld [vmem:[%s5004_s17 + $0x2e0] sm:$0xff]  ;;  %v4193_v21 = vld [vmem:[%s5004_s17 + $0x2f0] sm:$0xff]  ;;  %v4232_v24 = vld [vmem:[%s5004_s17 + $0x428] sm:$0xff] }
  0x40   : > { %4177 = vmatmul.mubr.msk.f32.vlgmr.msra.gmra.mrb[16].mxu1 %vm253_vm3, %v5035_v28  ;;  %4644 = vmatpush1.bf16.msra.mxu0 %v4643_v14  ;;  %v4688_v14 = vpack.c.bf16 %v4247_v7, %v4227_v6  ;;  %v4211_v19 = vld [vmem:[%s5004_s17 + $0x380] sm:$0xff]  ;;  %v4213_v22 = vld [vmem:[%s5004_s17 + $0x390] sm:$0xff]  ;;  %v4252_v25 = vld [vmem:[%s5004_s17 + $0x4c8] sm:$0x7] }
  0x41   : > { %4654 = vmatpush1.bf16.msra.mxu1 %v4653_v17  ;;  %1007 = vmatprep.mubr.f32.mxu0 %v4965_v0  ;;  %v4698_v17 = vpack.c.bf16 %v4249_v10, %v4229_v9  ;;  %v4234_v27 = vld [vmem:[%s5004_s17 + $0x438] sm:$0xff]  ;;  %v4231_v31 = vld [vmem:[%s5004_s17 + $0x420] sm:$0xff]  ;;  %v4233_v34 = vld [vmem:[%s5004_s17 + $0x430] sm:$0xff] }
  0x42   : > { %1084 = vmatprep.mubr.f32.mxu1 %v4965_v0  ;;  %4647 = vmatprep.subr.msk.bf16.mxu0 %vm5006_vm2, %v4645_v20  ;;  %v4701_v20 = vpack.c.bf16 %v4212_v13, %v4192_v12  ;;  %v4254_v29 = vld [vmem:[%s5004_s17 + $0x4d8] sm:$0x7]  ;;  %v4251_v32 = vld [vmem:[%s5004_s17 + $0x4c0] sm:$0x7]  ;;  %v4253_v35 = vld [vmem:[%s5004_s17 + $0x4d0] sm:$0x7] }
  0x43   : > { %4174 = vmatmul.mubr.msk.f32.gmra.mrb[18].mxu0 %vm253_vm3, %v5064_v51  ;;  %4657 = vmatprep.subr.msk.bf16.mxu1 %vm5006_vm2, %v4655_v23  ;;  %v4711_v23 = vpack.c.bf16 %v4214_v16, %v4194_v15  ;;  %v4196_v37 = vld [vmem:[%s5004_s17 + $0x308] sm:$0xff]  ;;  %v4198_v40 = vld [vmem:[%s5004_s17 + $0x318] sm:$0xff]  ;;  %v4195_v43 = vld [vmem:[%s5004_s17 + $0x300] sm:$0xff] }
  0x44   : > { %4178 = vmatmul.mubr.msk.f32.gmra.mrb[18].mxu1 %vm253_vm3, %v5064_v51  ;;  %4650 = vmatpush1.bf16.msk.msra.mxu0 %vm5006_vm2, %v4648_v26  ;;  %v4703_v26 = vpack.c.bf16 %v4211_v19, %v4191_v18  ;;  %v4216_v38 = vld [vmem:[%s5004_s17 + $0x3a8] sm:$0xff]  ;;  %v4218_v41 = vld [vmem:[%s5004_s17 + $0x3b8] sm:$0xff]  ;;  %v4215_v44 = vld [vmem:[%s5004_s17 + $0x3a0] sm:$0xff] }
  0x45   : > { %4660 = vmatpush1.bf16.msk.msra.mxu1 %vm5006_vm2, %v4658_v30  ;;  %1296 = vmatprep.mubr.f32.mxu0 %v4965_v0  ;;  %v4713_v30 = vpack.c.bf16 %v4213_v22, %v4193_v21  ;;  %v4197_v46 = vld [vmem:[%s5004_s17 + $0x310] sm:$0xff]  ;;  %v4236_v49 = vld [vmem:[%s5004_s17 + $0x448] sm:$0xff]  ;;  %v4238_v53 = vld [vmem:[%s5004_s17 + $0x458] sm:$0xff] }
  0x46   : > { %1373 = vmatprep.mubr.f32.mxu1 %v4965_v0  ;;  %4662 = vmatprep.subr.bf16.mxu0 %v4661_v33  ;;  %v4705_v33 = vpack.c.bf16 %v4252_v25, %v4232_v24  ;;  %v4217_v47 = vld [vmem:[%s5004_s17 + $0x3b0] sm:$0xff]  ;;  %v4256_v50 = vld [vmem:[%s5004_s17 + $0x4e8] sm:$0x7]  ;;  %v4258_v54 = vld [vmem:[%s5004_s17 + $0x4f8] sm:$0x7] }
  0x47   : > { %4261 = vmatmul.mubr.msk.f32.vlgmr.msra.gmra.mrb[20].mxu0 %vm253_vm3, %v5035_v28  ;;  %4672 = vmatprep.subr.bf16.mxu1 %v4671_v36  ;;  %v4715_v36 = vpack.c.bf16 %v4254_v29, %v4234_v27  ;;  %v4235_v56 = vld [vmem:[%s5004_s17 + $0x440] sm:$0xff]  ;;  %v4237_v59 = vld [vmem:[%s5004_s17 + $0x450] sm:$0xff]  ;;  %v4300_v62 = vld [vmem:[%s5004_s17 + $0x508] sm:$0xff] }
  0x48   : > { %4265 = vmatmul.mubr.msk.f32.vlgmr.msra.gmra.mrb[20].mxu1 %vm253_vm3, %v5035_v28  ;;  %4664 = vmatpush1.bf16.msra.mxu0 %v4663_v39  ;;  %v4708_v39 = vpack.c.bf16 %v4251_v32, %v4231_v31  ;;  %v4255_v57 = vld [vmem:[%s5004_s17 + $0x4e0] sm:$0x7]  ;;  %v4257_v60 = vld [vmem:[%s5004_s17 + $0x4f0] sm:$0x7]  ;;  %v4320_v63 = vld [vmem:[%s5004_s17 + $0x5a8] sm:$0xff] }
  0x49   : > { %4674 = vmatpush1.bf16.msra.mxu1 %v4673_v42  ;;  %1302 = vmatprep.mubr.f32.mxu0 %v4965_v0  ;;  %v4718_v42 = vpack.c.bf16 %v4253_v35, %v4233_v34  ;;  %v4302_v3 = vld [vmem:[%s5004_s17 + $0x518] sm:$0xff]  ;;  %v4299_v6 = vld [vmem:[%s5004_s17 + $0x500] sm:$0xff]  ;;  %v4301_v9 = vld [vmem:[%s5004_s17 + $0x510] sm:$0xff] }
  0x4a   : > { %1379 = vmatprep.mubr.f32.mxu1 %v4965_v0  ;;  %4667 = vmatprep.subr.msk.bf16.mxu0 %vm5006_vm2, %v4665_v45  ;;  %v4721_v45 = vpack.c.bf16 %v4216_v38, %v4196_v37  ;;  %v4322_v4 = vld [vmem:[%s5004_s17 + $0x5b8] sm:$0xff]  ;;  %v4319_v7 = vld [vmem:[%s5004_s17 + $0x5a0] sm:$0xff]  ;;  %v4321_v10 = vld [vmem:[%s5004_s17 + $0x5b0] sm:$0xff] }
  0x4b   : > { %4262 = vmatmul.mubr.msk.f32.gmra.mrb[22].mxu0 %vm253_vm3, %v5064_v51  ;;  %4677 = vmatprep.subr.msk.bf16.mxu1 %vm5006_vm2, %v4675_v48  ;;  %v4731_v48 = vpack.c.bf16 %v4218_v41, %v4198_v40  ;;  %v4340_v12 = vld [vmem:[%s5004_s17 + $0x648] sm:$0xff]  ;;  %v4342_v15 = vld [vmem:[%s5004_s17 + $0x658] sm:$0xff]  ;;  %v4339_v18 = vld [vmem:[%s5004_s17 + $0x640] sm:$0xff] }
  0x4c   : > { %4266 = vmatmul.mubr.msk.f32.gmra.mrb[22].mxu1 %vm253_vm3, %v5064_v51  ;;  %4670 = vmatpush1.bf16.msk.msra.mxu0 %vm5006_vm2, %v4668_v52  ;;  %v4723_v52 = vpack.c.bf16 %v4215_v44, %v4195_v43  ;;  %v4360_v13 = vld [vmem:[%s5004_s17 + $0x6e8] sm:$0x7]  ;;  %v4362_v16 = vld [vmem:[%s5004_s17 + $0x6f8] sm:$0x7]  ;;  %v4359_v19 = vld [vmem:[%s5004_s17 + $0x6e0] sm:$0x7] }
  0x4d   : > { %4680 = vmatpush1.bf16.msk.msra.mxu1 %vm5006_vm2, %v4678_v55  ;;  %1450 = vmatprep.mubr.f32.mxu0 %v4965_v0  ;;  %v4733_v55 = vpack.c.bf16 %v4217_v47, %v4197_v46  ;;  %v4341_v21 = vld [vmem:[%s5004_s17 + $0x650] sm:$0xff]  ;;  %v4304_v24 = vld [vmem:[%s5004_s17 + $0x528] sm:$0xff]  ;;  %v4306_v27 = vld [vmem:[%s5004_s17 + $0x538] sm:$0xff] }
  0x4e   : > { %1527 = vmatprep.mubr.f32.mxu1 %v4965_v0  ;;  %4682 = vmatprep.subr.bf16.mxu0 %v4681_v58  ;;  %v4725_v58 = vpack.c.bf16 %v4256_v50, %v4236_v49  ;;  %v4361_v22 = vld [vmem:[%s5004_s17 + $0x6f0] sm:$0x7]  ;;  %v4324_v25 = vld [vmem:[%s5004_s17 + $0x5c8] sm:$0xff]  ;;  %v4326_v29 = vld [vmem:[%s5004_s17 + $0x5d8] sm:$0xff] }
  0x4f   : > { %4269 = vmatmul.mubr.msk.f32.vlgmr.msra.gmra.mrb[24].mxu0 %vm253_vm3, %v5035_v28  ;;  %4692 = vmatprep.subr.bf16.mxu1 %v4691_v61  ;;  %v4735_v61 = vpack.c.bf16 %v4258_v54, %v4238_v53  ;;  %v4303_v31 = vld [vmem:[%s5004_s17 + $0x520] sm:$0xff]  ;;  %v4305_v34 = vld [vmem:[%s5004_s17 + $0x530] sm:$0xff]  ;;  %v4344_v37 = vld [vmem:[%s5004_s17 + $0x668] sm:$0xff] }
  0x50   : > { %4273 = vmatmul.mubr.msk.f32.vlgmr.msra.gmra.mrb[24].mxu1 %vm253_vm3, %v5035_v28  ;;  %4684 = vmatpush1.bf16.msra.mxu0 %v4683_v2  ;;  %v4728_v2 = vpack.c.bf16 %v4255_v57, %v4235_v56  ;;  %v4323_v32 = vld [vmem:[%s5004_s17 + $0x5c0] sm:$0xff]  ;;  %v4325_v35 = vld [vmem:[%s5004_s17 + $0x5d0] sm:$0xff]  ;;  %v4364_v38 = vld [vmem:[%s5004_s17 + $0x708] sm:$0x7] }
  0x51   : > { %4694 = vmatpush1.bf16.msra.mxu1 %v4693_v5  ;;  %1456 = vmatprep.mubr.f32.mxu0 %v4965_v0  ;;  %v4738_v5 = vpack.c.bf16 %v4257_v60, %v4237_v59  ;;  %v4346_v40 = vld [vmem:[%s5004_s17 + $0x678] sm:$0xff]  ;;  %v4343_v43 = vld [vmem:[%s5004_s17 + $0x660] sm:$0xff]  ;;  %v4345_v46 = vld [vmem:[%s5004_s17 + $0x670] sm:$0xff] }
  0x52   : > { %1533 = vmatprep.mubr.f32.mxu1 %v4965_v0  ;;  %4687 = vmatprep.subr.msk.bf16.mxu0 %vm5006_vm2, %v4685_v8  ;;  %v4741_v8 = vpack.c.bf16 %v4320_v63, %v4300_v62  ;;  %v4366_v41 = vld [vmem:[%s5004_s17 + $0x718] sm:$0x7]  ;;  %v4363_v44 = vld [vmem:[%s5004_s17 + $0x700] sm:$0x7]  ;;  %v4365_v47 = vld [vmem:[%s5004_s17 + $0x710] sm:$0x7] }
  0x53   : > { %4270 = vmatmul.mubr.msk.f32.gmra.mrb[26].mxu0 %vm253_vm3, %v5064_v51  ;;  %4697 = vmatprep.subr.msk.bf16.mxu1 %vm5006_vm2, %v4695_v11  ;;  %v4751_v11 = vpack.c.bf16 %v4322_v4, %v4302_v3  ;;  %v4308_v49 = vld [vmem:[%s5004_s17 + $0x548] sm:$0xff]  ;;  %v4310_v53 = vld [vmem:[%s5004_s17 + $0x558] sm:$0xff]  ;;  %v4307_v56 = vld [vmem:[%s5004_s17 + $0x540] sm:$0xff] }
  0x54   : > { %4274 = vmatmul.mubr.msk.f32.gmra.mrb[26].mxu1 %vm253_vm3, %v5064_v51  ;;  %4690 = vmatpush1.bf16.msk.msra.mxu0 %vm5006_vm2, %v4688_v14  ;;  %v4743_v14 = vpack.c.bf16 %v4319_v7, %v4299_v6  ;;  %v4328_v50 = vld [vmem:[%s5004_s17 + $0x5e8] sm:$0xff]  ;;  %v4330_v54 = vld [vmem:[%s5004_s17 + $0x5f8] sm:$0xff]  ;;  %v4327_v57 = vld [vmem:[%s5004_s17 + $0x5e0] sm:$0xff] }
  0x55   : > { %4700 = vmatpush1.bf16.msk.msra.mxu1 %vm5006_vm2, %v4698_v17  ;;  %1604 = vmatprep.mubr.f32.mxu0 %v4965_v0  ;;  %v4753_v17 = vpack.c.bf16 %v4321_v10, %v4301_v9  ;;  %v4309_v59 = vld [vmem:[%s5004_s17 + $0x550] sm:$0xff]  ;;  %v4348_v62 = vld [vmem:[%s5004_s17 + $0x688] sm:$0xff]  ;;  %v4350_v3 = vld [vmem:[%s5004_s17 + $0x698] sm:$0xff] }
  0x56   : > { %1681 = vmatprep.mubr.f32.mxu1 %v4965_v0  ;;  %4702 = vmatprep.subr.bf16.mxu0 %v4701_v20  ;;  %v4745_v20 = vpack.c.bf16 %v4360_v13, %v4340_v12  ;;  %v4329_v60 = vld [vmem:[%s5004_s17 + $0x5f0] sm:$0xff]  ;;  %v4368_v63 = vld [vmem:[%s5004_s17 + $0x728] sm:$0x7]  ;;  %v4370_v4 = vld [vmem:[%s5004_s17 + $0x738] sm:$0x7] }
  0x57   : > { %4277 = vmatmul.mubr.msk.f32.vlgmr.msra.gmra.mrb[28].mxu0 %vm253_vm3, %v5035_v28  ;;  %4712 = vmatprep.subr.bf16.mxu1 %v4711_v23  ;;  %v4755_v23 = vpack.c.bf16 %v4362_v16, %v4342_v15  ;;  %v4347_v6 = vld [vmem:[%s5004_s17 + $0x680] sm:$0xff]  ;;  %v4349_v9 = vld [vmem:[%s5004_s17 + $0x690] sm:$0xff]  ;;  %v4312_v12 = vld [vmem:[%s5004_s17 + $0x568] sm:$0xff] }
  0x58   : > { %4281 = vmatmul.mubr.msk.f32.vlgmr.msra.gmra.mrb[28].mxu1 %vm253_vm3, %v5035_v28  ;;  %4704 = vmatpush1.bf16.msra.mxu0 %v4703_v26  ;;  %v4748_v26 = vpack.c.bf16 %v4359_v19, %v4339_v18  ;;  %v4367_v7 = vld [vmem:[%s5004_s17 + $0x720] sm:$0x7]  ;;  %v4369_v10 = vld [vmem:[%s5004_s17 + $0x730] sm:$0x7]  ;;  %v4332_v13 = vld [vmem:[%s5004_s17 + $0x608] sm:$0xff] }
  0x59   : > { %4714 = vmatpush1.bf16.msra.mxu1 %v4713_v30  ;;  %1610 = vmatprep.mubr.f32.mxu0 %v4965_v0  ;;  %v4758_v30 = vpack.c.bf16 %v4361_v22, %v4341_v21  ;;  %v4314_v15 = vld [vmem:[%s5004_s17 + $0x578] sm:$0xff]  ;;  %v4311_v18 = vld [vmem:[%s5004_s17 + $0x560] sm:$0xff]  ;;  %v4313_v21 = vld [vmem:[%s5004_s17 + $0x570] sm:$0xff] }
  0x5a   : > { %1687 = vmatprep.mubr.f32.mxu1 %v4965_v0  ;;  %4707 = vmatprep.subr.msk.bf16.mxu0 %vm5006_vm2, %v4705_v33  ;;  %v4761_v33 = vpack.c.bf16 %v4324_v25, %v4304_v24  ;;  %v4334_v16 = vld [vmem:[%s5004_s17 + $0x618] sm:$0xff]  ;;  %v4331_v19 = vld [vmem:[%s5004_s17 + $0x600] sm:$0xff]  ;;  %v4333_v22 = vld [vmem:[%s5004_s17 + $0x610] sm:$0xff] }
  0x5b   : > { %4278 = vmatmul.mubr.msk.f32.gmra.mrb[30].mxu0 %vm253_vm3, %v5064_v51  ;;  %4717 = vmatprep.subr.msk.bf16.mxu1 %vm5006_vm2, %v4715_v36  ;;  %v4771_v36 = vpack.c.bf16 %v4326_v29, %v4306_v27  ;;  %v4352_v24 = vld [vmem:[%s5004_s17 + $0x6a8] sm:$0xff]  ;;  %v4354_v27 = vld [vmem:[%s5004_s17 + $0x6b8] sm:$0xff] }
  0x5c   : > { %4282 = vmatmul.mubr.msk.f32.gmra.mrb[30].mxu1 %vm253_vm3, %v5064_v51  ;;  %4710 = vmatpush1.bf16.msk.msra.mxu0 %vm5006_vm2, %v4708_v39  ;;  %v4763_v39 = vpack.c.bf16 %v4323_v32, %v4303_v31  ;;  %v4372_v25 = vld [vmem:[%s5004_s17 + $0x748] sm:$0x7]  ;;  %v4374_v29 = vld [vmem:[%s5004_s17 + $0x758] sm:$0x7]  ;;  %v4351_v31 = vld [vmem:[%s5004_s17 + $0x6a0] sm:$0xff] }
  0x5d   : > { %4720 = vmatpush1.bf16.msk.msra.mxu1 %vm5006_vm2, %v4718_v42  ;;  %1758 = vmatprep.mubr.f32.mxu0 %v4965_v0  ;;  %v4773_v42 = vpack.c.bf16 %v4325_v35, %v4305_v34  ;;  %v4371_v32 = vld [vmem:[%s5004_s17 + $0x740] sm:$0x7]  ;;  %v4353_v34 = vld [vmem:[%s5004_s17 + $0x6b0] sm:$0xff] }
  0x5e   : > { %1835 = vmatprep.mubr.f32.mxu1 %v4965_v0  ;;  %4722 = vmatprep.subr.bf16.mxu0 %v4721_v45  ;;  %v4765_v45 = vpack.c.bf16 %v4364_v38, %v4344_v37  ;;  %v4373_v35 = vld [vmem:[%s5004_s17 + $0x750] sm:$0x7]  ;;  %v4316_v37 = vld [vmem:[%s5004_s17 + $0x588] sm:$0xff] }
  0x5f   : > { %4285 = vmatmul.mubr.msk.f32.vlgmr.msra.gmra.mrb[32].mxu0 %vm253_vm3, %v5035_v28  ;;  %4732 = vmatprep.subr.bf16.mxu1 %v4731_v48  ;;  %v4775_v48 = vpack.c.bf16 %v4366_v41, %v4346_v40  ;;  %v4336_v38 = vld [vmem:[%s5004_s17 + $0x628] sm:$0xff]  ;;  %v4318_v40 = vld [vmem:[%s5004_s17 + $0x598] sm:$0xff] }
  0x60   : > { %4289 = vmatmul.mubr.msk.f32.vlgmr.msra.gmra.mrb[32].mxu1 %vm253_vm3, %v5035_v28  ;;  %4724 = vmatpush1.bf16.msra.mxu0 %v4723_v52  ;;  %v4768_v52 = vpack.c.bf16 %v4363_v44, %v4343_v43  ;;  %v4338_v41 = vld [vmem:[%s5004_s17 + $0x638] sm:$0xff]  ;;  %v4315_v43 = vld [vmem:[%s5004_s17 + $0x580] sm:$0xff] }
  0x61   : > { %4734 = vmatpush1.bf16.msra.mxu1 %v4733_v55  ;;  %1764 = vmatprep.mubr.f32.mxu0 %v4965_v0  ;;  %v4778_v55 = vpack.c.bf16 %v4365_v47, %v4345_v46  ;;  %v4335_v44 = vld [vmem:[%s5004_s17 + $0x620] sm:$0xff]  ;;  %v4337_v46 = vld [vmem:[%s5004_s17 + $0x630] sm:$0xff]  ;;  %v4831_v47 = vpack.c.bf16 %v4338_v41, %v4318_v40  ;;  %v4466_v40 = vld [vmem:[%s5004_s17 + $0x8f8] sm:$0xff] }
  0x62   : > { %1841 = vmatprep.mubr.f32.mxu1 %v4965_v0  ;;  %4727 = vmatprep.subr.msk.bf16.mxu0 %vm5006_vm2, %v4725_v58  ;;  %v4781_v58 = vpack.c.bf16 %v4328_v50, %v4308_v49  ;;  %v4376_v49 = vld [vmem:[%s5004_s17 + $0x768] sm:$0x7]  ;;  %v4823_v50 = vpack.c.bf16 %v4335_v44, %v4315_v43  ;;  %v4486_v41 = vld [vmem:[%s5004_s17 + $0x998] sm:$0x7]  ;;  %v4463_v43 = vld [vmem:[%s5004_s17 + $0x8e0] sm:$0xff] }
  0x63   : > { %4286 = vmatmul.mubr.msk.f32.gmra.mrb[34].mxu0 %vm253_vm3, %v5064_v51  ;;  %4737 = vmatprep.subr.msk.bf16.mxu1 %vm5006_vm2, %v4735_v61  ;;  %v4791_v61 = vpack.c.bf16 %v4330_v54, %v4310_v53  ;;  %v4378_v53 = vld [vmem:[%s5004_s17 + $0x778] sm:$0x7]  ;;  %v4483_v44 = vld [vmem:[%s5004_s17 + $0x980] sm:$0x7] }
  0x64   : > { %4290 = vmatmul.mubr.msk.f32.gmra.mrb[34].mxu1 %vm253_vm3, %v5064_v51  ;;  %4730 = vmatpush1.bf16.msk.msra.mxu0 %vm5006_vm2, %v4728_v2  ;;  %v4783_v2 = vpack.c.bf16 %v4327_v57, %v4307_v56  ;;  %v4375_v56 = vld [vmem:[%s5004_s17 + $0x760] sm:$0x7]  ;;  %v4357_v57 = vld [vmem:[%s5004_s17 + $0x6d0] sm:$0xff] }
  0x65   : > { %4740 = vmatpush1.bf16.msk.msra.mxu1 %vm5006_vm2, %v4738_v5  ;;  %1912 = vmatprep.mubr.f32.mxu0 %v4965_v0  ;;  %v4793_v5 = vpack.c.bf16 %v4329_v60, %v4309_v59  ;;  %v5531_v59 = vld [vmem:[%s6330_s1] sm:$0xff] }
  0x66   : > { %1989 = vmatprep.mubr.f32.mxu1 %v4965_v0  ;;  %4742 = vmatprep.subr.bf16.mxu0 %v4741_v8  ;;  %v4785_v8 = vpack.c.bf16 %v4368_v63, %v4348_v62  ;;  %v4440_v62 = vld [vmem:[%s5004_s17 + $0x828] sm:$0xff] }
  0x67   : > { %4293 = vmatmul.mubr.msk.f32.vlgmr.msra.gmra.mrb[36].mxu0 %vm253_vm3, %v5035_v28  ;;  %4752 = vmatprep.subr.bf16.mxu1 %v4751_v11  ;;  %v4795_v11 = vpack.c.bf16 %v4370_v4, %v4350_v3  ;;  %v4442_v3 = vld [vmem:[%s5004_s17 + $0x838] sm:$0xff] }
  0x68   : > { %4297 = vmatmul.mubr.msk.f32.vlgmr.msra.gmra.mrb[36].mxu1 %vm253_vm3, %v5035_v28  ;;  %4744 = vmatpush1.bf16.msra.mxu0 %v4743_v14  ;;  %v4788_v14 = vpack.c.bf16 %v4367_v7, %v4347_v6  ;;  %v4439_v6 = vld [vmem:[%s5004_s17 + $0x820] sm:$0xff] }
  0x69   : > { %4754 = vmatpush1.bf16.msra.mxu1 %v4753_v17  ;;  %1918 = vmatprep.mubr.f32.mxu0 %v4965_v0  ;;  %v4798_v17 = vpack.c.bf16 %v4369_v10, %v4349_v9  ;;  %v4441_v9 = vld [vmem:[%s5004_s17 + $0x830] sm:$0xff]  ;;  %v5552_v10 = vld [vmem:[%s6330_s1 + $0x8] sm:$0xff] }
  0x6a   : > { %1995 = vmatprep.mubr.f32.mxu1 %v4965_v0  ;;  %4747 = vmatprep.subr.msk.bf16.mxu0 %vm5006_vm2, %v4745_v20  ;;  %v4801_v20 = vpack.c.bf16 %v4332_v13, %v4312_v12  ;;  %v4460_v12 = vld [vmem:[%s5004_s17 + $0x8c8] sm:$0xff] }
  0x6b   : > { %4294 = vmatmul.mubr.msk.f32.gmra.mrb[38].mxu0 %vm253_vm3, %v5064_v51  ;;  %4757 = vmatprep.subr.msk.bf16.mxu1 %vm5006_vm2, %v4755_v23  ;;  %v4811_v23 = vpack.c.bf16 %v4334_v16, %v4314_v15  ;;  %v4480_v13 = vld [vmem:[%s5004_s17 + $0x968] sm:$0x7]  ;;  %v4462_v15 = vld [vmem:[%s5004_s17 + $0x8d8] sm:$0xff] }
  0x6c   : > { %4298 = vmatmul.mubr.msk.f32.gmra.mrb[38].mxu1 %vm253_vm3, %v5064_v51  ;;  %4750 = vmatpush1.bf16.msk.msra.mxu0 %vm5006_vm2, %v4748_v26  ;;  %v4803_v26 = vpack.c.bf16 %v4331_v19, %v4311_v18  ;;  %v4482_v16 = vld [vmem:[%s5004_s17 + $0x978] sm:$0x7]  ;;  %v4459_v18 = vld [vmem:[%s5004_s17 + $0x8c0] sm:$0xff] }
  0x6d   : > { %4760 = vmatpush1.bf16.msk.msra.mxu1 %vm5006_vm2, %v4758_v30  ;;  %2247 = vmatprep.mubr.f32.mxu0 %v4965_v0  ;;  %v4813_v30 = vpack.c.bf16 %v4333_v22, %v4313_v21  ;;  %v4479_v19 = vld [vmem:[%s5004_s17 + $0x960] sm:$0x7]  ;;  %v4461_v21 = vld [vmem:[%s5004_s17 + $0x8d0] sm:$0xff] }
  0x6e   : > { %2324 = vmatprep.mubr.f32.mxu1 %v4965_v0  ;;  %4762 = vmatprep.subr.bf16.mxu0 %v4761_v33  ;;  %v4805_v33 = vpack.c.bf16 %v4372_v25, %v4352_v24  ;;  %v4481_v22 = vld [vmem:[%s5004_s17 + $0x970] sm:$0x7]  ;;  %v4424_v24 = vld [vmem:[%s5004_s17 + $0x7a8] sm:$0xff] }
  0x6f   : > { %4381 = vmatmul.mubr.msk.f32.vlgmr.msra.gmra.mrb[40].mxu0 %vm253_vm3, %v5035_v28  ;;  %4772 = vmatprep.subr.bf16.mxu1 %v4771_v36  ;;  %v4815_v36 = vpack.c.bf16 %v4374_v29, %v4354_v27  ;;  %v4444_v25 = vld [vmem:[%s5004_s17 + $0x848] sm:$0xff]  ;;  %v4426_v27 = vld [vmem:[%s5004_s17 + $0x7b8] sm:$0xff] }
  0x70   : > { %4385 = vmatmul.mubr.msk.f32.vlgmr.msra.gmra.mrb[40].mxu1 %vm253_vm3, %v5035_v28  ;;  %4764 = vmatpush1.bf16.msra.mxu0 %v4763_v39  ;;  %v4808_v39 = vpack.c.bf16 %v4371_v32, %v4351_v31  ;;  %v4446_v29 = vld [vmem:[%s5004_s17 + $0x858] sm:$0xff]  ;;  %v4423_v31 = vld [vmem:[%s5004_s17 + $0x7a0] sm:$0xff] }
  0x71   : > { %4774 = vmatpush1.bf16.msra.mxu1 %v4773_v42  ;;  %2253 = vmatprep.mubr.f32.mxu0 %v4965_v0  ;;  %v4818_v42 = vpack.c.bf16 %v4373_v35, %v4353_v34  ;;  %v4443_v32 = vld [vmem:[%s5004_s17 + $0x840] sm:$0xff]  ;;  %v4425_v34 = vld [vmem:[%s5004_s17 + $0x7b0] sm:$0xff] }
  0x72   : > { %2330 = vmatprep.mubr.f32.mxu1 %v4965_v0  ;;  %4767 = vmatprep.subr.msk.bf16.mxu0 %vm5006_vm2, %v4765_v45  ;;  %v4317_v45 = vld [vmem:[%s5004_s17 + $0x590] sm:$0xff] }
  0x73   : > { %4382 = vmatmul.mubr.msk.f32.gmra.mrb[42].mxu0 %vm253_vm3, %v5064_v51  ;;  %4777 = vmatprep.subr.msk.bf16.mxu1 %vm5006_vm2, %v4775_v48  ;;  %v4356_v48 = vld [vmem:[%s5004_s17 + $0x6c8] sm:$0xff]  ;;  %v4833_v54 = vpack.c.bf16 %v4337_v46, %v4317_v45  ;;  %v4445_v35 = vld [vmem:[%s5004_s17 + $0x850] sm:$0xff] }
  0x74   : > { %4386 = vmatmul.mubr.msk.f32.gmra.mrb[42].mxu1 %vm253_vm3, %v5064_v51  ;;  %4770 = vmatpush1.bf16.msk.msra.mxu0 %vm5006_vm2, %v4768_v52  ;;  %v4358_v52 = vld [vmem:[%s5004_s17 + $0x6d8] sm:$0xff]  ;;  %v4465_v45 = vld [vmem:[%s5004_s17 + $0x8f0] sm:$0xff] }
  0x75   : > { %4780 = vmatpush1.bf16.msk.msra.mxu1 %vm5006_vm2, %v4778_v55  ;;  %2401 = vmatprep.mubr.f32.mxu0 %v4965_v0  ;;  %v4355_v55 = vld [vmem:[%s5004_s17 + $0x6c0] sm:$0xff]  ;;  %v4835_v60 = vpack.c.bf16 %v4378_v53, %v4358_v52  ;;  %v4485_v46 = vld [vmem:[%s5004_s17 + $0x990] sm:$0x7]  ;;  %v4430_v52 = vld [vmem:[%s5004_s17 + $0x7d8] sm:$0xff] }
  0x76   : > { %2478 = vmatprep.mubr.f32.mxu1 %v4965_v0  ;;  %4782 = vmatprep.subr.bf16.mxu0 %v4781_v58  ;;  %v4377_v58 = vld [vmem:[%s5004_s17 + $0x770] sm:$0x7]  ;;  %v4828_v63 = vpack.c.bf16 %v4375_v56, %v4355_v55  ;;  %v4450_v53 = vld [vmem:[%s5004_s17 + $0x878] sm:$0xff]  ;;  %v4427_v55 = vld [vmem:[%s5004_s17 + $0x7c0] sm:$0xff] }
  0x77   : > { %4389 = vmatmul.mubr.msk.f32.vlgmr.msra.gmra.mrb[44].mxu0 %vm253_vm3, %v5035_v28  ;;  %4792 = vmatprep.subr.bf16.mxu1 %v4791_v61  ;;  %v4420_v61 = vld [vmem:[%s5004_s17 + $0x788] sm:$0xff]  ;;  %v4838_v4 = vpack.c.bf16 %v4377_v58, %v4357_v57  ;;  %v4447_v56 = vld [vmem:[%s5004_s17 + $0x860] sm:$0xff]  ;;  %v4429_v57 = vld [vmem:[%s5004_s17 + $0x7d0] sm:$0xff] }
  0x78   : > { %4393 = vmatmul.mubr.msk.f32.vlgmr.msra.gmra.mrb[44].mxu1 %vm253_vm3, %v5035_v28  ;;  %4784 = vmatpush1.bf16.msra.mxu0 %v4783_v2  ;;  %v4422_v2 = vld [vmem:[%s5004_s17 + $0x798] sm:$0xff]  ;;  %v4841_v7 = vpack.c.bf16 %v4440_v62, %v4420_v61  ;;  %v4449_v58 = vld [vmem:[%s5004_s17 + $0x870] sm:$0xff]  ;;  %v4468_v61 = vld [vmem:[%s5004_s17 + $0x908] sm:$0xff] }
  0x79   : > { %4794 = vmatpush1.bf16.msra.mxu1 %v4793_v5  ;;  %2407 = vmatprep.mubr.f32.mxu0 %v4965_v0  ;;  %v4419_v5 = vld [vmem:[%s5004_s17 + $0x780] sm:$0xff]  ;;  %v4488_v62 = vld [vmem:[%s5004_s17 + $0x9a8] sm:$0x7] }
  0x7a   : > { %2484 = vmatprep.mubr.f32.mxu1 %v4965_v0  ;;  %4787 = vmatprep.subr.msk.bf16.mxu0 %vm5006_vm2, %v4785_v8  ;;  %v4421_v8 = vld [vmem:[%s5004_s17 + $0x790] sm:$0xff] }
  0x7b   : > { %4390 = vmatmul.mubr.msk.f32.gmra.mrb[46].mxu0 %vm253_vm3, %v5064_v51  ;;  %4797 = vmatprep.subr.msk.bf16.mxu1 %vm5006_vm2, %v4795_v11  ;;  %v4851_v11 = vpack.c.bf16 %v4442_v3, %v4422_v2  ;;  %v4470_v2 = vld [vmem:[%s5004_s17 + $0x918] sm:$0xff] }
  0x7c   : > { %4394 = vmatmul.mubr.msk.f32.gmra.mrb[46].mxu1 %vm253_vm3, %v5064_v51  ;;  %4790 = vmatpush1.bf16.msk.msra.mxu0 %vm5006_vm2, %v4788_v14  ;;  %v4843_v14 = vpack.c.bf16 %v4439_v6, %v4419_v5  ;;  %v4490_v3 = vld [vmem:[%s5004_s17 + $0x9b8] sm:$0x7]  ;;  %v4467_v5 = vld [vmem:[%s5004_s17 + $0x900] sm:$0xff] }
  0x7d   : > { %4800 = vmatpush1.bf16.msk.msra.mxu1 %vm5006_vm2, %v4798_v17  ;;  %2555 = vmatprep.mubr.f32.mxu0 %v4965_v0  ;;  %v4853_v17 = vpack.c.bf16 %v4441_v9, %v4421_v8  ;;  %v4487_v6 = vld [vmem:[%s5004_s17 + $0x9a0] sm:$0x7]  ;;  %v4469_v8 = vld [vmem:[%s5004_s17 + $0x910] sm:$0xff] }
  0x7e   : > { %2632 = vmatprep.mubr.f32.mxu1 %v4965_v0  ;;  %4802 = vmatprep.subr.bf16.mxu0 %v4801_v20  ;;  %v4845_v20 = vpack.c.bf16 %v4480_v13, %v4460_v12  ;;  %v4489_v9 = vld [vmem:[%s5004_s17 + $0x9b0] sm:$0x7]  ;;  %v4432_v12 = vld [vmem:[%s5004_s17 + $0x7e8] sm:$0xff] }
  0x7f   : > { %4397 = vmatmul.mubr.msk.f32.vlgmr.msra.gmra.mrb[48].mxu0 %vm253_vm3, %v5035_v28  ;;  %4812 = vmatprep.subr.bf16.mxu1 %v4811_v23  ;;  %v4855_v23 = vpack.c.bf16 %v4482_v16, %v4462_v15  ;;  %v4452_v13 = vld [vmem:[%s5004_s17 + $0x888] sm:$0xff]  ;;  %v4434_v15 = vld [vmem:[%s5004_s17 + $0x7f8] sm:$0xff] }
  0x80   : > { %4401 = vmatmul.mubr.msk.f32.vlgmr.msra.gmra.mrb[48].mxu1 %vm253_vm3, %v5035_v28  ;;  %4804 = vmatpush1.bf16.msra.mxu0 %v4803_v26  ;;  %v4821_v28 = vpack.c.bf16 %v4336_v38, %v4316_v37  ;;  %v4848_v26 = vpack.c.bf16 %v4479_v19, %v4459_v18  ;;  %v4464_v37 = vld [vmem:[%s5004_s17 + $0x8e8] sm:$0xff]  ;;  %v4454_v16 = vld [vmem:[%s5004_s17 + $0x898] sm:$0xff]  ;;  %v4431_v18 = vld [vmem:[%s5004_s17 + $0x7e0] sm:$0xff] }
  0x81   : > { %4814 = vmatpush1.bf16.msra.mxu1 %v4813_v30  ;;  %2561 = vmatprep.mubr.f32.mxu0 %v4965_v0  ;;  %v4858_v30 = vpack.c.bf16 %v4481_v22, %v4461_v21  ;;  %v4484_v38 = vld [vmem:[%s5004_s17 + $0x988] sm:$0x7]  ;;  %v4451_v19 = vld [vmem:[%s5004_s17 + $0x880] sm:$0xff]  ;;  %v4433_v21 = vld [vmem:[%s5004_s17 + $0x7f0] sm:$0xff] }
  0x82   : > { %2638 = vmatprep.mubr.f32.mxu1 %v4965_v0  ;;  %4807 = vmatprep.subr.msk.bf16.mxu0 %vm5006_vm2, %v4805_v33  ;;  %v4861_v33 = vpack.c.bf16 %v4444_v25, %v4424_v24  ;;  %v4453_v22 = vld [vmem:[%s5004_s17 + $0x890] sm:$0xff]  ;;  %v4472_v24 = vld [vmem:[%s5004_s17 + $0x928] sm:$0xff] }
  0x83   : > { %4398 = vmatmul.mubr.msk.f32.gmra.mrb[50].mxu0 %vm253_vm3, %v5064_v51  ;;  %4817 = vmatprep.subr.msk.bf16.mxu1 %vm5006_vm2, %v4815_v36  ;;  %v4871_v36 = vpack.c.bf16 %v4446_v29, %v4426_v27  ;;  %v4492_v25 = vld [vmem:[%s5004_s17 + $0x9c8] sm:$0x7]  ;;  %v4474_v27 = vld [vmem:[%s5004_s17 + $0x938] sm:$0xff] }
  0x84   : > { %4402 = vmatmul.mubr.msk.f32.gmra.mrb[50].mxu1 %vm253_vm3, %v5064_v51  ;;  %4810 = vmatpush1.bf16.msk.msra.mxu0 %vm5006_vm2, %v4808_v39  ;;  %v4825_v51 = vpack.c.bf16 %v4376_v49, %v4356_v48  ;;  %v4863_v39 = vpack.c.bf16 %v4443_v32, %v4423_v31  ;;  %v4428_v48 = vld [vmem:[%s5004_s17 + $0x7c8] sm:$0xff]  ;;  %v4494_v29 = vld [vmem:[%s5004_s17 + $0x9d8] sm:$0x7]  ;;  %v4471_v31 = vld [vmem:[%s5004_s17 + $0x920] sm:$0xff] }
  0x85   : > { %4820 = vmatpush1.bf16.msk.msra.mxu1 %vm5006_vm2, %v4818_v42  ;;  %2709 = vmatprep.mubr.f32.mxu0 %v4965_v0  ;;  %v4873_v42 = vpack.c.bf16 %v4445_v35, %v4425_v34  ;;  %v4448_v49 = vld [vmem:[%s5004_s17 + $0x868] sm:$0xff]  ;;  %v4491_v32 = vld [vmem:[%s5004_s17 + $0x9c0] sm:$0x7]  ;;  %v4473_v34 = vld [vmem:[%s5004_s17 + $0x930] sm:$0xff] }
  0x86   : > { %2786 = vmatprep.mubr.f32.mxu1 %v4965_v0  ;;  %4822 = vmatprep.subr.bf16.mxu0 %v4821_v28  ;;  %v4865_v28 = vpack.c.bf16 %v4484_v38, %v4464_v37  ;;  %v4493_v35 = vld [vmem:[%s5004_s17 + $0x9d0] sm:$0x7]  ;;  %v4436_v37 = vld [vmem:[%s5004_s17 + $0x808] sm:$0xff] }
  0x87   : > { %4405 = vmatmul.mubr.msk.f32.vlgmr.msra.gmra.mrb[52].mxu0 %vm253_vm3, %v5531_v59  ;;  %4832 = vmatprep.subr.bf16.mxu1 %v4831_v47  ;;  %v4875_v47 = vpack.c.bf16 %v4486_v41, %v4466_v40  ;;  %v4456_v38 = vld [vmem:[%s5004_s17 + $0x8a8] sm:$0xff]  ;;  %v4438_v40 = vld [vmem:[%s5004_s17 + $0x818] sm:$0xff] }
  0x88   : > { %4409 = vmatmul.mubr.msk.f32.vlgmr.msra.gmra.mrb[52].mxu1 %vm253_vm3, %v5531_v59  ;;  %4824 = vmatpush1.bf16.msra.mxu0 %v4823_v50  ;;  %v4868_v50 = vpack.c.bf16 %v4483_v44, %v4463_v43  ;;  %v4458_v41 = vld [vmem:[%s5004_s17 + $0x8b8] sm:$0xff]  ;;  %v4435_v43 = vld [vmem:[%s5004_s17 + $0x800] sm:$0xff] }
  0x89   : > { %4834 = vmatpush1.bf16.msra.mxu1 %v4833_v54  ;;  %2715 = vmatprep.mubr.f32.mxu0 %v4965_v0  ;;  %v4878_v54 = vpack.c.bf16 %v4485_v46, %v4465_v45  ;;  %v4455_v44 = vld [vmem:[%s5004_s17 + $0x8a0] sm:$0xff]  ;;  %v4437_v45 = vld [vmem:[%s5004_s17 + $0x810] sm:$0xff] }
  0x8a   : > { %2792 = vmatprep.mubr.f32.mxu1 %v4965_v0  ;;  %4827 = vmatprep.subr.msk.bf16.mxu0 %vm5006_vm2, %v4825_v51  ;;  %v4881_v51 = vpack.c.bf16 %v4448_v49, %v4428_v48  ;;  %v4457_v46 = vld [vmem:[%s5004_s17 + $0x8b0] sm:$0xff]  ;;  %v4476_v48 = vld [vmem:[%s5004_s17 + $0x948] sm:$0xff] }
  0x8b   : > { %4406 = vmatmul.mubr.msk.f32.gmra.mrb[54].mxu0 %vm253_vm3, %v5552_v10  ;;  %4837 = vmatprep.subr.msk.bf16.mxu1 %vm5006_vm2, %v4835_v60  ;;  %v4891_v60 = vpack.c.bf16 %v4450_v53, %v4430_v52  ;;  %v4496_v49 = vld [vmem:[%s5004_s17 + $0x9e8] sm:$0x7]  ;;  %v4478_v52 = vld [vmem:[%s5004_s17 + $0x958] sm:$0xff] }
  0x8c   : > { %4410 = vmatmul.mubr.msk.f32.gmra.mrb[54].mxu1 %vm253_vm3, %v5552_v10  ;;  %4830 = vmatpush1.bf16.msk.msra.mxu0 %vm5006_vm2, %v4828_v63  ;;  %v4883_v63 = vpack.c.bf16 %v4447_v56, %v4427_v55  ;;  %v4498_v53 = vld [vmem:[%s5004_s17 + $0x9f8] sm:$0x7]  ;;  %v4475_v55 = vld [vmem:[%s5004_s17 + $0x940] sm:$0xff] }
  0x8d   : > { %4840 = vmatpush1.bf16.msk.msra.mxu1 %vm5006_vm2, %v4838_v4  ;;  %2863 = vmatprep.mubr.f32.mxu0 %v4965_v0  ;;  %v4893_v4 = vpack.c.bf16 %v4449_v58, %v4429_v57  ;;  %v4495_v56 = vld [vmem:[%s5004_s17 + $0x9e0] sm:$0x7]  ;;  %v4477_v57 = vld [vmem:[%s5004_s17 + $0x950] sm:$0xff] }
  0x8e   : > { %2940 = vmatprep.mubr.f32.mxu1 %v4965_v0  ;;  %4842 = vmatprep.subr.bf16.mxu0 %v4841_v7  ;;  %v4885_v7 = vpack.c.bf16 %v4488_v62, %v4468_v61  ;;  %v4497_v58 = vld [vmem:[%s5004_s17 + $0x9f0] sm:$0x7]  ;;  %v4928_v61 = vpack.c.bf16 %v4495_v56, %v4475_v55 }
  0x8f   : > { %4413 = vmatmul.mubr.msk.f32.vlgmr.msra.gmra.mrb[56].mxu0 %vm253_vm3, %v5531_v59  ;;  %4852 = vmatprep.subr.bf16.mxu1 %v4851_v11  ;;  %v4895_v11 = vpack.c.bf16 %v4490_v3, %v4470_v2  ;;  %v4938_v62 = vpack.c.bf16 %v4497_v58, %v4477_v57  ;;  %v4967_v2 = vmov 0  }
  0x90   : > { %4417 = vmatmul.mubr.msk.f32.vlgmr.msra.gmra.mrb[56].mxu1 %vm253_vm3, %v5531_v59  ;;  %4844 = vmatpush1.bf16.msra.mxu0 %v4843_v14  ;;  %v4888_v14 = vpack.c.bf16 %v4487_v6, %v4467_v5 }
  0x91   : > { %4854 = vmatpush1.bf16.msra.mxu1 %v4853_v17  ;;  %2869 = vmatprep.mubr.f32.mxu0 %v4965_v0  ;;  %v4898_v17 = vpack.c.bf16 %v4489_v9, %v4469_v8 }
  0x92   : > { %2946 = vmatprep.mubr.f32.mxu1 %v4965_v0  ;;  %4847 = vmatprep.subr.msk.bf16.mxu0 %vm5006_vm2, %v4845_v20  ;;  %v4901_v20 = vpack.c.bf16 %v4452_v13, %v4432_v12 }
  0x93   : > { %4414 = vmatmul.mubr.msk.f32.gmra.mrb[58].mxu0 %vm253_vm3, %v5552_v10  ;;  %4857 = vmatprep.subr.msk.bf16.mxu1 %vm5006_vm2, %v4855_v23  ;;  %v4911_v23 = vpack.c.bf16 %v4454_v16, %v4434_v15 }
  0x94   : > { %4418 = vmatmul.mubr.msk.f32.gmra.mrb[58].mxu1 %vm253_vm3, %v5552_v10  ;;  %4850 = vmatpush1.bf16.msk.msra.mxu0 %vm5006_vm2, %v4848_v26  ;;  %v4903_v26 = vpack.c.bf16 %v4451_v19, %v4431_v18 }
  0x95   : > { %4860 = vmatpush1.bf16.msk.msra.mxu1 %vm5006_vm2, %v4858_v30  ;;  %3198 = vmatprep.mubr.f32.mxu0 %v4965_v0  ;;  %v4913_v30 = vpack.c.bf16 %v4453_v22, %v4433_v21 }
  0x96   : > { %3275 = vmatprep.mubr.f32.mxu1 %v4965_v0  ;;  %4862 = vmatprep.subr.bf16.mxu0 %v4861_v33  ;;  %v4905_v33 = vpack.c.bf16 %v4492_v25, %v4472_v24 }
  0x97   : > { %4501 = vmatmul.mubr.msk.f32.vlgmr.msra.gmra.mrb[60].mxu0 %vm253_vm3, %v5531_v59  ;;  %4872 = vmatprep.subr.bf16.mxu1 %v4871_v36  ;;  %v4915_v36 = vpack.c.bf16 %v4494_v29, %v4474_v27 }
  0x98   : > { %4505 = vmatmul.mubr.msk.f32.vlgmr.msra.gmra.mrb[60].mxu1 %vm253_vm3, %v5531_v59  ;;  %4864 = vmatpush1.bf16.msra.mxu0 %v4863_v39  ;;  %v4908_v39 = vpack.c.bf16 %v4491_v32, %v4471_v31 }
  0x99   : > { %4874 = vmatpush1.bf16.msra.mxu1 %v4873_v42  ;;  %3204 = vmatprep.mubr.f32.mxu0 %v4965_v0  ;;  %v4918_v42 = vpack.c.bf16 %v4493_v35, %v4473_v34 }
  0x9a   : > { %3281 = vmatprep.mubr.f32.mxu1 %v4965_v0  ;;  %4867 = vmatprep.subr.msk.bf16.mxu0 %vm5006_vm2, %v4865_v28  ;;  %v4921_v28 = vpack.c.bf16 %v4456_v38, %v4436_v37 }
  0x9b   : > { %4502 = vmatmul.mubr.msk.f32.gmra.mrb[62].mxu0 %vm253_vm3, %v5552_v10  ;;  %4877 = vmatprep.subr.msk.bf16.mxu1 %vm5006_vm2, %v4875_v47  ;;  %v4931_v47 = vpack.c.bf16 %v4458_v41, %v4438_v40 }
  0x9c   : > { %4506 = vmatmul.mubr.msk.f32.gmra.mrb[62].mxu1 %vm253_vm3, %v5552_v10  ;;  %4870 = vmatpush1.bf16.msk.msra.mxu0 %vm5006_vm2, %v4868_v50  ;;  %v4923_v50 = vpack.c.bf16 %v4455_v44, %v4435_v43 }
  0x9d   : > { %4880 = vmatpush1.bf16.msk.msra.mxu1 %vm5006_vm2, %v4878_v54  ;;  %3352 = vmatprep.mubr.f32.mxu0 %v4965_v0  ;;  %v4933_v54 = vpack.c.bf16 %v4457_v46, %v4437_v45 }
  0x9e   : > { %3429 = vmatprep.mubr.f32.mxu1 %v4965_v0  ;;  %4882 = vmatprep.subr.bf16.mxu0 %v4881_v51  ;;  %v4925_v51 = vpack.c.bf16 %v4496_v49, %v4476_v48 }
  0x9f   : > { %4509 = vmatmul.mubr.msk.f32.vlgmr.msra.gmra.mrb[64].mxu0 %vm253_vm3, %v5531_v59  ;;  %4892 = vmatprep.subr.bf16.mxu1 %v4891_v60  ;;  %v4935_v60 = vpack.c.bf16 %v4498_v53, %v4478_v52 }
  0xa0   : > { %4513 = vmatmul.mubr.msk.f32.vlgmr.msra.gmra.mrb[64].mxu1 %vm253_vm3, %v5531_v59  ;;  %4884 = vmatpush1.bf16.msra.mxu0 %v4883_v63  ;;  %v3944_v63 = vld [vmem:[%s6331_s2] sm:$0xff] }
  0xa1   : > { %4894 = vmatpush1.bf16.msra.mxu1 %v4893_v4  ;;  %3358 = vmatprep.mubr.f32.mxu0 %v4965_v0 }
  0xa2   : > { %3435 = vmatprep.mubr.f32.mxu1 %v4965_v0  ;;  %4887 = vmatprep.subr.msk.bf16.mxu0 %vm5006_vm2, %v4885_v7 }
  0xa3   : > { %4510 = vmatmul.mubr.msk.f32.gmra.mrb[66].mxu0 %vm253_vm3, %v5552_v10  ;;  %4897 = vmatprep.subr.msk.bf16.mxu1 %vm5006_vm2, %v4895_v11 }
  0xa4   : > { %4514 = vmatmul.mubr.msk.f32.gmra.mrb[66].mxu1 %vm253_vm3, %v5552_v10  ;;  %4890 = vmatpush1.bf16.msk.msra.mxu0 %vm5006_vm2, %v4888_v14 }
  0xa5   : > { %4900 = vmatpush1.bf16.msk.msra.mxu1 %vm5006_vm2, %v4898_v17  ;;  %3506 = vmatprep.mubr.f32.mxu0 %v4965_v0 }
  0xa6   : > { %3583 = vmatprep.mubr.f32.mxu1 %v4965_v0  ;;  %4902 = vmatprep.subr.bf16.mxu0 %v4901_v20 }
  0xa7   : > { %4517 = vmatmul.mubr.msk.f32.vlgmr.msra.gmra.mrb[68].mxu0 %vm253_vm3, %v5531_v59  ;;  %4912 = vmatprep.subr.bf16.mxu1 %v4911_v23 }
  0xa8   : > { %4521 = vmatmul.mubr.msk.f32.vlgmr.msra.gmra.mrb[68].mxu1 %vm253_vm3, %v5531_v59  ;;  %4904 = vmatpush1.bf16.msra.mxu0 %v4903_v26 }
  0xa9   : > { %4914 = vmatpush1.bf16.msra.mxu1 %v4913_v30  ;;  %3512 = vmatprep.mubr.f32.mxu0 %v4965_v0 }
  0xaa   : > { %3589 = vmatprep.mubr.f32.mxu1 %v4965_v0  ;;  %4907 = vmatprep.subr.msk.bf16.mxu0 %vm5006_vm2, %v4905_v33 }
  0xab   : > { %4518 = vmatmul.mubr.msk.f32.gmra.mrb[70].mxu0 %vm253_vm3, %v5552_v10  ;;  %4917 = vmatprep.subr.msk.bf16.mxu1 %vm5006_vm2, %v4915_v36 }
  0xac   : > { %4522 = vmatmul.mubr.msk.f32.gmra.mrb[70].mxu1 %vm253_vm3, %v5552_v10  ;;  %4910 = vmatpush1.bf16.msk.msra.mxu0 %vm5006_vm2, %v4908_v39 }
  0xad   : > { %4920 = vmatpush1.bf16.msk.msra.mxu1 %vm5006_vm2, %v4918_v42  ;;  %3660 = vmatprep.mubr.f32.mxu0 %v4965_v0 }
  0xae   : > { %3737 = vmatprep.mubr.f32.mxu1 %v4965_v0  ;;  %4922 = vmatprep.subr.bf16.mxu0 %v4921_v28 }
  0xaf   : > { %4525 = vmatmul.mubr.msk.f32.vlgmr.msra.gmra.mrb[72].mxu0 %vm253_vm3, %v5531_v59  ;;  %4932 = vmatprep.subr.bf16.mxu1 %v4931_v47 }
  0xb0   : > { %4529 = vmatmul.mubr.msk.f32.vlgmr.msra.gmra.mrb[72].mxu1 %vm253_vm3, %v5531_v59  ;;  %4924 = vmatpush1.bf16.msra.mxu0 %v4923_v50 }
  0xb1   : > { %4934 = vmatpush1.bf16.msra.mxu1 %v4933_v54  ;;  %3666 = vmatprep.mubr.f32.mxu0 %v4965_v0 }
  0xb2   : > { %3743 = vmatprep.mubr.f32.mxu1 %v4965_v0  ;;  %4927 = vmatprep.subr.msk.bf16.mxu0 %vm5006_vm2, %v4925_v51 }
  0xb3   : > { %4526 = vmatmul.mubr.msk.f32.gmra.mrb[74].mxu0 %vm253_vm3, %v5552_v10  ;;  %4937 = vmatprep.subr.msk.bf16.mxu1 %vm5006_vm2, %v4935_v60 }
  0xb4   : > { %4530 = vmatmul.mubr.msk.f32.gmra.mrb[74].mxu1 %vm253_vm3, %v5552_v10  ;;  %4930 = vmatpush1.bf16.msk.msra.mxu0 %vm5006_vm2, %v4928_v61 }
  0xb5   : > { %4940 = vmatpush1.bf16.msk.msra.mxu1 %vm5006_vm2, %v4938_v62  ;;  %3814 = vmatprep.mubr.f32.mxu0 %v4965_v0 }
  0xb6   : > { %3891 = vmatprep.mubr.f32.mxu1 %v4965_v0  ;;  %4954 = vset.pattern.permute.xlu0 %v4967_v2 }
  0xb7   : > { %4533 = vmatmul.mubr.msk.f32.vlgmr.msra.gmra.mrb[76].mxu0 %vm253_vm3, %v5531_v59  ;;  %3948 = vperm.xlu0 %4954, %v3944_v63  }
  0xb8   : > { %4537 = vmatmul.mubr.msk.f32.vlgmr.msra.gmra.mrb[76].mxu1 %vm253_vm3, %v5531_v59  ;;  %3820 = vmatprep.mubr.f32.mxu0 %v4965_v0 }
  0xb9   : > { %3897 = vmatprep.mubr.f32.mxu1 %v4965_v0 }
  0xbb   : > { %4534 = vmatmul.mubr.msk.f32.gmra.mrb[78].mxu0 %vm253_vm3, %v5552_v10  ;;  %3953 = vperm.xlu0 %4954, %v3945_v1  }
  0xbc   : > { %4538 = vmatmul.mubr.msk.f32.gmra.mrb[78].mxu1 %vm253_vm3, %v5552_v10 }
  0xf2   : > { %v5754_v3 = vpop.f32.mrb[0].mxu0 }
  0xf3   : > { %v5756_v4 = vpop.f32.mrb[0].mxu1  ;;  %v5758_v59 = vpop.f32.mrb[1].mxu0 }
  0xf4   : > { %v5760_v5 = vpop.f32.mrb[1].mxu1 }
  0xf6   : > { %v5762_v6 = vpop.f32.mrb[2].mxu0 }
  0xf7   : > { %v5764_v7 = vpop.f32.mrb[2].mxu1  ;;  %v5766_v0 = vpop.f32.mrb[3].mxu0 }
  0xf8   : > { %v5768_v8 = vpop.f32.mrb[3].mxu1 }
  0xfa   : > { %v5770_v9 = vpop.f32.mrb[4].mxu0 }
  0xfb   : > { %v5772_v11 = vpop.f32.mrb[4].mxu1  ;;  %v5774_v10 = vpop.f32.mrb[5].mxu0 }
  0xfc   : > { %v5776_v12 = vpop.f32.mrb[5].mxu1 }
  0xfe   : > { %v5778_v13 = vpop.f32.mrb[6].mxu0 }
  0xff   : > { %v5780_v14 = vpop.f32.mrb[6].mxu1  ;;  %v5782_v15 = vpop.f32.mrb[7].mxu0 }
 0x100   : > { %v5784_v16 = vpop.f32.mrb[7].mxu1 }
 0x102   : > { %v5786_v17 = vpop.f32.mrb[8].mxu0 }
 0x103   : > { %6363 = vst [vmem:[#allocation2_spill] sm:$0xff] %v5786_v17  ;;  %v5788_v18 = vpop.f32.mrb[8].mxu1  ;;  %v5790_v19 = vpop.f32.mrb[9].mxu0 }
 0x104   : > { %v5792_v20 = vpop.f32.mrb[9].mxu1 }
 0x106   : > { %v5794_v21 = vpop.f32.mrb[10].mxu0 }
 0x107   : > { %6364 = vst [vmem:[#allocation3_spill] sm:$0xff] %v5794_v21  ;;  %v5796_v22 = vpop.f32.mrb[10].mxu1  ;;  %v5798_v23 = vpop.f32.mrb[11].mxu0 }
 0x108   : > { %v5800_v24 = vpop.f32.mrb[11].mxu1 }
 0x10a   : > { %v5802_v25 = vpop.f32.mrb[12].mxu0 }
 0x10b   : > { %6365 = vst [vmem:[#allocation4_spill] sm:$0xff] %v5802_v25  ;;  %v5804_v26 = vpop.f32.mrb[12].mxu1  ;;  %v5806_v27 = vpop.f32.mrb[13].mxu0 }
 0x10c   : > { %v5808_v29 = vpop.f32.mrb[13].mxu1 }
 0x10e   : > { %v5810_v30 = vpop.f32.mrb[14].mxu0 }
 0x10f   : > { %6366 = vst [vmem:[#allocation5_spill] sm:$0xff] %v5810_v30  ;;  %v5812_v31 = vpop.f32.mrb[14].mxu1  ;;  %v5814_v32 = vpop.f32.mrb[15].mxu0 }
 0x110   : > { %v5816_v33 = vpop.f32.mrb[15].mxu1 }
 0x112   : > { %v5818_v34 = vpop.f32.mrb[16].mxu0 }
 0x113   : > { %6367 = vst [vmem:[#allocation6_spill] sm:$0xff] %v5818_v34  ;;  %v5820_v35 = vpop.f32.mrb[16].mxu1  ;;  %v5822_v36 = vpop.f32.mrb[17].mxu0 }
 0x114   : > { %6368 = vst [vmem:[#allocation7_spill] sm:$0xff] %v5822_v36  ;;  %v5824_v37 = vpop.f32.mrb[17].mxu1 }
 0x115   : > { %6369 = vst [vmem:[#allocation8_spill] sm:$0xff] %v5824_v37 }
 0x116   : > { %v5826_v38 = vpop.f32.mrb[18].mxu0 }
 0x117   : > { %6370 = vst [vmem:[#allocation9_spill] sm:$0xff] %v5826_v38  ;;  %v5828_v39 = vpop.f32.mrb[18].mxu1  ;;  %v5830_v40 = vpop.f32.mrb[19].mxu0 }
 0x118   : > { %6371 = vst [vmem:[#allocation10_spill] sm:$0xff] %v5830_v40  ;;  %v5832_v41 = vpop.f32.mrb[19].mxu1 }
 0x11a   : > { %v5834_v42 = vpop.f32.mrb[20].mxu0 }
 0x11b   : > { %v5838_v44 = vpop.f32.mrb[20].mxu1  ;;  %v5840_v28 = vpop.f32.mrb[21].mxu0  ;;  %v6391_v37 = vmax.f32 %v5754_v3, %v5834_v42 }
 0x11c   : > { %v5846_v47 = vpop.f32.mrb[21].mxu1  ;;  %v6392_v36 = vmax.f32 %v5756_v4, %v5838_v44  ;;  %v6393_v63 = vmax.f32 %v5758_v59, %v5840_v28 }
 0x11d   : > { %v6394_v1 = vmax.f32 %v5760_v5, %v5846_v47 }
 0x11e   : > { %v5850_v49 = vpop.f32.mrb[22].mxu0 }
 0x11f   : > { %v5854_v52 = vpop.f32.mrb[22].mxu1  ;;  %v5856_v53 = vpop.f32.mrb[23].mxu0 }
 0x120   : > { %v5862_v56 = vpop.f32.mrb[23].mxu1 }
 0x122   : > { %v5866_v57 = vpop.f32.mrb[24].mxu0 }
 0x123   : > { %v5870_v60 = vpop.f32.mrb[24].mxu1  ;;  %v5872_v61 = vpop.f32.mrb[25].mxu0  ;;  %v6399_v28 = vmax.f32 %v5770_v9, %v5866_v57 }
 0x124   : > { %v5878_v2 = vpop.f32.mrb[25].mxu1 }
 0x126   : > { %v5882_v51 = vpop.f32.mrb[26].mxu0 }
 0x127   : > { %v5886_v55 = vpop.f32.mrb[26].mxu1  ;;  %v5888_v54 = vpop.f32.mrb[27].mxu0  ;;  %v6403_v57 = vmax.f32 %v5778_v13, %v5882_v51  ;;  %v6408_v51 = vld [vmem:[#allocation2_spill] sm:$0xff] }
 0x128   : > { %v5894_v50 = vpop.f32.mrb[27].mxu1 }
 0x129   : > { %6372 = vst [vmem:[#allocation11_spill] sm:$0xff] %v5894_v50 }
 0x12a   : > { %v5898_v48 = vpop.f32.mrb[28].mxu0 }
 0x12b   : > { %6373 = vst [vmem:[#allocation12_spill] sm:$0xff] %v5898_v48  ;;  %v5902_v46 = vpop.f32.mrb[28].mxu1  ;;  %v5904_v45 = vpop.f32.mrb[29].mxu0 }
 0x12c   : > { %6374 = vst [vmem:[#allocation13_spill] sm:$0xff] %v5904_v45  ;;  %v5910_v43 = vpop.f32.mrb[29].mxu1 }
 0x12d   : > { %6375 = vst [vmem:[#allocation14_spill] sm:$0xff] %v5910_v43 }
 0x12e   : > { %v5914_v50 = vpop.f32.mrb[30].mxu0 }
 0x12f   : > { %6376 = vst [vmem:[#allocation15_spill] sm:$0xff] %v5914_v50  ;;  %v5918_v48 = vpop.f32.mrb[30].mxu1  ;;  %v5920_v17 = vpop.f32.mrb[31].mxu0 }
 0x130   : > { %6377 = vst [vmem:[#allocation16_spill] sm:$0xff] %v5920_v17  ;;  %v5926_v45 = vpop.f32.mrb[31].mxu1 }
 0x131   : > { %6378 = vst [vmem:[#allocation17_spill] sm:$0xff] %v5926_v45 }
 0x132   : > { %v5930_v43 = vpop.f32.mrb[32].mxu0 }
 0x133   : > { %6379 = vst [vmem:[#allocation18_spill] sm:$0xff] %v5930_v43  ;;  %v5934_v50 = vpop.f32.mrb[32].mxu1  ;;  %v5936_v21 = vpop.f32.mrb[33].mxu0 }
 0x134   : > { %6380 = vst [vmem:[#allocation19_spill] sm:$0xff] %v5936_v21  ;;  %v5942_v17 = vpop.f32.mrb[33].mxu1 }
 0x135   : > { %6381 = vst [vmem:[#allocation20_spill] sm:$0xff] %v5942_v17 }
 0x136   : > { %v5946_v45 = vpop.f32.mrb[34].mxu0 }
 0x137   : > { %6382 = vst [vmem:[#allocation21_spill] sm:$0xff] %v5946_v45  ;;  %v5950_v43 = vpop.f32.mrb[34].mxu1  ;;  %v5952_v25 = vpop.f32.mrb[35].mxu0 }
 0x138   : > { %6383 = vst [vmem:[#allocation22_spill] sm:$0xff] %v5952_v25  ;;  %v5958_v21 = vpop.f32.mrb[35].mxu1 }
 0x139   : > { %6384 = vst [vmem:[#allocation23_spill] sm:$0xff] %v5958_v21 }
 0x13a   : > { %v5962_v17 = vpop.f32.mrb[36].mxu0 }
 0x13b   : > { %6385 = vst [vmem:[#allocation24_spill] sm:$0xff] %v5962_v17  ;;  %v5966_v45 = vpop.f32.mrb[36].mxu1  ;;  %v5968_v30 = vpop.f32.mrb[37].mxu0 }
 0x13c   : > { %6386 = vst [vmem:[#allocation25_spill] sm:$0xff] %v5968_v30  ;;  %v5974_v25 = vpop.f32.mrb[37].mxu1 }
 0x13d   : > { %6387 = vst [vmem:[#allocation26_spill] sm:$0xff] %v5974_v25 }
 0x13e   : > { %v5978_v21 = vpop.f32.mrb[38].mxu0 }
 0x13f   : > { %6388 = vst [vmem:[#allocation27_spill] sm:$0xff] %v5978_v21  ;;  %v5982_v17 = vpop.f32.mrb[38].mxu1  ;;  %v5984_v34 = vpop.f32.mrb[39].mxu0 }
 0x140   : > { %6389 = vst [vmem:[#allocation28_spill] sm:$0xff] %v5984_v34  ;;  %v5990_v30 = vpop.f32.mrb[39].mxu1 }
 0x141   : > { %6390 = vst [vmem:[#allocation29_spill] sm:$0xff] %v5990_v30 }
 0x142   : > { %v2249_v25 = vpop.f32.mrb[40].mxu0 }
 0x143   : > { %v5997_v58 = vmax.f32 %v6391_v37, %v2249_v25  ;;  %v2326_v21 = vpop.f32.mrb[40].mxu1  ;;  %v2251_v38 = vpop.f32.mrb[41].mxu0  ;;  %v6395_v25 = vmax.f32 %v5762_v6, %v5850_v49 }
 0x144   : > { %v6002_v62 = vmax.f32 %v6392_v36, %v2326_v21  ;;  %v6007_v34 = vmax.f32 %v6393_v63, %v2251_v38  ;;  %v2328_v40 = vpop.f32.mrb[41].mxu1  ;;  %v6396_v36 = vmax.f32 %v5764_v7, %v5854_v52  ;;  %v6397_v38 = vmax.f32 %v5766_v0, %v5856_v53 }
 0x145   : > { %v6012_v30 = vmax.f32 %v6394_v1, %v2328_v40  ;;  %v6398_v40 = vmax.f32 %v5768_v8, %v5862_v56  ;;  %v6400_v52 = vmax.f32 %v5772_v11, %v5870_v60  ;;  %v6401_v53 = vmax.f32 %v5774_v10, %v5872_v61 }
 0x146   : > { %v2255_v3 = vpop.f32.mrb[42].mxu0  ;;  %v6402_v56 = vmax.f32 %v5776_v12, %v5878_v2  ;;  %v6405_v61 = vmax.f32 %v5782_v15, %v5888_v54  ;;  %v6406_v2 = vld [vmem:[#allocation11_spill] sm:$0xff]  ;;  %v6412_v54 = vld [vmem:[#allocation13_spill] sm:$0xff] }
 0x147   : > { %v6017_v37 = vmax.f32 %v6395_v25, %v2255_v3  ;;  %v2332_v4 = vpop.f32.mrb[42].mxu1  ;;  %v2257_v21 = vpop.f32.mrb[43].mxu0  ;;  %v6404_v25 = vmax.f32 %v5780_v14, %v5886_v55 }
 0x148   : > { %v6022_v59 = vmax.f32 %v6396_v36, %v2332_v4  ;;  %v6027_v42 = vmax.f32 %v6397_v38, %v2257_v21  ;;  %v2334_v5 = vpop.f32.mrb[43].mxu1  ;;  %v6407_v21 = vmax.f32 %v5784_v16, %v6406_v2  ;;  %v6409_v38 = vld [vmem:[#allocation12_spill] sm:$0xff]  ;;  %v6422_v2 = vld [vmem:[#allocation17_spill] sm:$0xff] }
 0x149   : > { %v6032_v44 = vmax.f32 %v6398_v40, %v2334_v5  ;;  %v6410_v5 = vmax.f32 %v6408_v51, %v6409_v38  ;;  %v6424_v38 = vld [vmem:[#allocation4_spill] sm:$0xff] }
 0x14a   : > { %v2403_v6 = vpop.f32.mrb[44].mxu0 }
 0x14b   : > { %v6037_v47 = vmax.f32 %v6399_v28, %v2403_v6  ;;  %v2480_v7 = vpop.f32.mrb[44].mxu1  ;;  %v2405_v49 = vpop.f32.mrb[45].mxu0  ;;  %v6411_v6 = vmax.f32 %v5788_v18, %v5902_v46  ;;  %v6413_v28 = vmax.f32 %v5790_v19, %v6412_v54  ;;  %v6428_v54 = vld [vmem:[#allocation19_spill] sm:$0xff] }
 0x14c   : > { %v6042_v0 = vmax.f32 %v6400_v52, %v2480_v7  ;;  %v6047_v63 = vmax.f32 %v6401_v53, %v2405_v49  ;;  %v2482_v8 = vpop.f32.mrb[45].mxu1  ;;  %v6414_v49 = vld [vmem:[#allocation14_spill] sm:$0xff] }
 0x14d   : > { %v6052_v1 = vmax.f32 %v6402_v56, %v2482_v8  ;;  %v6415_v52 = vmax.f32 %v5792_v20, %v6414_v49  ;;  %v6416_v56 = vld [vmem:[#allocation3_spill] sm:$0xff]  ;;  %v6430_v49 = vld [vmem:[#allocation20_spill] sm:$0xff] }
 0x14e   : > { %v2409_v9 = vpop.f32.mrb[46].mxu0 }
 0x14f   : > { %v6057_v3 = vmax.f32 %v6403_v57, %v2409_v9  ;;  %v2486_v11 = vpop.f32.mrb[46].mxu1  ;;  %v2411_v60 = vpop.f32.mrb[47].mxu0  ;;  %v6417_v9 = vld [vmem:[#allocation15_spill] sm:$0xff] }
 0x150   : > { %v6062_v10 = vmax.f32 %v6404_v25, %v2486_v11  ;;  %v6067_v4 = vmax.f32 %v6405_v61, %v2411_v60  ;;  %v2488_v12 = vpop.f32.mrb[47].mxu1  ;;  %v6418_v57 = vmax.f32 %v6416_v56, %v6417_v9  ;;  %v6419_v60 = vmax.f32 %v5796_v22, %v5918_v48  ;;  %v6420_v25 = vld [vmem:[#allocation16_spill] sm:$0xff]  ;;  %v6432_v9 = vld [vmem:[#allocation5_spill] sm:$0xff] }
 0x151   : > { %v6072_v36 = vmax.f32 %v6407_v21, %v2488_v12  ;;  %v6421_v61 = vmax.f32 %v5798_v23, %v6420_v25  ;;  %v6423_v21 = vmax.f32 %v5800_v24, %v6422_v2  ;;  %v6436_v25 = vld [vmem:[#allocation22_spill] sm:$0xff]  ;;  %v6438_v2 = vld [vmem:[#allocation23_spill] sm:$0xff] }
 0x152   : > { %v2557_v13 = vpop.f32.mrb[48].mxu0 }
 0x153   : > { %v6077_v40 = vmax.f32 %v6410_v5, %v2557_v13  ;;  %v2634_v14 = vpop.f32.mrb[48].mxu1  ;;  %v2559_v55 = vpop.f32.mrb[49].mxu0  ;;  %v6425_v5 = vld [vmem:[#allocation18_spill] sm:$0xff] }
 0x154   : > { %v6082_v15 = vmax.f32 %v6411_v6, %v2634_v14  ;;  %v6087_v7 = vmax.f32 %v6413_v28, %v2559_v55  ;;  %v2636_v16 = vpop.f32.mrb[49].mxu1  ;;  %v6426_v14 = vmax.f32 %v6424_v38, %v6425_v5  ;;  %v6427_v6 = vmax.f32 %v5804_v26, %v5934_v50  ;;  %v6440_v5 = vld [vmem:[#allocation6_spill] sm:$0xff] }
 0x155   : > { %v6092_v53 = vmax.f32 %v6415_v52, %v2636_v16  ;;  %v6429_v28 = vmax.f32 %v5806_v27, %v6428_v54  ;;  %v6431_v52 = vmax.f32 %v5808_v29, %v6430_v49  ;;  %v6444_v54 = vld [vmem:[#allocation7_spill] sm:$0xff] }
 0x156   : > { %v2563_v8 = vpop.f32.mrb[50].mxu0 }
 0x157   : > { %v6097_v11 = vmax.f32 %v6418_v57, %v2563_v8  ;;  %v2640_v18 = vpop.f32.mrb[50].mxu1  ;;  %v2565_v46 = vpop.f32.mrb[51].mxu0  ;;  %v6433_v57 = vld [vmem:[#allocation21_spill] sm:$0xff] }
 0x158   : > { %v6102_v19 = vmax.f32 %v6419_v60, %v2640_v18  ;;  %v6107_v12 = vmax.f32 %v6421_v61, %v2565_v46  ;;  %v2642_v20 = vpop.f32.mrb[51].mxu1  ;;  %v6434_v18 = vmax.f32 %v6432_v9, %v6433_v57  ;;  %v6435_v60 = vmax.f32 %v5812_v31, %v5950_v43 }
 0x159   : > { %v6112_v13 = vmax.f32 %v6423_v21, %v2642_v20  ;;  %v6437_v61 = vmax.f32 %v5814_v32, %v6436_v25  ;;  %v6439_v21 = vmax.f32 %v5816_v33, %v6438_v2  ;;  %v6443_v32 = vmax.f32 %v5820_v35, %v5966_v45  ;;  %v6454_v2 = vld [vmem:[#allocation10_spill] sm:$0xff] }
 0x15a   : > { %v2711_v51 = vpop.f32.mrb[52].mxu0 }
 0x15b   : > { %v6117_v55 = vmax.f32 %v6426_v14, %v2711_v51  ;;  %v2788_v22 = vpop.f32.mrb[52].mxu1  ;;  %v2713_v48 = vpop.f32.mrb[53].mxu0  ;;  %v6441_v14 = vld [vmem:[#allocation24_spill] sm:$0xff] }
 0x15c   : > { %v6122_v23 = vmax.f32 %v6427_v6, %v2788_v22  ;;  %v6127_v16 = vmax.f32 %v6429_v28, %v2713_v48  ;;  %v2790_v24 = vpop.f32.mrb[53].mxu1  ;;  %v6442_v22 = vmax.f32 %v6440_v5, %v6441_v14  ;;  %v6445_v28 = vld [vmem:[#allocation25_spill] sm:$0xff] }
 0x15d   : > { %v6132_v8 = vmax.f32 %v6431_v52, %v2790_v24  ;;  %v6446_v24 = vmax.f32 %v6444_v54, %v6445_v28  ;;  %v6447_v52 = vld [vmem:[#allocation8_spill] sm:$0xff] }
 0x15e   : > { %v2717_v56 = vpop.f32.mrb[54].mxu0 }
 0x15f   : > { %v6137_v46 = vmax.f32 %v6434_v18, %v2717_v56  ;;  %v2794_v26 = vpop.f32.mrb[54].mxu1  ;;  %v2719_v50 = vpop.f32.mrb[55].mxu0  ;;  %v6448_v56 = vld [vmem:[#allocation26_spill] sm:$0xff] }
 0x160   : > { %v6142_v27 = vmax.f32 %v6435_v60, %v2794_v26  ;;  %v6147_v20 = vmax.f32 %v6437_v61, %v2719_v50  ;;  %v2796_v29 = vpop.f32.mrb[55].mxu1  ;;  %v6449_v9 = vmax.f32 %v6447_v52, %v6448_v56  ;;  %v6450_v26 = vld [vmem:[#allocation9_spill] sm:$0xff]  ;;  %v6451_v50 = vld [vmem:[#allocation27_spill] sm:$0xff]  ;;  %v6453_v61 = vmax.f32 %v5828_v39, %v5982_v17 }
 0x161   : > { %v6152_v51 = vmax.f32 %v6439_v21, %v2796_v29  ;;  %v6452_v60 = vmax.f32 %v6450_v26, %v6451_v50  ;;  %v6455_v21 = vld [vmem:[#allocation28_spill] sm:$0xff] }
 0x162   : > { %v2865_v38 = vpop.f32.mrb[56].mxu0 }
 0x163   : > { %v6157_v48 = vmax.f32 %v6442_v22, %v2865_v38  ;;  %v2942_v31 = vpop.f32.mrb[56].mxu1  ;;  %v2867_v43 = vpop.f32.mrb[57].mxu0  ;;  %v6456_v38 = vmax.f32 %v6454_v2, %v6455_v21 }
 0x164   : > { %v6162_v6 = vmax.f32 %v6443_v32, %v2942_v31  ;;  %v6167_v33 = vmax.f32 %v6446_v24, %v2867_v43  ;;  %v2944_v49 = vpop.f32.mrb[57].mxu1  ;;  %v6189_v22 = vpop.permute.xlu0 %3948  ;;  %v6457_v31 = vld [vmem:[#allocation29_spill] sm:$0xff] }
 0x165   : > { %v6172_v57 = vmax.f32 %v6449_v9, %v2944_v49  ;;  %v6458_v43 = vmax.f32 %v5832_v41, %v6457_v31 }
 0x166   : > { %v2871_v18 = vpop.f32.mrb[58].mxu0 }
 0x167   : > { %v6177_v25 = vmax.f32 %v6452_v60, %v2871_v18  ;;  %v2948_v35 = vpop.f32.mrb[58].mxu1  ;;  %v2873_v45 = vpop.f32.mrb[59].mxu0 }
 0x168   : > { %v6182_v29 = vmax.f32 %v6453_v61, %v2948_v35  ;;  %v6187_v5 = vmax.f32 %v6456_v38, %v2873_v45  ;;  %v2950_v14 = vpop.f32.mrb[59].mxu1 }
 0x169   : > { %v6194_v32 = vmax.f32 %v6458_v43, %v2950_v14 }
 0x16a   : > { %v3200_v54 = vpop.f32.mrb[60].mxu0 }
 0x16b   : > { %v3904_v28 = vmax.f32 %v5997_v58, %v3200_v54  ;;  %v3277_v17 = vpop.f32.mrb[60].mxu1  ;;  %v3202_v39 = vpop.f32.mrb[61].mxu0 }
 0x16c   : > { %v3906_v24 = vmax.f32 %v6002_v62, %v3277_v17  ;;  %v3905_v49 = vmax.f32 %v6007_v34, %v3202_v39  ;;  %v3279_v52 = vpop.f32.mrb[61].mxu1  ;;  %v6209_v62 = vpop.permute.xlu0 %3953 }
 0x16d   : > { %v3907_v56 = vmax.f32 %v6012_v30, %v3279_v52  ;;  %v3956_v9 = vadd.f32 %v6189_v22, %v3904_v28 }
 0x16e   : > { %v3957_v41 = vadd.f32 %v6189_v22, %v3905_v49  ;;  %v3958_v58 = vadd.f32 %v6189_v22, %v3906_v24  ;;  %v3206_v18 = vpop.f32.mrb[62].mxu0 }
 0x16f   : > { %v3959_v34 = vadd.f32 %v6189_v22, %v3907_v56  ;;  %v3996_v30 = vmax.f32 %v3956_v9, 0.0  ;;  %v3924_v26 = vmax.f32 %v6017_v37, %v3206_v18  ;;  %v3283_v50 = vpop.f32.mrb[62].mxu1  ;;  %v3208_v60 = vpop.f32.mrb[63].mxu0 }
 0x170   : > { %v3997_v35 = vmax.f32 %v3957_v41, 0.0  ;;  %v3998_v45 = vmax.f32 %v3958_v58, 0.0  ;;  %v3926_v61 = vmax.f32 %v6022_v59, %v3283_v50  ;;  %v3925_v2 = vmax.f32 %v6027_v42, %v3208_v60  ;;  %v3285_v21 = vpop.f32.mrb[63].mxu1 }
 0x171   : > { %v3999_v38 = vmax.f32 %v3959_v34, 0.0  ;;  %4036 = vst [vmem:[%s6205_s6] sm:$0xff] %v3996_v30  ;;  %v3927_v14 = vmax.f32 %v6032_v44, %v3285_v21  ;;  %v3976_v31 = vadd.f32 %v6209_v62, %v3924_v26 }
 0x172   : > { %4037 = vst [vmem:[%s6205_s6 + $0x8] sm:$0xff] %v3997_v35  ;;  %4038 = vst [vmem:[%s6205_s6 + $0x10] sm:$0xff] %v3998_v45  ;;  %v3977_v37 = vadd.f32 %v6209_v62, %v3925_v2  ;;  %v3978_v43 = vadd.f32 %v6209_v62, %v3926_v61  ;;  %v3354_v54 = vpop.f32.mrb[64].mxu0 }
 0x173   : > { %4039 = vst [vmem:[%s6205_s6 + $0x18] sm:$0xff] %v3999_v38  ;;  %v3979_v59 = vadd.f32 %v6209_v62, %v3927_v14  ;;  %v4016_v42 = vmax.f32 %v3976_v31, 0.0  ;;  %v3908_v28 = vmax.f32 %v6037_v47, %v3354_v54  ;;  %v3431_v17 = vpop.f32.mrb[64].mxu1  ;;  %v3356_v44 = vpop.f32.mrb[65].mxu0 }
 0x174   : > { %v4017_v39 = vmax.f32 %v3977_v37, 0.0  ;;  %v4018_v24 = vmax.f32 %v3978_v43, 0.0  ;;  %v3910_v49 = vmax.f32 %v6042_v0, %v3431_v17  ;;  %v3909_v52 = vmax.f32 %v6047_v63, %v3356_v44  ;;  %v3433_v56 = vpop.f32.mrb[65].mxu1 }
 0x175   : > { %v4019_v9 = vmax.f32 %v3979_v59, 0.0  ;;  %4057 = vst [vmem:[%s6205_s6 + $0xa0] sm:$0xff] %v4016_v42  ;;  %v3960_v41 = vadd.f32 %v6189_v22, %v3908_v28  ;;  %v3911_v58 = vmax.f32 %v6052_v1, %v3433_v56 }
 0x176   : > { %4058 = vst [vmem:[%s6205_s6 + $0xa8] sm:$0xff] %v4017_v39  ;;  %4059 = vst [vmem:[%s6205_s6 + $0xb0] sm:$0xff] %v4018_v24  ;;  %v3962_v47 = vadd.f32 %v6189_v22, %v3910_v49  ;;  %v3961_v18 = vadd.f32 %v6189_v22, %v3909_v52  ;;  %v3360_v34 = vpop.f32.mrb[66].mxu0 }
 0x177   : > { %4060 = vst [vmem:[%s6205_s6 + $0xb8] sm:$0xff] %v4019_v9  ;;  %v4000_v0 = vmax.f32 %v3960_v41, 0.0  ;;  %v3963_v63 = vadd.f32 %v6189_v22, %v3911_v58  ;;  %v3928_v30 = vmax.f32 %v6057_v3, %v3360_v34  ;;  %v3437_v26 = vpop.f32.mrb[66].mxu1  ;;  %v3362_v50 = vpop.f32.mrb[67].mxu0 }
 0x178   : > { %v4002_v1 = vmax.f32 %v3962_v47, 0.0  ;;  %v4001_v60 = vmax.f32 %v3961_v18, 0.0  ;;  %v3930_v35 = vmax.f32 %v6062_v10, %v3437_v26  ;;  %v3929_v45 = vmax.f32 %v6067_v4, %v3362_v50  ;;  %v3439_v61 = vpop.f32.mrb[67].mxu1 }
 0x179   : > { %4040 = vst [vmem:[%s6205_s6 + $0x20] sm:$0xff] %v4000_v0  ;;  %v4003_v2 = vmax.f32 %v3963_v63, 0.0  ;;  %v3980_v21 = vadd.f32 %v6209_v62, %v3928_v30  ;;  %v3931_v38 = vmax.f32 %v6072_v36, %v3439_v61 }
 0x17a   : > { %4042 = vst [vmem:[%s6205_s6 + $0x30] sm:$0xff] %v4002_v1  ;;  %4041 = vst [vmem:[%s6205_s6 + $0x28] sm:$0xff] %v4001_v60  ;;  %v3982_v3 = vadd.f32 %v6209_v62, %v3930_v35  ;;  %v3981_v14 = vadd.f32 %v6209_v62, %v3929_v45  ;;  %v3508_v31 = vpop.f32.mrb[68].mxu0 }
 0x17b   : > { %4043 = vst [vmem:[%s6205_s6 + $0x38] sm:$0xff] %v4003_v2  ;;  %v4020_v10 = vmax.f32 %v3980_v21, 0.0  ;;  %v3983_v4 = vadd.f32 %v6209_v62, %v3931_v38  ;;  %v3912_v37 = vmax.f32 %v6077_v40, %v3508_v31  ;;  %v3585_v43 = vpop.f32.mrb[68].mxu1  ;;  %v3510_v54 = vpop.f32.mrb[69].mxu0 }
 0x17c   : > { %v4022_v36 = vmax.f32 %v3982_v3, 0.0  ;;  %v4021_v59 = vmax.f32 %v3981_v14, 0.0  ;;  %v3914_v42 = vmax.f32 %v6082_v15, %v3585_v43  ;;  %v3913_v28 = vmax.f32 %v6087_v7, %v3510_v54  ;;  %v3587_v17 = vpop.f32.mrb[69].mxu1 }
 0x17d   : > { %4061 = vst [vmem:[%s6205_s6 + $0xc0] sm:$0xff] %v4020_v10  ;;  %v4023_v44 = vmax.f32 %v3983_v4, 0.0  ;;  %v3964_v39 = vadd.f32 %v6189_v22, %v3912_v37  ;;  %v3915_v24 = vmax.f32 %v6092_v53, %v3587_v17 }
 0x17e   : > { %4063 = vst [vmem:[%s6205_s6 + $0xd0] sm:$0xff] %v4022_v36  ;;  %4062 = vst [vmem:[%s6205_s6 + $0xc8] sm:$0xff] %v4021_v59  ;;  %v3966_v40 = vadd.f32 %v6189_v22, %v3914_v42  ;;  %v3965_v49 = vadd.f32 %v6189_v22, %v3913_v28  ;;  %v3514_v52 = vpop.f32.mrb[70].mxu0 }
 0x17f   : > { %4064 = vst [vmem:[%s6205_s6 + $0xd8] sm:$0xff] %v4023_v44  ;;  %v4004_v15 = vmax.f32 %v3964_v39, 0.0  ;;  %v3967_v7 = vadd.f32 %v6189_v22, %v3915_v24  ;;  %v3932_v56 = vmax.f32 %v6097_v11, %v3514_v52  ;;  %v3591_v9 = vpop.f32.mrb[70].mxu1  ;;  %v3516_v41 = vpop.f32.mrb[71].mxu0 }
 0x180   : > { %v4006_v53 = vmax.f32 %v3966_v40, 0.0  ;;  %v4005_v58 = vmax.f32 %v3965_v49, 0.0  ;;  %v3934_v47 = vmax.f32 %v6102_v19, %v3591_v9  ;;  %v3933_v18 = vmax.f32 %v6107_v12, %v3516_v41  ;;  %v3593_v34 = vpop.f32.mrb[71].mxu1 }
 0x181   : > { %4044 = vst [vmem:[%s6205_s6 + $0x40] sm:$0xff] %v4004_v15  ;;  %v4007_v0 = vmax.f32 %v3967_v7, 0.0  ;;  %v3984_v63 = vadd.f32 %v6209_v62, %v3932_v56  ;;  %v3935_v30 = vmax.f32 %v6112_v13, %v3593_v34 }
 0x182   : > { %4046 = vst [vmem:[%s6205_s6 + $0x50] sm:$0xff] %v4006_v53  ;;  %4045 = vst [vmem:[%s6205_s6 + $0x48] sm:$0xff] %v4005_v58  ;;  %v3986_v11 = vadd.f32 %v6209_v62, %v3934_v47  ;;  %v3985_v26 = vadd.f32 %v6209_v62, %v3933_v18  ;;  %v3662_v50 = vpop.f32.mrb[72].mxu0 }
 0x183   : > { %4047 = vst [vmem:[%s6205_s6 + $0x58] sm:$0xff] %v4007_v0  ;;  %v4024_v19 = vmax.f32 %v3984_v63, 0.0  ;;  %v3987_v12 = vadd.f32 %v6209_v62, %v3935_v30  ;;  %v3916_v1 = vmax.f32 %v6117_v55, %v3662_v50  ;;  %v3739_v60 = vpop.f32.mrb[72].mxu1  ;;  %v3664_v35 = vpop.f32.mrb[73].mxu0 }
 0x184   : > { %v4026_v13 = vmax.f32 %v3986_v11, 0.0  ;;  %v4025_v45 = vmax.f32 %v3985_v26, 0.0  ;;  %v3918_v61 = vmax.f32 %v6122_v23, %v3739_v60  ;;  %v3917_v2 = vmax.f32 %v6127_v16, %v3664_v35  ;;  %v3741_v21 = vpop.f32.mrb[73].mxu1 }
 0x185   : > { %4065 = vst [vmem:[%s6205_s6 + $0xe0] sm:$0xff] %v4024_v19  ;;  %v4027_v38 = vmax.f32 %v3987_v12, 0.0  ;;  %v3968_v3 = vadd.f32 %v6189_v22, %v3916_v1  ;;  %v3919_v14 = vmax.f32 %v6132_v8, %v3741_v21 }
 0x186   : > { %4067 = vst [vmem:[%s6205_s6 + $0xf0] sm:$0xff] %v4026_v13  ;;  %4066 = vst [vmem:[%s6205_s6 + $0xe8] sm:$0xff] %v4025_v45  ;;  %v3970_v55 = vadd.f32 %v6189_v22, %v3918_v61  ;;  %v3969_v31 = vadd.f32 %v6189_v22, %v3917_v2  ;;  %v3668_v10 = vpop.f32.mrb[74].mxu0 }
 0x187   : > { %4068 = vst [vmem:[%s6205_s6 + $0xf8] sm:$0xff] %v4027_v38  ;;  %v4008_v23 = vmax.f32 %v3968_v3, 0.0  ;;  %v3971_v16 = vadd.f32 %v6189_v22, %v3919_v14  ;;  %v3936_v4 = vmax.f32 %v6137_v46, %v3668_v10  ;;  %v3745_v37 = vpop.f32.mrb[74].mxu1  ;;  %v3670_v43 = vpop.f32.mrb[75].mxu0 }
 0x188   : > { %v4010_v8 = vmax.f32 %v3970_v55, 0.0  ;;  %v4009_v54 = vmax.f32 %v3969_v31, 0.0  ;;  %v3938_v36 = vmax.f32 %v6142_v27, %v3745_v37  ;;  %v3937_v59 = vmax.f32 %v6147_v20, %v3670_v43  ;;  %v3747_v42 = vpop.f32.mrb[75].mxu1 }
 0x189   : > { %4048 = vst [vmem:[%s6205_s6 + $0x60] sm:$0xff] %v4008_v23  ;;  %v4011_v28 = vmax.f32 %v3971_v16, 0.0  ;;  %v3988_v17 = vadd.f32 %v6209_v62, %v3936_v4  ;;  %v3939_v44 = vmax.f32 %v6152_v51, %v3747_v42 }
 0x18a   : > { %4050 = vst [vmem:[%s6205_s6 + $0x70] sm:$0xff] %v4010_v8  ;;  %4049 = vst [vmem:[%s6205_s6 + $0x68] sm:$0xff] %v4009_v54  ;;  %v3990_v46 = vadd.f32 %v6209_v62, %v3938_v36  ;;  %v3989_v39 = vadd.f32 %v6209_v62, %v3937_v59  ;;  %v3816_v24 = vpop.f32.mrb[76].mxu0 }
 0x18b   : > { %4051 = vst [vmem:[%s6205_s6 + $0x78] sm:$0xff] %v4011_v28  ;;  %v4028_v27 = vmax.f32 %v3988_v17, 0.0  ;;  %v3991_v20 = vadd.f32 %v6209_v62, %v3939_v44  ;;  %v3920_v40 = vmax.f32 %v6157_v48, %v3816_v24  ;;  %v3893_v49 = vpop.f32.mrb[76].mxu1  ;;  %v3818_v52 = vpop.f32.mrb[77].mxu0 }
 0x18c   : > { %v4030_v51 = vmax.f32 %v3990_v46, 0.0  ;;  %v4029_v15 = vmax.f32 %v3989_v39, 0.0  ;;  %v3922_v7 = vmax.f32 %v6162_v6, %v3893_v49  ;;  %v3921_v56 = vmax.f32 %v6167_v33, %v3818_v52  ;;  %v3895_v9 = vpop.f32.mrb[77].mxu1 }
 0x18d   : > { %4069 = vst [vmem:[%s6205_s6 + $0x100] sm:$0xff] %v4028_v27  ;;  %v4031_v41 = vmax.f32 %v3991_v20, 0.0  ;;  %v3972_v53 = vadd.f32 %v6189_v22, %v3920_v40  ;;  %v3923_v58 = vmax.f32 %v6172_v57, %v3895_v9 }
 0x18e   : > { %4071 = vst [vmem:[%s6205_s6 + $0x110] sm:$0xff] %v4030_v51  ;;  %4070 = vst [vmem:[%s6205_s6 + $0x108] sm:$0xff] %v4029_v15  ;;  %v3974_v48 = vadd.f32 %v6189_v22, %v3922_v7  ;;  %v3973_v47 = vadd.f32 %v6189_v22, %v3921_v56  ;;  %v3822_v18 = vpop.f32.mrb[78].mxu0 }
 0x18f   : > { %4072 = vst [vmem:[%s6205_s6 + $0x118] sm:$0xff] %v4031_v41  ;;  %v4012_v6 = vmax.f32 %v3972_v53, 0.0  ;;  %v3975_v33 = vadd.f32 %v6189_v22, %v3923_v58  ;;  %v3940_v34 = vmax.f32 %v6177_v25, %v3822_v18  ;;  %v3899_v0 = vpop.f32.mrb[78].mxu1  ;;  %v3824_v57 = vpop.f32.mrb[79].mxu0 }
 0x190   : > { %v4014_v63 = vmax.f32 %v3974_v48, 0.0  ;;  %v4013_v30 = vmax.f32 %v3973_v47, 0.0  ;;  %v3942_v11 = vmax.f32 %v6182_v29, %v3899_v0  ;;  %v3941_v26 = vmax.f32 %v6187_v5, %v3824_v57  ;;  %v3901_v50 = vpop.f32.mrb[79].mxu1 }
 0x191   : > { %4052 = vst [vmem:[%s6205_s6 + $0x80] sm:$0xff] %v4012_v6  ;;  %v4015_v19 = vmax.f32 %v3975_v33, 0.0  ;;  %v3992_v22 = vadd.f32 %v6209_v62, %v3940_v34  ;;  %v3943_v25 = vmax.f32 %v6194_v32, %v3901_v50 }
 0x192   : > { %4054 = vst [vmem:[%s6205_s6 + $0x90] sm:$0xff] %v4014_v63  ;;  %4053 = vst [vmem:[%s6205_s6 + $0x88] sm:$0xff] %v4013_v30  ;;  %v3994_v12 = vadd.f32 %v6209_v62, %v3942_v11  ;;  %v3993_v1 = vadd.f32 %v6209_v62, %v3941_v26 }
 0x193   : > { %4056 = vst.msk [vmem:[%s6205_s6 + $0x98] sm:$0xff] %vm4055_vm4, %v4015_v19  ;;  %v4032_v29 = vmax.f32 %v3992_v22, 0.0  ;;  %v3995_v5 = vadd.f32 %v6209_v62, %v3943_v25 }
 0x194   : > { %v4034_v60 = vmax.f32 %v3994_v12, 0.0  ;;  %v4033_v35 = vmax.f32 %v3993_v1, 0.0 }
 0x195   : > { %4073 = vst [vmem:[%s6205_s6 + $0x120] sm:$0xff] %v4032_v29  ;;  %v4035_v13 = vmax.f32 %v3995_v5, 0.0 }
 0x196   : > { %4075 = vst [vmem:[%s6205_s6 + $0x130] sm:$0xff] %v4034_v60  ;;  %4074 = vst [vmem:[%s6205_s6 + $0x128] sm:$0xff] %v4033_v35 }
 0x197   : > { %4076 = vst.msk [vmem:[%s6205_s6 + $0x138] sm:$0xff] %vm4055_vm4, %v4035_v13 }
 0x198 PF: > { %s13_s12 = sadd.s32 1, %s4963_s12  }
 0x199   : > { %p10_p4 = scmp.ge.s32.totalorder %s13_s12, 4  }
 0x19b   :  { %12 = sbr.rel (!%p10_p4) target bundleno = 1 (0x1), region = 65 }

// kernel: fruit_cnn_forward.4
= control target key start
LH: loop header
LB: loop body
LE: loop exit
PB: predicated region body
PF: predicated region fallthrough
CT: control target
= control target key end

     0   :  { %s2582_s12 = smov 0   ;;  %s3408_s0 = inlined_call_operand.vmem [shape: f32[2,4,144,625], index: 0, kind: input, shape index: {}]   ;;  %s3409_s1 = inlined_call_operand.vmem [shape: f32[32,144], index: 1, kind: input, shape index: {}]   ;;  %s3410_s2 = inlined_call_operand.vmem [shape: f32[32,1], index: 2, kind: input, shape index: {}]   ;;  %s3411_s3 = inlined_call_operand.vmem [shape: f32[2,32,625], index: 3, kind: output, shape index: {}]  }
   0x1 LB: > { %s1807_s13 = sadd.s32 4294967295, %s2558_s12   ;;  %p1811_p0 = scmp.ge.s32.totalorder %s2558_s12, 1  ;;  %s2558_s12 = sphi %s2582_s12, %s13_s12  }
   0x2   : > { %p137_p1 = scmp.lt.s32.totalorder %s2558_s12, 3 }
   0x4   : > { %p138_p2 = pnand %p1811_p0, %p137_p1 }
   0x5   : > { %p161_p3 = scmp.lt.s32.totalorder (!%p138_p2), %s1807_s13, 1  ;;  %v2593_v0 = vld [vmem:[%s3409_s1 + $0x8] sm:$0xff] (!%p138_p2)  ;;  %vm269_vm0 = vcmask (!%p138_p2), 130048   ;;  %vm1735_vm1 = vcmask (!%p138_p2), 924672  }
   0x6   : > { %141 = sbr.rel (%p138_p2) target bundleno = 469 (0x1d5), region = 32  ;;  %1814 = vmatprep.mubr.msk.f32.mxu0 (!%p138_p2), %vm269_vm0, %v2593_v0  ;;  %1818 = vmatprep.mubr.msk.f32.mxu1 (!%p138_p2), %vm269_vm0, %v2593_v0 }
   0xd   : > { %s3413_s13 = smov (!%p161_p3, %s1807_s13), 1 }
   0xe   : > { %s2530_s16 = smul.u32 2880, %s3413_s13 }
  0x10   : > { %s2605_s19 = scalar_lea.vmem %s3408_s0, %s2530_s16 }
  0x11   : > { %v180_v1 = vld [vmem:[%s2605_s19 + $0x8] sm:$0xff]  ;;  %v185_v2 = vld [vmem:[%s2605_s19 + $0x30] sm:$0xff]  ;;  %v182_v3 = vld [vmem:[%s2605_s19 + $0x18] sm:$0xff] }
  0x12   : > { %v2134_v4 = vpack.c.bf16 %v185_v2, %v180_v1  ;;  %v187_v5 = vld [vmem:[%s2605_s19 + $0x40] sm:$0xff]  ;;  %v184_v7 = vld [vmem:[%s2605_s19 + $0x28] sm:$0xff]  ;;  %v181_v10 = vld [vmem:[%s2605_s19 + $0x10] sm:$0xff] }
  0x13   : > { %v179_v6 = vld [vmem:[%s2605_s19] sm:$0xff]  ;;  %v2170_v8 = vpack.c.bf16 %v187_v5, %v182_v3  ;;  %v186_v11 = vld [vmem:[%s2605_s19 + $0x38] sm:$0xff]  ;;  %v192_v15 = vld [vmem:[%s2605_s19 + $0x68] sm:$0xff] }
  0x14   : > { %v2136_v9 = vpack.c.bf16 %v184_v7, %v179_v6  ;;  %v190_v12 = vld [vmem:[%s2605_s19 + $0x58] sm:$0xff]  ;;  %2135 = vmatprep.subr.bf16.mxu0 %v2134_v4  ;;  %v2172_v13 = vpack.c.bf16 %v186_v11, %v181_v10  ;;  %v195_v14 = vld [vmem:[%s2605_s19 + $0x80] sm:$0xff]  ;;  %v197_v16 = vld [vmem:[%s2605_s19 + $0x90] sm:$0xff] }
  0x15   : > { %2171 = vmatprep.subr.bf16.mxu1 %v2170_v8  ;;  %v2138_v17 = vpack.c.bf16 %v195_v14, %v190_v12  ;;  %v2174_v18 = vpack.c.bf16 %v197_v16, %v192_v15  ;;  %v189_v19 = vld [vmem:[%s2605_s19 + $0x50] sm:$0xff]  ;;  %v194_v20 = vld [vmem:[%s2605_s19 + $0x78] sm:$0xff]  ;;  %v191_v21 = vld [vmem:[%s2605_s19 + $0x60] sm:$0xff] }
  0x16   : > { %2137 = vmatpush1.bf16.msra.mxu0 %v2136_v9  ;;  %2173 = vmatpush1.bf16.msra.mxu1 %v2172_v13  ;;  %v2140_v22 = vpack.c.bf16 %v194_v20, %v189_v19  ;;  %v196_v23 = vld [vmem:[%s2605_s19 + $0x88] sm:$0xff]  ;;  %v205_v25 = vld [vmem:[%s2605_s19 + $0xd0] sm:$0xff]  ;;  %v202_v28 = vld [vmem:[%s2605_s19 + $0xb8] sm:$0xff] }
  0x17   : > { %v200_v24 = vld [vmem:[%s2605_s19 + $0xa8] sm:$0xff]  ;;  %2139 = vmatprep.subr.bf16.mxu0 %v2138_v17  ;;  %2175 = vmatprep.subr.bf16.mxu1 %v2174_v18  ;;  %v2176_v26 = vpack.c.bf16 %v196_v23, %v191_v21  ;;  %v207_v29 = vld [vmem:[%s2605_s19 + $0xe0] sm:$0xff]  ;;  %v201_v33 = vld [vmem:[%s2605_s19 + $0xb0] sm:$0xff] }
  0x18   : > { %v2142_v27 = vpack.c.bf16 %v205_v25, %v200_v24  ;;  %v199_v30 = vld [vmem:[%s2605_s19 + $0xa0] sm:$0xff]  ;;  %v2178_v31 = vpack.c.bf16 %v207_v29, %v202_v28  ;;  %v204_v32 = vld [vmem:[%s2605_s19 + $0xc8] sm:$0xff]  ;;  %v206_v34 = vld [vmem:[%s2605_s19 + $0xd8] sm:$0xff] }
  0x19   : > { %v2144_v35 = vpack.c.bf16 %v204_v32, %v199_v30  ;;  %v210_v36 = vld [vmem:[%s2605_s19 + $0xf8] sm:$0xff]  ;;  %v215_v37 = vld [vmem:[%s2605_s19 + $0x120] sm:$0xff]  ;;  %v212_v38 = vld [vmem:[%s2605_s19 + $0x108] sm:$0xff]  ;;  %v2180_v39 = vpack.c.bf16 %v206_v34, %v201_v33 }
  0x1a   : > { %2141 = vmatpush1.bf16.msra.mxu0 %v2140_v22  ;;  %2177 = vmatpush1.bf16.msra.mxu1 %v2176_v26  ;;  %v2146_v40 = vpack.c.bf16 %v215_v37, %v210_v36  ;;  %v217_v41 = vld [vmem:[%s2605_s19 + $0x130] sm:$0xff]  ;;  %v214_v43 = vld [vmem:[%s2605_s19 + $0x118] sm:$0xff]  ;;  %v211_v45 = vld [vmem:[%s2605_s19 + $0x100] sm:$0xff] }
  0x1b   : > { %2143 = vmatprep.subr.bf16.mxu0 %v2142_v27  ;;  %v209_v42 = vld [vmem:[%s2605_s19 + $0xf0] sm:$0xff]  ;;  %2179 = vmatprep.subr.bf16.mxu1 %v2178_v31  ;;  %v2182_v44 = vpack.c.bf16 %v217_v41, %v212_v38  ;;  %v216_v46 = vld [vmem:[%s2605_s19 + $0x128] sm:$0xff]  ;;  %v222_v49 = vld [vmem:[%s2605_s19 + $0x158] sm:$0xff] }
  0x1c   : > { %v220_v47 = vld [vmem:[%s2605_s19 + $0x148] sm:$0xff]  ;;  %v225_v48 = vld [vmem:[%s2605_s19 + $0x170] sm:$0xff]  ;;  %v227_v50 = vld [vmem:[%s2605_s19 + $0x180] sm:$0xff]  ;;  %v2148_v51 = vpack.c.bf16 %v214_v43, %v209_v42  ;;  %v2184_v52 = vpack.c.bf16 %v216_v46, %v211_v45 }
  0x1d   : > { %v2150_v53 = vpack.c.bf16 %v225_v48, %v220_v47  ;;  %v219_v54 = vld [vmem:[%s2605_s19 + $0x140] sm:$0xff]  ;;  %v224_v55 = vld [vmem:[%s2605_s19 + $0x168] sm:$0xff]  ;;  %v221_v56 = vld [vmem:[%s2605_s19 + $0x150] sm:$0xff]  ;;  %v2186_v57 = vpack.c.bf16 %v227_v50, %v222_v49 }
  0x1e   : > { %2145 = vmatpush1.bf16.msra.mxu0 %v2144_v35  ;;  %2181 = vmatpush1.bf16.msra.mxu1 %v2180_v39  ;;  %v226_v58 = vld [vmem:[%s2605_s19 + $0x178] sm:$0xff]  ;;  %v235_v60 = vld [vmem:[%s2605_s19 + $0x1c0] sm:$0xff]  ;;  %v232_v61 = vld [vmem:[%s2605_s19 + $0x1a8] sm:$0xff]  ;;  %v2152_v63 = vpack.c.bf16 %v224_v55, %v219_v54 }
  0x1f   : > { %2147 = vmatprep.subr.bf16.mxu0 %v2146_v40  ;;  %2183 = vmatprep.subr.bf16.mxu1 %v2182_v44  ;;  %v230_v59 = vld [vmem:[%s2605_s19 + $0x198] sm:$0xff]  ;;  %v237_v62 = vld [vmem:[%s2605_s19 + $0x1d0] sm:$0xff]  ;;  %v2188_v1 = vpack.c.bf16 %v226_v58, %v221_v56  ;;  %v231_v5 = vld [vmem:[%s2605_s19 + $0x1a0] sm:$0xff] }
  0x20   : > { %v2154_v2 = vpack.c.bf16 %v235_v60, %v230_v59  ;;  %v229_v3 = vld [vmem:[%s2605_s19 + $0x190] sm:$0xff]  ;;  %v234_v4 = vld [vmem:[%s2605_s19 + $0x1b8] sm:$0xff]  ;;  %v2190_v6 = vpack.c.bf16 %v237_v62, %v232_v61  ;;  %v236_v7 = vld [vmem:[%s2605_s19 + $0x1c8] sm:$0xff] }
  0x21   : > { %v240_v8 = vld [vmem:[%s2605_s19 + $0x1e8] sm:$0xff]  ;;  %v245_v9 = vld [vmem:[%s2605_s19 + $0x210] sm:$0xff]  ;;  %v242_v10 = vld [vmem:[%s2605_s19 + $0x1f8] sm:$0xff]  ;;  %v2156_v12 = vpack.c.bf16 %v234_v4, %v229_v3  ;;  %v2192_v13 = vpack.c.bf16 %v236_v7, %v231_v5 }
  0x22   : > { %2149 = vmatpush1.bf16.msra.mxu0 %v2148_v51  ;;  %2185 = vmatpush1.bf16.msra.mxu1 %v2184_v52  ;;  %v247_v11 = vld [vmem:[%s2605_s19 + $0x220] sm:$0xff]  ;;  %v2158_v14 = vpack.c.bf16 %v245_v9, %v240_v8  ;;  %v244_v16 = vld [vmem:[%s2605_s19 + $0x208] sm:$0xff]  ;;  %v241_v17 = vld [vmem:[%s2605_s19 + $0x1f0] sm:$0xff] }
  0x23   : > { %2151 = vmatprep.subr.bf16.mxu0 %v2150_v53  ;;  %2187 = vmatprep.subr.bf16.mxu1 %v2186_v57  ;;  %v239_v15 = vld [vmem:[%s2605_s19 + $0x1e0] sm:$0xff]  ;;  %v2194_v18 = vpack.c.bf16 %v247_v11, %v242_v10  ;;  %v246_v19 = vld [vmem:[%s2605_s19 + $0x218] sm:$0xff]  ;;  %v252_v22 = vld [vmem:[%s2605_s19 + $0x248] sm:$0xff]  ;;  %v2560_v57 = vmov 0.0|0.0  }
  0x24   : > { %v250_v20 = vld [vmem:[%s2605_s19 + $0x238] sm:$0xff]  ;;  %v255_v21 = vld [vmem:[%s2605_s19 + $0x260] sm:$0xff]  ;;  %v257_v23 = vld [vmem:[%s2605_s19 + $0x270] sm:$0xff]  ;;  %v2160_v24 = vpack.c.bf16 %v244_v16, %v239_v15  ;;  %v2196_v25 = vpack.c.bf16 %v246_v19, %v241_v17 }
  0x25   : > { %v2162_v26 = vpack.c.bf16 %v255_v21, %v250_v20  ;;  %v249_v27 = vld [vmem:[%s2605_s19 + $0x230] sm:$0xff]  ;;  %v254_v28 = vld [vmem:[%s2605_s19 + $0x258] sm:$0xff]  ;;  %v251_v29 = vld [vmem:[%s2605_s19 + $0x240] sm:$0xff]  ;;  %v2198_v30 = vpack.c.bf16 %v257_v23, %v252_v22 }
  0x26   : > { %2153 = vmatpush1.bf16.msra.mxu0 %v2152_v63  ;;  %2189 = vmatpush1.bf16.msra.mxu1 %v2188_v1  ;;  %v256_v31 = vld [vmem:[%s2605_s19 + $0x268] sm:$0xff]  ;;  %v265_v33 = vld [vmem:[%s2605_s19 + $0x2b0] sm:$0xff]  ;;  %v262_v34 = vld [vmem:[%s2605_s19 + $0x298] sm:$0xff]  ;;  %v2164_v36 = vpack.c.bf16 %v254_v28, %v249_v27 }
  0x27   : > { %2155 = vmatprep.subr.bf16.mxu0 %v2154_v2  ;;  %2191 = vmatprep.subr.bf16.mxu1 %v2190_v6  ;;  %v260_v32 = vld [vmem:[%s2605_s19 + $0x288] sm:$0xff]  ;;  %v267_v35 = vld [vmem:[%s2605_s19 + $0x2c0] sm:$0xff]  ;;  %v2200_v37 = vpack.c.bf16 %v256_v31, %v251_v29  ;;  %v261_v42 = vld [vmem:[%s2605_s19 + $0x290] sm:$0xff] }
  0x28   : > { %v2166_v38 = vpack.c.bf16 %v265_v33, %v260_v32  ;;  %v259_v39 = vld [vmem:[%s2605_s19 + $0x280] sm:$0xff]  ;;  %v264_v40 = vld [vmem:[%s2605_s19 + $0x2a8] sm:$0xff]  ;;  %v2202_v41 = vpack.c.bf16 %v267_v35, %v262_v34  ;;  %v266_v43 = vld [vmem:[%s2605_s19 + $0x2b8] sm:$0xff] }
  0x29   : > { %v1827_v44 = vld [vmem:[%s2605_s19 + $0x2d8] sm:$0xff]  ;;  %v1832_v45 = vld [vmem:[%s2605_s19 + $0x300] sm:$0xff]  ;;  %v2168_v46 = vpack.c.bf16 %v264_v40, %v259_v39  ;;  %v2204_v47 = vpack.c.bf16 %v266_v43, %v261_v42  ;;  %v188_v49 = vld [vmem:[%s2605_s19 + $0x48] sm:$0xff] }
  0x2a   : > { %2157 = vmatpush1.bf16.msra.mxu0 %v2156_v12  ;;  %2193 = vmatpush1.bf16.msra.mxu1 %v2192_v13  ;;  %v183_v48 = vld [vmem:[%s2605_s19 + $0x20] sm:$0xff]  ;;  %v2233_v50 = vpack.c.bf16 %v1832_v45, %v1827_v44  ;;  %v1826_v51 = vld [vmem:[%s2605_s19 + $0x2d0] sm:$0xff]  ;;  %v1831_v52 = vld [vmem:[%s2605_s19 + $0x2f8] sm:$0xff] }
  0x2b   : > { %2159 = vmatprep.subr.bf16.mxu0 %v2158_v14  ;;  %2195 = vmatprep.subr.bf16.mxu1 %v2194_v18  ;;  %v1837_v53 = vld [vmem:[%s2605_s19 + $0x328] sm:$0xff]  ;;  %v1842_v54 = vld [vmem:[%s2605_s19 + $0x350] sm:$0xff]  ;;  %v2690_v55 = vld [vmem:[%s3409_s1] sm:$0xff]  ;;  %v2207_v56 = vpack.c.bf16 %v188_v49, %v183_v48  ;;  %v2235_v58 = vpack.c.bf16 %v1831_v52, %v1826_v51 }
  0x2c   : > { %v193_v59 = vld [vmem:[%s2605_s19 + $0x70] sm:$0xff]  ;;  %v198_v60 = vld [vmem:[%s2605_s19 + $0x98] sm:$0xff]  ;;  %v2237_v61 = vpack.c.bf16 %v1842_v54, %v1837_v53  ;;  %v1836_v62 = vld [vmem:[%s2605_s19 + $0x320] sm:$0xff] }
  0x2d   : > { %v1841_v63 = vld [vmem:[%s2605_s19 + $0x348] sm:$0xff]  ;;  %v1847_v1 = vld [vmem:[%s2605_s19 + $0x378] sm:$0xff]  ;;  %v1852_v2 = vld [vmem:[%s2605_s19 + $0x3a0] sm:$0xff]  ;;  %v2210_v4 = vpack.c.bf16 %v198_v60, %v193_v59 }
  0x2e   : > { %2161 = vmatpush1.bf16.msra.mxu0 %v2160_v24  ;;  %2197 = vmatpush1.bf16.msra.mxu1 %v2196_v25  ;;  %v2703_v3 = vld [vmem:[%s3409_s1 + $0x18] sm:$0xff]  ;;  %v2709_v5 = vld [vmem:[%s3409_s1 + $0x10] sm:$0xff]  ;;  %v2239_v6 = vpack.c.bf16 %v1841_v63, %v1836_v62  ;;  %v203_v7 = vld [vmem:[%s2605_s19 + $0xc0] sm:$0xff]  ;;  %v2241_v9 = vpack.c.bf16 %v1852_v2, %v1847_v1 }
  0x2f   : > { %2163 = vmatprep.subr.bf16.mxu0 %v2162_v26  ;;  %2199 = vmatprep.subr.bf16.mxu1 %v2198_v30  ;;  %v208_v8 = vld [vmem:[%s2605_s19 + $0xe8] sm:$0xff]  ;;  %v1846_v10 = vld [vmem:[%s2605_s19 + $0x370] sm:$0xff]  ;;  %v1851_v11 = vld [vmem:[%s2605_s19 + $0x398] sm:$0xff] }
  0x30   : > { %v1857_v12 = vld [vmem:[%s2605_s19 + $0x3c8] sm:$0xff]  ;;  %v1862_v13 = vld [vmem:[%s2605_s19 + $0x3f0] sm:$0xff]  ;;  %v2213_v15 = vpack.c.bf16 %v208_v8, %v203_v7  ;;  %v2732_v16 = vld [vmem:[%s3409_s1 + $0x20] sm:$0xff]  ;;  %v2243_v17 = vpack.c.bf16 %v1851_v11, %v1846_v10 }
  0x31   : > { %v2726_v14 = vld [vmem:[%s3409_s1 + $0x28] sm:$0xff]  ;;  %v213_v18 = vld [vmem:[%s2605_s19 + $0x110] sm:$0xff]  ;;  %v218_v19 = vld [vmem:[%s2605_s19 + $0x138] sm:$0xff]  ;;  %v2245_v20 = vpack.c.bf16 %v1862_v13, %v1857_v12 }
  0x32   : > { %2165 = vmatpush1.bf16.msra.mxu0 %v2164_v36  ;;  %2201 = vmatpush1.bf16.msra.mxu1 %v2200_v37  ;;  %v1856_v21 = vld [vmem:[%s2605_s19 + $0x3c0] sm:$0xff]  ;;  %v1861_v22 = vld [vmem:[%s2605_s19 + $0x3e8] sm:$0xff]  ;;  %v1867_v23 = vld [vmem:[%s2605_s19 + $0x418] sm:$0xff]  ;;  %v2216_v26 = vpack.c.bf16 %v218_v19, %v213_v18 }
  0x33   : > { %2167 = vmatprep.subr.bf16.mxu0 %v2166_v38  ;;  %2203 = vmatprep.subr.bf16.mxu1 %v2202_v41  ;;  %v1872_v24 = vld [vmem:[%s2605_s19 + $0x440] sm:$0xff]  ;;  %v2749_v25 = vld [vmem:[%s3409_s1 + $0x38] sm:$0xff]  ;;  %v2755_v27 = vld [vmem:[%s3409_s1 + $0x30] sm:$0xff]  ;;  %v2247_v28 = vpack.c.bf16 %v1861_v22, %v1856_v21 }
  0x34   : > { %v223_v29 = vld [vmem:[%s2605_s19 + $0x160] sm:$0xff]  ;;  %v228_v30 = vld [vmem:[%s2605_s19 + $0x188] sm:$0xff]  ;;  %v2249_v31 = vpack.c.bf16 %v1872_v24, %v1867_v23  ;;  %v1866_v32 = vld [vmem:[%s2605_s19 + $0x410] sm:$0xff] }
  0x35   : > { %v1871_v33 = vld [vmem:[%s2605_s19 + $0x438] sm:$0xff]  ;;  %v1877_v34 = vld [vmem:[%s2605_s19 + $0x468] sm:$0xff]  ;;  %v1882_v35 = vld [vmem:[%s2605_s19 + $0x490] sm:$0xff]  ;;  %v2219_v36 = vpack.c.bf16 %v228_v30, %v223_v29 }
  0x36   : > { %2169 = vmatpush1.bf16.msra.mxu0 %v2168_v46  ;;  %2205 = vmatpush1.bf16.msra.mxu1 %v2204_v47  ;;  %v2251_v37 = vpack.c.bf16 %v1871_v33, %v1866_v32  ;;  %v233_v38 = vld [vmem:[%s2605_s19 + $0x1b0] sm:$0xff]  ;;  %v238_v39 = vld [vmem:[%s2605_s19 + $0x1d8] sm:$0xff]  ;;  %v2253_v40 = vpack.c.bf16 %v1882_v35, %v1877_v34  ;;  %v1876_v41 = vld [vmem:[%s2605_s19 + $0x460] sm:$0xff] }
  0x37   : > { %2206 = vmatprep.subr.bf16.mxu0 %v2560_v57  ;;  %2234 = vmatprep.subr.bf16.mxu1 %v2233_v50  ;;  %v1881_v42 = vld [vmem:[%s2605_s19 + $0x488] sm:$0xff]  ;;  %v1887_v43 = vld [vmem:[%s2605_s19 + $0x4b8] sm:$0xff]  ;;  %v1892_v44 = vld [vmem:[%s2605_s19 + $0x4e0] sm:$0xff]  ;;  %v2222_v45 = vpack.c.bf16 %v238_v39, %v233_v38 }
  0x38   : > { %v2255_v46 = vpack.c.bf16 %v1881_v42, %v1876_v41  ;;  %v243_v47 = vld [vmem:[%s2605_s19 + $0x200] sm:$0xff]  ;;  %v248_v48 = vld [vmem:[%s2605_s19 + $0x228] sm:$0xff]  ;;  %v2257_v49 = vpack.c.bf16 %v1892_v44, %v1887_v43  ;;  %v1886_v50 = vld [vmem:[%s2605_s19 + $0x4b0] sm:$0xff] }
  0x39   : > { %347 = vmatmul.mubr.f32.vlgmr.msra.gmra.mrb[0].mxu0 %v2690_v55  ;;  %436 = vmatmul.mubr.f32.vlgmr.msra.gmra.mrb[0].mxu1 %v2690_v55  ;;  %v1891_v51 = vld [vmem:[%s2605_s19 + $0x4d8] sm:$0xff]  ;;  %v1897_v52 = vld [vmem:[%s2605_s19 + $0x508] sm:$0xff]  ;;  %v1902_v53 = vld [vmem:[%s2605_s19 + $0x530] sm:$0xff]  ;;  %v2225_v54 = vpack.c.bf16 %v248_v48, %v243_v47 }
  0x3a   : > { %2208 = vmatpush1.bf16.msra.mxu0 %v2207_v56  ;;  %2236 = vmatpush1.bf16.msra.mxu1 %v2235_v58  ;;  %v2259_v56 = vpack.c.bf16 %v1891_v51, %v1886_v50  ;;  %v253_v58 = vld [vmem:[%s2605_s19 + $0x250] sm:$0xff]  ;;  %v258_v59 = vld [vmem:[%s2605_s19 + $0x278] sm:$0xff]  ;;  %v2261_v60 = vpack.c.bf16 %v1902_v53, %v1897_v52  ;;  %v1901_v62 = vld [vmem:[%s2605_s19 + $0x528] sm:$0xff] }
  0x3b   : > { %2209 = vmatprep.subr.bf16.mxu0 %v2560_v57  ;;  %2238 = vmatprep.subr.bf16.mxu1 %v2237_v61  ;;  %v1896_v61 = vld [vmem:[%s2605_s19 + $0x500] sm:$0xff]  ;;  %v1907_v63 = vld [vmem:[%s2605_s19 + $0x558] sm:$0xff]  ;;  %v2228_v2 = vpack.c.bf16 %v258_v59, %v253_v58  ;;  %v268_v7 = vld [vmem:[%s2605_s19 + $0x2c8] sm:$0xff] }
  0x3c   : > { %1815 = vmatprep.mubr.msk.f32.mxu0 %vm269_vm0, %v2703_v3  ;;  %1819 = vmatprep.mubr.msk.f32.mxu1 %vm269_vm0, %v2703_v3  ;;  %v1912_v1 = vld [vmem:[%s2605_s19 + $0x580] sm:$0xff]  ;;  %v1906_v8 = vld [vmem:[%s2605_s19 + $0x550] sm:$0xff]  ;;  %v1911_v10 = vld [vmem:[%s2605_s19 + $0x578] sm:$0xff] }
  0x3d   : > { %353 = vmatmul.mubr.f32.gmra.mrb[2].mxu0 %v2709_v5  ;;  %442 = vmatmul.mubr.f32.gmra.mrb[2].mxu1 %v2709_v5  ;;  %v1829_v11 = vld [vmem:[%s2605_s19 + $0x2e8] sm:$0xff]  ;;  %v1834_v12 = vld [vmem:[%s2605_s19 + $0x310] sm:$0xff]  ;;  %v1828_v18 = vld [vmem:[%s2605_s19 + $0x2e0] sm:$0xff] }
  0x3e   : > { %2211 = vmatpush1.bf16.msra.mxu0 %v2210_v4  ;;  %2240 = vmatpush1.bf16.msra.mxu1 %v2239_v6  ;;  %v2263_v4 = vpack.c.bf16 %v1901_v62, %v1896_v61  ;;  %v263_v6 = vld [vmem:[%s2605_s19 + $0x2a0] sm:$0xff]  ;;  %v1833_v19 = vld [vmem:[%s2605_s19 + $0x308] sm:$0xff]  ;;  %v1835_v21 = vld [vmem:[%s2605_s19 + $0x318] sm:$0xff] }
  0x3f   : > { %2212 = vmatprep.subr.bf16.mxu0 %v2560_v57  ;;  %2242 = vmatprep.subr.bf16.mxu1 %v2241_v9  ;;  %v2265_v9 = vpack.c.bf16 %v1912_v1, %v1907_v63  ;;  %v2231_v13 = vpack.c.bf16 %v268_v7, %v263_v6  ;;  %v1839_v22 = vld [vmem:[%s2605_s19 + $0x338] sm:$0xff]  ;;  %v1844_v23 = vld [vmem:[%s2605_s19 + $0x360] sm:$0xff]  ;;  %v2271_v24 = vpack.c.bf16 %v1833_v19, %v1828_v18  ;;  %v1845_v32 = vld [vmem:[%s2605_s19 + $0x368] sm:$0xff] }
  0x40   : > { %1816 = vmatprep.mubr.msk.f32.mxu0 %vm269_vm0, %v2726_v14  ;;  %1820 = vmatprep.mubr.msk.f32.mxu1 %vm269_vm0, %v2726_v14  ;;  %v1843_v29 = vld [vmem:[%s2605_s19 + $0x358] sm:$0xff]  ;;  %v2273_v30 = vpack.c.bf16 %v1844_v23, %v1839_v22  ;;  %v1849_v33 = vld [vmem:[%s2605_s19 + $0x388] sm:$0xff]  ;;  %v1854_v34 = vld [vmem:[%s2605_s19 + $0x3b0] sm:$0xff] }
  0x41   : > { %359 = vmatmul.mubr.f32.gmra.mrb[4].mxu0 %v2732_v16  ;;  %448 = vmatmul.mubr.f32.gmra.mrb[4].mxu1 %v2732_v16  ;;  %v1853_v38 = vld [vmem:[%s2605_s19 + $0x3a8] sm:$0xff]  ;;  %v2277_v39 = vpack.c.bf16 %v1854_v34, %v1849_v33  ;;  %v1855_v41 = vld [vmem:[%s2605_s19 + $0x3b8] sm:$0xff]  ;;  %v1864_v43 = vld [vmem:[%s2605_s19 + $0x400] sm:$0xff] }
  0x42   : > { %2214 = vmatpush1.bf16.msra.mxu0 %v2213_v15  ;;  %2244 = vmatpush1.bf16.msra.mxu1 %v2243_v17  ;;  %v2267_v15 = vpack.c.bf16 %v1911_v10, %v1906_v8  ;;  %v2269_v17 = vpack.c.bf16 %v1834_v12, %v1829_v11  ;;  %v1859_v42 = vld [vmem:[%s2605_s19 + $0x3d8] sm:$0xff]  ;;  %v1860_v48 = vld [vmem:[%s2605_s19 + $0x3e0] sm:$0xff]  ;;  %v1865_v50 = vld [vmem:[%s2605_s19 + $0x408] sm:$0xff] }
  0x43   : > { %2215 = vmatprep.subr.bf16.mxu0 %v2560_v57  ;;  %2246 = vmatprep.subr.bf16.mxu1 %v2245_v20  ;;  %v1830_v20 = vld [vmem:[%s2605_s19 + $0x2f0] sm:$0xff]  ;;  %v1863_v47 = vld [vmem:[%s2605_s19 + $0x3f8] sm:$0xff]  ;;  %v1869_v51 = vld [vmem:[%s2605_s19 + $0x428] sm:$0xff] }
  0x44   : > { %1817 = vmatprep.mubr.msk.f32.mxu0 %vm269_vm0, %v2749_v25  ;;  %1821 = vmatprep.mubr.msk.f32.mxu1 %vm269_vm0, %v2749_v25  ;;  %v1874_v52 = vld [vmem:[%s2605_s19 + $0x450] sm:$0xff]  ;;  %v1868_v58 = vld [vmem:[%s2605_s19 + $0x420] sm:$0xff]  ;;  %v1873_v59 = vld [vmem:[%s2605_s19 + $0x448] sm:$0xff] }
  0x45   : > { %365 = vmatmul.mubr.f32.gmra.mrb[6].mxu0 %v2755_v27  ;;  %454 = vmatmul.mubr.f32.gmra.mrb[6].mxu1 %v2755_v27  ;;  %v1875_v61 = vld [vmem:[%s2605_s19 + $0x458] sm:$0xff]  ;;  %v1884_v63 = vld [vmem:[%s2605_s19 + $0x4a0] sm:$0xff]  ;;  %v2287_v1 = vpack.c.bf16 %v1873_v59, %v1868_v58  ;;  %v1878_v6 = vld [vmem:[%s2605_s19 + $0x470] sm:$0xff] }
  0x46   : > { %2217 = vmatpush1.bf16.msra.mxu0 %v2216_v26  ;;  %2248 = vmatpush1.bf16.msra.mxu1 %v2247_v28  ;;  %v2306_v26 = vpack.c.bf16 %v1835_v21, %v1830_v20  ;;  %v1838_v28 = vld [vmem:[%s2605_s19 + $0x330] sm:$0xff]  ;;  %v1879_v62 = vld [vmem:[%s2605_s19 + $0x478] sm:$0xff]  ;;  %v1880_v8 = vld [vmem:[%s2605_s19 + $0x480] sm:$0xff] }
  0x47   : > { %2218 = vmatprep.subr.bf16.mxu0 %v2560_v57  ;;  %2250 = vmatprep.subr.bf16.mxu1 %v2249_v31  ;;  %v1840_v31 = vld [vmem:[%s2605_s19 + $0x340] sm:$0xff]  ;;  %v2275_v35 = vpack.c.bf16 %v1843_v29, %v1838_v28  ;;  %v1883_v7 = vld [vmem:[%s2605_s19 + $0x498] sm:$0xff]  ;;  %v1889_v10 = vld [vmem:[%s2605_s19 + $0x4c8] sm:$0xff] }
  0x48   : > { %1822 = vmatprep.mubr.msk.f32.mxu0 %vm269_vm0, %v2593_v0  ;;  %1916 = vmatprep.mubr.msk.f32.mxu1 %vm269_vm0, %v2593_v0  ;;  %v1894_v11 = vld [vmem:[%s2605_s19 + $0x4f0] sm:$0xff]  ;;  %v2291_v12 = vpack.c.bf16 %v1883_v7, %v1878_v6  ;;  %v1893_v18 = vld [vmem:[%s2605_s19 + $0x4e8] sm:$0xff]  ;;  %v1895_v20 = vld [vmem:[%s2605_s19 + $0x4f8] sm:$0xff] }
  0x49   : > { %v1890_v19 = vld [vmem:[%s2605_s19 + $0x4d0] sm:$0xff]  ;;  %v1899_v21 = vld [vmem:[%s2605_s19 + $0x518] sm:$0xff]  ;;  %v1904_v22 = vld [vmem:[%s2605_s19 + $0x540] sm:$0xff] }
  0x4a   : > { %2220 = vmatpush1.bf16.msra.mxu0 %v2219_v36  ;;  %2252 = vmatpush1.bf16.msra.mxu1 %v2251_v37  ;;  %v2309_v36 = vpack.c.bf16 %v1845_v32, %v1840_v31  ;;  %v1848_v37 = vld [vmem:[%s2605_s19 + $0x380] sm:$0xff]  ;;  %v1898_v28 = vld [vmem:[%s2605_s19 + $0x510] sm:$0xff]  ;;  %v1903_v29 = vld [vmem:[%s2605_s19 + $0x538] sm:$0xff] }
  0x4b   : > { %2221 = vmatprep.subr.bf16.mxu0 %v2560_v57  ;;  %2254 = vmatprep.subr.bf16.mxu1 %v2253_v40  ;;  %v1850_v40 = vld [vmem:[%s2605_s19 + $0x390] sm:$0xff]  ;;  %v2279_v44 = vpack.c.bf16 %v1853_v38, %v1848_v37  ;;  %v1905_v31 = vld [vmem:[%s2605_s19 + $0x548] sm:$0xff]  ;;  %v2299_v33 = vpack.c.bf16 %v1903_v29, %v1898_v28  ;;  %v1963_v28 = vld [vmem:[%s2605_s19 + $0x6b8] sm:$0xff] }
  0x4c   : > { %v1914_v32 = vld [vmem:[%s2605_s19 + $0x590] sm:$0xff]  ;;  %v1913_v37 = vld [vmem:[%s2605_s19 + $0x588] sm:$0xff]  ;;  %v1960_v29 = vld [vmem:[%s2605_s19 + $0x6a0] sm:$0xff] }
  0x4d   : > { %v1910_v38 = vld [vmem:[%s2605_s19 + $0x570] sm:$0xff] }
  0x4e   : > { %2223 = vmatpush1.bf16.msra.mxu0 %v2222_v45  ;;  %2256 = vmatpush1.bf16.msra.mxu1 %v2255_v46  ;;  %v2312_v45 = vpack.c.bf16 %v1855_v41, %v1850_v40  ;;  %v1858_v46 = vld [vmem:[%s2605_s19 + $0x3d0] sm:$0xff]  ;;  %v1929_v40 = vld [vmem:[%s2605_s19 + $0x5a8] sm:$0xff] }
  0x4f   : > { %2224 = vmatprep.subr.bf16.mxu0 %v2560_v57  ;;  %2258 = vmatprep.subr.bf16.mxu1 %v2257_v49  ;;  %v2281_v49 = vpack.c.bf16 %v1864_v43, %v1859_v42  ;;  %v2283_v53 = vpack.c.bf16 %v1863_v47, %v1858_v46  ;;  %v1934_v41 = vld [vmem:[%s2605_s19 + $0x5d0] sm:$0xff]  ;;  %v1931_v42 = vld [vmem:[%s2605_s19 + $0x5b8] sm:$0xff]  ;;  %v1936_v43 = vld [vmem:[%s2605_s19 + $0x5e0] sm:$0xff] }
  0x50   : > { %v2332_v46 = vpack.c.bf16 %v1934_v41, %v1929_v40  ;;  %v1928_v47 = vld [vmem:[%s2605_s19 + $0x5a0] sm:$0xff]  ;;  %v1946_v58 = vld [vmem:[%s2605_s19 + $0x630] sm:$0xff]  ;;  %v1973_v40 = vld [vmem:[%s2605_s19 + $0x708] sm:$0xff] }
  0x51   : > { %v1954_v6 = vld [vmem:[%s2605_s19 + $0x670] sm:$0xff] }
  0x52   : > { %2226 = vmatpush1.bf16.msra.mxu0 %v2225_v54  ;;  %2260 = vmatpush1.bf16.msra.mxu1 %v2259_v56  ;;  %v2315_v54 = vpack.c.bf16 %v1865_v50, %v1860_v48  ;;  %v2285_v56 = vpack.c.bf16 %v1874_v52, %v1869_v51  ;;  %v1933_v48 = vld [vmem:[%s2605_s19 + $0x5c8] sm:$0xff]  ;;  %v1930_v50 = vld [vmem:[%s2605_s19 + $0x5b0] sm:$0xff]  ;;  %v1935_v51 = vld [vmem:[%s2605_s19 + $0x5d8] sm:$0xff] }
  0x53   : > { %2227 = vmatprep.subr.bf16.mxu0 %v2560_v57  ;;  %2262 = vmatprep.subr.bf16.mxu1 %v2261_v60  ;;  %v1870_v60 = vld [vmem:[%s2605_s19 + $0x430] sm:$0xff]  ;;  %v1939_v52 = vld [vmem:[%s2605_s19 + $0x5f8] sm:$0xff]  ;;  %v2370_v59 = vpack.c.bf16 %v1935_v51, %v1930_v50 }
  0x54   : > { %v1970_v41 = vld [vmem:[%s2605_s19 + $0x6f0] sm:$0xff] }
  0x56   : > { %2229 = vmatpush1.bf16.msra.mxu0 %v2228_v2  ;;  %2264 = vmatpush1.bf16.msra.mxu1 %v2263_v4  ;;  %v2318_v2 = vpack.c.bf16 %v1875_v61, %v1870_v60  ;;  %v2289_v4 = vpack.c.bf16 %v1884_v63, %v1879_v62  ;;  %v1938_v60 = vld [vmem:[%s2605_s19 + $0x5f0] sm:$0xff]  ;;  %v1943_v61 = vld [vmem:[%s2605_s19 + $0x618] sm:$0xff]  ;;  %v1940_v63 = vld [vmem:[%s2605_s19 + $0x600] sm:$0xff] }
  0x57   : > { %2230 = vmatprep.subr.bf16.mxu0 %v2560_v57  ;;  %2266 = vmatprep.subr.bf16.mxu1 %v2265_v9  ;;  %v1885_v9 = vld [vmem:[%s2605_s19 + $0x4a8] sm:$0xff]  ;;  %v2338_v7 = vpack.c.bf16 %v1943_v61, %v1938_v60  ;;  %v1994_v60 = vld [vmem:[%s2605_s19 + $0x7b0] sm:$0xff] }
  0x58   : > { %v2964_v61 = vld [vmem:[%s3409_s1 + $0x8] sm:$0xff] }
  0x5a   : > { %2232 = vmatpush1.bf16.msra.mxu0 %v2231_v13  ;;  %2268 = vmatpush1.bf16.msra.mxu1 %v2267_v15  ;;  %v2321_v13 = vpack.c.bf16 %v1885_v9, %v1880_v8  ;;  %v2293_v15 = vpack.c.bf16 %v1894_v11, %v1889_v10  ;;  %v1951_v8 = vld [vmem:[%s2605_s19 + $0x658] sm:$0xff]  ;;  %v1956_v9 = vld [vmem:[%s2605_s19 + $0x680] sm:$0xff] }
  0x5b   : > { %2270 = vmatprep.subr.bf16.mxu0 %v2269_v17  ;;  %2305 = vmatprep.subr.bf16.mxu1 %v2560_v57  ;;  %v1888_v17 = vld [vmem:[%s2605_s19 + $0x4c0] sm:$0xff] }
  0x5c   : > { %v2295_v23 = vpack.c.bf16 %v1893_v18, %v1888_v17  ;;  %v1948_v11 = vld [vmem:[%s2605_s19 + $0x640] sm:$0xff]  ;;  %v1955_v17 = vld [vmem:[%s2605_s19 + $0x678] sm:$0xff]  ;;  %v2376_v18 = vpack.c.bf16 %v1956_v9, %v1951_v8  ;;  %v1993_v9 = vld [vmem:[%s2605_s19 + $0x7a8] sm:$0xff] }
  0x5d   : > { %525 = vmatmul.mubr.f32.vlgmr.msra.gmra.mrb[8].mxu0 %v2690_v55  ;;  %701 = vmatmul.mubr.f32.vlgmr.msra.gmra.mrb[8].mxu1 %v2690_v55 }
  0x5e   : > { %2272 = vmatpush1.bf16.msra.mxu0 %v2271_v24  ;;  %2307 = vmatpush1.bf16.msra.mxu1 %v2306_v26  ;;  %v2324_v24 = vpack.c.bf16 %v1895_v20, %v1890_v19  ;;  %v2297_v26 = vpack.c.bf16 %v1904_v22, %v1899_v21  ;;  %v1959_v19 = vld [vmem:[%s2605_s19 + $0x698] sm:$0xff]  ;;  %v1964_v20 = vld [vmem:[%s2605_s19 + $0x6c0] sm:$0xff]  ;;  %v1961_v22 = vld [vmem:[%s2605_s19 + $0x6a8] sm:$0xff] }
  0x5f   : > { %1917 = vmatprep.mubr.msk.f32.mxu1 %vm269_vm0, %v2703_v3  ;;  %2274 = vmatprep.subr.bf16.mxu0 %v2273_v30  ;;  %v1900_v30 = vld [vmem:[%s2605_s19 + $0x520] sm:$0xff] }
  0x60   : > { %2308 = vmatprep.subr.bf16.mxu1 %v2560_v57  ;;  %1823 = vmatprep.mubr.msk.f32.mxu0 %vm269_vm0, %v2703_v3  ;;  %v2327_v34 = vpack.c.bf16 %v1905_v31, %v1900_v30  ;;  %v2344_v30 = vpack.c.bf16 %v1964_v20, %v1959_v19  ;;  %v1965_v31 = vld [vmem:[%s2605_s19 + $0x6c8] sm:$0xff]  ;;  %v2006_v19 = vld [vmem:[%s2605_s19 + $0x810] sm:$0xff] }
  0x61   : > { %707 = vmatmul.mubr.f32.gmra.mrb[10].mxu1 %v2709_v5  ;;  %530 = vmatmul.mubr.f32.gmra.mrb[10].mxu0 %v2709_v5 }
  0x62   : > { %2276 = vmatpush1.bf16.msra.mxu0 %v2275_v35  ;;  %2310 = vmatpush1.bf16.msra.mxu1 %v2309_v36  ;;  %v1908_v36 = vld [vmem:[%s2605_s19 + $0x560] sm:$0xff] }
  0x63   : > { %1918 = vmatprep.mubr.msk.f32.mxu1 %vm269_vm0, %v2726_v14  ;;  %2278 = vmatprep.subr.bf16.mxu0 %v2277_v39  ;;  %v1915_v39 = vld [vmem:[%s2605_s19 + $0x598] sm:$0xff] }
  0x64   : > { %2311 = vmatprep.subr.bf16.mxu1 %v2560_v57  ;;  %1824 = vmatprep.mubr.msk.f32.mxu0 %vm269_vm0, %v2726_v14 }
  0x65   : > { %713 = vmatmul.mubr.f32.gmra.mrb[12].mxu1 %v2732_v16  ;;  %535 = vmatmul.mubr.f32.gmra.mrb[12].mxu0 %v2732_v16 }
  0x66   : > { %2280 = vmatpush1.bf16.msra.mxu0 %v2279_v44  ;;  %2313 = vmatpush1.bf16.msra.mxu1 %v2312_v45  ;;  %v2303_v44 = vpack.c.bf16 %v1913_v37, %v1908_v36  ;;  %v2330_v45 = vpack.c.bf16 %v1915_v39, %v1910_v38  ;;  %v2382_v37 = vpack.c.bf16 %v1965_v31, %v1960_v29  ;;  %v1968_v39 = vld [vmem:[%s2605_s19 + $0x6e0] sm:$0xff]  ;;  %v2009_v31 = vld [vmem:[%s2605_s19 + $0x828] sm:$0xff] }
  0x67   : > { %1919 = vmatprep.mubr.msk.f32.mxu1 %vm269_vm0, %v2749_v25  ;;  %2282 = vmatprep.subr.bf16.mxu0 %v2281_v49  ;;  %v2368_v49 = vpack.c.bf16 %v1936_v43, %v1931_v42  ;;  %v1975_v43 = vld [vmem:[%s2605_s19 + $0x718] sm:$0xff] }
  0x68   : > { %2314 = vmatprep.subr.bf16.mxu1 %v2560_v57  ;;  %1825 = vmatprep.mubr.msk.f32.mxu0 %vm269_vm0, %v2749_v25  ;;  %v2386_v50 = vpack.c.bf16 %v1975_v43, %v1970_v41  ;;  %v2015_v41 = vld [vmem:[%s2605_s19 + $0x858] sm:$0xff]  ;;  %v2036_v43 = vld [vmem:[%s2605_s19 + $0x8a0] sm:$0xff] }
  0x69   : > { %719 = vmatmul.mubr.f32.gmra.mrb[14].mxu1 %v2755_v27  ;;  %540 = vmatmul.mubr.f32.gmra.mrb[14].mxu0 %v2755_v27 }
  0x6a   : > { %2284 = vmatpush1.bf16.msra.mxu0 %v2283_v53  ;;  %2316 = vmatpush1.bf16.msra.mxu1 %v2315_v54  ;;  %v1944_v53 = vld [vmem:[%s2605_s19 + $0x620] sm:$0xff]  ;;  %v2334_v54 = vpack.c.bf16 %v1933_v48, %v1928_v47  ;;  %v1986_v47 = vld [vmem:[%s2605_s19 + $0x770] sm:$0xff]  ;;  %v2350_v48 = vpack.c.bf16 %v1973_v40, %v1968_v39 }
  0x6b   : > { %2286 = vmatprep.subr.bf16.mxu0 %v2285_v56  ;;  %2317 = vmatprep.subr.bf16.mxu1 %v2560_v57  ;;  %v1941_v56 = vld [vmem:[%s2605_s19 + $0x608] sm:$0xff]  ;;  %v2336_v62 = vpack.c.bf16 %v1944_v53, %v1939_v52  ;;  %v1983_v52 = vld [vmem:[%s2605_s19 + $0x758] sm:$0xff]  ;;  %v1980_v53 = vld [vmem:[%s2605_s19 + $0x740] sm:$0xff] }
  0x6c   : > { %1924 = vmatprep.mubr.msk.f32.mxu1 %vm269_vm0, %v2593_v0  ;;  %1920 = vmatprep.mubr.msk.f32.mxu0 %vm269_vm0, %v2593_v0  ;;  %v1909_v0 = vld [vmem:[%s2605_s19 + $0x568] sm:$0xff]  ;;  %v2010_v40 = vld [vmem:[%s2605_s19 + $0x830] sm:$0xff] }
  0x6d   : > { %v2301_v35 = vpack.c.bf16 %v1914_v32, %v1909_v0  ;;  %v1969_v0 = vld [vmem:[%s2605_s19 + $0x6e8] sm:$0xff]  ;;  %v1974_v32 = vld [vmem:[%s2605_s19 + $0x710] sm:$0xff] }
  0x6e   : > { %2288 = vmatpush1.bf16.msra.mxu0 %v2287_v1  ;;  %2319 = vmatpush1.bf16.msra.mxu1 %v2318_v2  ;;  %v1945_v1 = vld [vmem:[%s2605_s19 + $0x628] sm:$0xff]  ;;  %v2372_v2 = vpack.c.bf16 %v1946_v58, %v1941_v56  ;;  %v2348_v38 = vpack.c.bf16 %v1974_v32, %v1969_v0  ;;  %v2014_v0 = vld [vmem:[%s2605_s19 + $0x850] sm:$0xff]  ;;  %v2011_v32 = vld [vmem:[%s2605_s19 + $0x838] sm:$0xff] }
  0x6f   : > { %2290 = vmatprep.subr.bf16.mxu0 %v2289_v4  ;;  %2320 = vmatprep.subr.bf16.mxu1 %v2560_v57  ;;  %v1949_v4 = vld [vmem:[%s2605_s19 + $0x648] sm:$0xff]  ;;  %v2374_v10 = vpack.c.bf16 %v1945_v1, %v1940_v63  ;;  %v1996_v63 = vld [vmem:[%s2605_s19 + $0x7c0] sm:$0xff]  ;;  %v2561_v1 = vmov 0  }
  0x70   : > { %v1985_v58 = vld [vmem:[%s2605_s19 + $0x768] sm:$0xff]  ;;  %2542 = vset.pattern.permute.xlu0 %v2561_v1  ;;  %2543 = vset.pattern.permute.xlu1 %v2561_v1  ;;  %v2051_v1 = vld [vmem:[%s2605_s19 + $0x918] sm:$0xff] }
  0x72   : > { %2292 = vmatpush1.bf16.msra.mxu0 %v2291_v12  ;;  %2322 = vmatpush1.bf16.msra.mxu1 %v2321_v13  ;;  %v1953_v12 = vld [vmem:[%s2605_s19 + $0x668] sm:$0xff]  ;;  %v2340_v13 = vpack.c.bf16 %v1954_v6, %v1949_v4  ;;  %v1988_v4 = vld [vmem:[%s2605_s19 + $0x780] sm:$0xff]  ;;  %v1669_v6 = vld [vmem:[%s3410_s2 + $0x10] sm:$0xff] }
  0x73   : > { %2294 = vmatprep.subr.bf16.mxu0 %v2293_v15  ;;  %2323 = vmatprep.subr.bf16.mxu1 %v2560_v57  ;;  %v1950_v15 = vld [vmem:[%s2605_s19 + $0x650] sm:$0xff]  ;;  %v2342_v21 = vpack.c.bf16 %v1953_v12, %v1948_v11  ;;  %v1668_v11 = vld [vmem:[%s3410_s2 + $0x8] sm:$0xff]  ;;  %v2358_v20 = vpack.c.bf16 %v1993_v9, %v1988_v4 }
  0x74   : > { %1683 = vperm.xlu1 %2543, %v1669_v6   ;;  %v1952_v6 = vld [vmem:[%s2605_s19 + $0x660] sm:$0xff] }
  0x76   : > { %2296 = vmatpush1.bf16.msra.mxu0 %v2295_v23  ;;  %2325 = vmatpush1.bf16.msra.mxu1 %v2324_v24  ;;  %v1966_v23 = vld [vmem:[%s2605_s19 + $0x6d0] sm:$0xff]  ;;  %v2378_v24 = vpack.c.bf16 %v1955_v17, %v1950_v15  ;;  %v1999_v15 = vld [vmem:[%s2605_s19 + $0x7d8] sm:$0xff]  ;;  %v2004_v17 = vld [vmem:[%s2605_s19 + $0x800] sm:$0xff] }
  0x77   : > { %2298 = vmatprep.subr.bf16.mxu0 %v2297_v26  ;;  %2326 = vmatprep.subr.bf16.mxu1 %v2560_v57  ;;  %v1958_v26 = vld [vmem:[%s2605_s19 + $0x690] sm:$0xff] }
  0x78   : > { %v2346_v36 = vpack.c.bf16 %v1963_v28, %v1958_v26  ;;  %v2003_v26 = vld [vmem:[%s2605_s19 + $0x7f8] sm:$0xff]  ;;  %v2000_v28 = vld [vmem:[%s2605_s19 + $0x7e0] sm:$0xff] }
  0x7a   : > { %2300 = vmatpush1.bf16.msra.mxu0 %v2299_v33  ;;  %2328 = vmatpush1.bf16.msra.mxu1 %v2327_v34  ;;  %v2380_v33 = vpack.c.bf16 %v1966_v23, %v1961_v22  ;;  %v1971_v34 = vld [vmem:[%s2605_s19 + $0x6f8] sm:$0xff]  ;;  %v2360_v23 = vpack.c.bf16 %v2004_v17, %v1999_v15  ;;  %v2065_v17 = vld [vmem:[%s2605_s19 + $0x988] sm:$0xff] }
  0x7b   : > { %2302 = vmatprep.subr.bf16.mxu0 %v2301_v35  ;;  %2329 = vmatprep.subr.bf16.mxu1 %v2560_v57  ;;  %v1976_v35 = vld [vmem:[%s2605_s19 + $0x720] sm:$0xff]  ;;  %v1967_v15 = vld [vmem:[%s2605_s19 + $0x6d8] sm:$0xff] }
  0x7c   : > { %v2384_v42 = vpack.c.bf16 %v1976_v35, %v1971_v34 }
  0x7e   : > { %2304 = vmatpush1.bf16.msra.mxu0 %v2303_v44  ;;  %2331 = vmatpush1.bf16.msra.mxu1 %v2330_v45  ;;  %v1979_v44 = vld [vmem:[%s2605_s19 + $0x738] sm:$0xff]  ;;  %v1984_v45 = vld [vmem:[%s2605_s19 + $0x760] sm:$0xff] }
  0x7f   : > { %2333 = vmatprep.subr.bf16.mxu0 %v2332_v46  ;;  %2369 = vmatprep.subr.bf16.mxu1 %v2368_v49  ;;  %v1981_v46 = vld [vmem:[%s2605_s19 + $0x748] sm:$0xff]  ;;  %v1978_v49 = vld [vmem:[%s2605_s19 + $0x730] sm:$0xff]  ;;  %v2352_v51 = vpack.c.bf16 %v1984_v45, %v1979_v44  ;;  %v2402_v45 = vpack.c.bf16 %v2015_v41, %v2010_v40 }
  0x80   : > { %v2388_v56 = vpack.c.bf16 %v1986_v47, %v1981_v46  ;;  %v1932_v46 = vld [vmem:[%s2605_s19 + $0x5c0] sm:$0xff]  ;;  %v1937_v47 = vld [vmem:[%s2605_s19 + $0x5e8] sm:$0xff]  ;;  %v2090_v41 = vld [vmem:[%s2605_s19 + $0xa50] sm:$0xff] }
  0x81   : > { %790 = vmatmul.mubr.f32.vlgmr.msra.gmra.mrb[16].mxu0 %v2690_v55  ;;  %879 = vmatmul.mubr.f32.vlgmr.msra.gmra.mrb[16].mxu1 %v2690_v55 }
  0x82   : > { %2335 = vmatpush1.bf16.msra.mxu0 %v2334_v54  ;;  %2371 = vmatpush1.bf16.msra.mxu1 %v2370_v59  ;;  %v1667_v54 = vld [vmem:[%s3410_s2] sm:$0xff]  ;;  %v1989_v59 = vld [vmem:[%s2605_s19 + $0x788] sm:$0xff] }
  0x83   : > { %1921 = vmatprep.mubr.msk.f32.mxu0 %vm269_vm0, %v2703_v3  ;;  %1925 = vmatprep.mubr.msk.f32.mxu1 %vm269_vm0, %v2703_v3  ;;  %v2356_v8 = vpack.c.bf16 %v1994_v60, %v1989_v59  ;;  %v2040_v59 = vld [vmem:[%s2605_s19 + $0x8c0] sm:$0xff]  ;;  %v2045_v60 = vld [vmem:[%s2605_s19 + $0x8e8] sm:$0xff] }
  0x84   : > { %2337 = vmatprep.subr.bf16.mxu0 %v2336_v62  ;;  %2373 = vmatprep.subr.bf16.mxu1 %v2372_v2  ;;  %v1991_v62 = vld [vmem:[%s2605_s19 + $0x798] sm:$0xff]  ;;  %v2354_v2 = vpack.c.bf16 %v1983_v52, %v1978_v49  ;;  %v2030_v49 = vld [vmem:[%s2605_s19 + $0x870] sm:$0xff]  ;;  %v2041_v52 = vld [vmem:[%s2605_s19 + $0x8c8] sm:$0xff]  ;;  %v2437_v4 = vpack.c.bf16 %v2045_v60, %v2040_v59 }
  0x85   : > { %796 = vmatmul.mubr.f32.gmra.mrb[18].mxu0 %v2709_v5  ;;  %884 = vmatmul.mubr.f32.gmra.mrb[18].mxu1 %v2709_v5  ;;  %v2392_v12 = vpack.c.bf16 %v1996_v63, %v1991_v62  ;;  %v2017_v59 = vld [vmem:[%s2605_s19 + $0x868] sm:$0xff]  ;;  %v2110_v60 = vld [vmem:[%s2605_s19 + $0xaf0] sm:$0xff] }
  0x86   : > { %2339 = vmatpush1.bf16.msra.mxu0 %v2338_v7  ;;  %2375 = vmatpush1.bf16.msra.mxu1 %v2374_v10  ;;  %v2390_v7 = vpack.c.bf16 %v1985_v58, %v1980_v53  ;;  %v1990_v10 = vld [vmem:[%s2605_s19 + $0x790] sm:$0xff]  ;;  %v1947_v58 = vld [vmem:[%s2605_s19 + $0x638] sm:$0xff] }
  0x87   : > { %1922 = vmatprep.mubr.msk.f32.mxu0 %vm269_vm0, %v2726_v14  ;;  %1926 = vmatprep.mubr.msk.f32.mxu1 %vm269_vm0, %v2726_v14  ;;  %v2046_v53 = vld [vmem:[%s2605_s19 + $0x8f0] sm:$0xff] }
  0x88   : > { %2341 = vmatprep.subr.bf16.mxu0 %v2340_v13  ;;  %2377 = vmatprep.subr.bf16.mxu1 %v2376_v18  ;;  %v1995_v13 = vld [vmem:[%s2605_s19 + $0x7b8] sm:$0xff]  ;;  %v2001_v18 = vld [vmem:[%s2605_s19 + $0x7e8] sm:$0xff]  ;;  %v2435_v62 = vpack.c.bf16 %v2046_v53, %v2041_v52  ;;  %v2116_v53 = vld [vmem:[%s2605_s19 + $0xb20] sm:$0xff] }
  0x89   : > { %802 = vmatmul.mubr.f32.gmra.mrb[20].mxu0 %v2732_v16  ;;  %889 = vmatmul.mubr.f32.gmra.mrb[20].mxu1 %v2732_v16  ;;  %v2394_v22 = vpack.c.bf16 %v1995_v13, %v1990_v10  ;;  %v2396_v29 = vpack.c.bf16 %v2006_v19, %v2001_v18  ;;  %v1962_v13 = vld [vmem:[%s2605_s19 + $0x6b0] sm:$0xff]  ;;  %v2071_v19 = vld [vmem:[%s2605_s19 + $0x9b8] sm:$0xff] }
  0x8a   : > { %2343 = vmatpush1.bf16.msra.mxu0 %v2342_v21  ;;  %2379 = vmatpush1.bf16.msra.mxu1 %v2378_v24  ;;  %v1670_v21 = vld [vmem:[%s3410_s2 + $0x18] sm:$0xff]  ;;  %v1998_v24 = vld [vmem:[%s2605_s19 + $0x7d0] sm:$0xff] }
  0x8b   : > { %1923 = vmatprep.mubr.msk.f32.mxu0 %vm269_vm0, %v2749_v25  ;;  %1927 = vmatprep.mubr.msk.f32.mxu1 %vm269_vm0, %v2749_v25  ;;  %v2362_v34 = vpack.c.bf16 %v2003_v26, %v1998_v24  ;;  %v2070_v26 = vld [vmem:[%s2605_s19 + $0x9b0] sm:$0xff]  ;;  %v2111_v52 = vld [vmem:[%s2605_s19 + $0xaf8] sm:$0xff] }
  0x8c   : > { %2345 = vmatprep.subr.bf16.mxu0 %v2344_v30  ;;  %2381 = vmatprep.subr.bf16.mxu1 %v2380_v33  ;;  %v2005_v30 = vld [vmem:[%s2605_s19 + $0x808] sm:$0xff]  ;;  %v2016_v33 = vld [vmem:[%s2605_s19 + $0x860] sm:$0xff] }
  0x8d   : > { %808 = vmatmul.mubr.f32.gmra.mrb[22].mxu0 %v2755_v27  ;;  %894 = vmatmul.mubr.f32.gmra.mrb[22].mxu1 %v2755_v27  ;;  %v2398_v35 = vpack.c.bf16 %v2005_v30, %v2000_v28  ;;  %v2400_v39 = vpack.c.bf16 %v2016_v33, %v2011_v32  ;;  %v2081_v28 = vld [vmem:[%s2605_s19 + $0xa08] sm:$0xff]  ;;  %v2080_v33 = vld [vmem:[%s2605_s19 + $0xa00] sm:$0xff] }
  0x8e   : > { %2347 = vmatpush1.bf16.msra.mxu0 %v2346_v36  ;;  %2383 = vmatpush1.bf16.msra.mxu1 %v2382_v37  ;;  %v2364_v36 = vpack.c.bf16 %v2014_v0, %v2009_v31  ;;  %v2008_v37 = vld [vmem:[%s2605_s19 + $0x820] sm:$0xff]  ;;  %v1982_v31 = vld [vmem:[%s2605_s19 + $0x750] sm:$0xff]  ;;  %v1987_v0 = vld [vmem:[%s2605_s19 + $0x778] sm:$0xff] }
  0x8f   : > { %2349 = vmatprep.subr.bf16.mxu0 %v2348_v38  ;;  %2385 = vmatprep.subr.bf16.mxu1 %v2384_v42  ;;  %v2013_v38 = vld [vmem:[%s2605_s19 + $0x848] sm:$0xff]  ;;  %v2031_v42 = vld [vmem:[%s2605_s19 + $0x878] sm:$0xff] }
  0x90   : > { %2018 = vmatprep.mubr.msk.f32.mxu0 %vm269_vm0, %v2964_v61  ;;  %2022 = vmatprep.mubr.msk.f32.mxu1 %vm269_vm0, %v2964_v61  ;;  %v2366_v44 = vpack.c.bf16 %v2013_v38, %v2008_v37  ;;  %v1992_v38 = vld [vmem:[%s2605_s19 + $0x7a0] sm:$0xff] }
  0x91   : > { %1673 = vperm.xlu0 %2542, %v1667_v54   ;;  %1688 = vperm.xlu1 %2543, %v1670_v21   ;;  %v2414_v21 = vpack.c.bf16 %v1967_v15, %v1962_v13  ;;  %v2042_v15 = vld [vmem:[%s2605_s19 + $0x8d0] sm:$0xff] }
  0x92   : > { %2351 = vmatpush1.bf16.msra.mxu0 %v2350_v48  ;;  %2387 = vmatpush1.bf16.msra.mxu1 %v2386_v50  ;;  %v2431_v48 = vpack.c.bf16 %v2036_v43, %v2031_v42  ;;  %v2035_v50 = vld [vmem:[%s2605_s19 + $0x898] sm:$0xff]  ;;  %v2101_v43 = vld [vmem:[%s2605_s19 + $0xaa8] sm:$0xff] }
  0x93   : > { %2353 = vmatprep.subr.bf16.mxu0 %v2352_v51  ;;  %2389 = vmatprep.subr.bf16.mxu1 %v2388_v56  ;;  %v2405_v51 = vpack.c.bf16 %v1937_v47, %v1932_v46  ;;  %v2433_v54 = vpack.c.bf16 %v2035_v50, %v2030_v49  ;;  %v1942_v56 = vld [vmem:[%s2605_s19 + $0x610] sm:$0xff]  ;;  %v2095_v42 = vld [vmem:[%s2605_s19 + $0xa78] sm:$0xff]  ;;  %v2100_v50 = vld [vmem:[%s2605_s19 + $0xaa0] sm:$0xff] }
  0x94   : > { %v2408_v63 = vpack.c.bf16 %v1947_v58, %v1942_v56  ;;  %v2457_v46 = vpack.c.bf16 %v2095_v42, %v2090_v41  ;;  %v2002_v47 = vld [vmem:[%s2605_s19 + $0x7f0] sm:$0xff]  ;;  %v2012_v58 = vld [vmem:[%s2605_s19 + $0x840] sm:$0xff] }
  0x95   : > { %1678 = vperm.xlu0 %2542, %v1668_v11   ;;  %v2061_v11 = vld [vmem:[%s2605_s19 + $0x968] sm:$0xff]  ;;  %v3151_v41 = vld [vmem:[%s3409_s1 + $0x20] sm:$0xff] }
  0x96   : > { %2355 = vmatpush1.bf16.msra.mxu0 %v2354_v2  ;;  %2391 = vmatpush1.bf16.msra.mxu1 %v2390_v7  ;;  %v2056_v2 = vld [vmem:[%s2605_s19 + $0x940] sm:$0xff]  ;;  %v1957_v7 = vld [vmem:[%s2605_s19 + $0x688] sm:$0xff] }
  0x97   : > { %2357 = vmatprep.subr.bf16.mxu0 %v2356_v8  ;;  %2393 = vmatprep.subr.bf16.mxu1 %v2392_v12  ;;  %v2055_v8 = vld [vmem:[%s2605_s19 + $0x938] sm:$0xff]  ;;  %v2439_v9 = vpack.c.bf16 %v2056_v2, %v2051_v1  ;;  %v2411_v10 = vpack.c.bf16 %v1957_v7, %v1952_v6  ;;  %v2066_v12 = vld [vmem:[%s2605_s19 + $0x990] sm:$0xff]  ;;  %v2033_v1 = vld [vmem:[%s2605_s19 + $0x888] sm:$0xff] }
  0x98   : > { %v2443_v18 = vpack.c.bf16 %v2066_v12, %v2061_v11  ;;  %v2038_v2 = vld [vmem:[%s2605_s19 + $0x8b0] sm:$0xff]  ;;  %v2043_v11 = vld [vmem:[%s2605_s19 + $0x8d8] sm:$0xff]  ;;  %v2048_v12 = vld [vmem:[%s2605_s19 + $0x900] sm:$0xff] }
  0x99   : > { %v2467_v7 = vpack.c.bf16 %v2038_v2, %v2033_v1  ;;  %v2098_v1 = vld [vmem:[%s2605_s19 + $0xa90] sm:$0xff] }
  0x9a   : > { %2359 = vmatpush1.bf16.msra.mxu0 %v2358_v20  ;;  %2395 = vmatpush1.bf16.msra.mxu1 %v2394_v22  ;;  %v2076_v20 = vld [vmem:[%s2605_s19 + $0x9e0] sm:$0xff] }
  0x9b   : > { %2361 = vmatprep.subr.bf16.mxu0 %v2360_v23  ;;  %2397 = vmatprep.subr.bf16.mxu1 %v2396_v29  ;;  %v1972_v22 = vld [vmem:[%s2605_s19 + $0x700] sm:$0xff]  ;;  %v1977_v23 = vld [vmem:[%s2605_s19 + $0x728] sm:$0xff]  ;;  %v2447_v24 = vpack.c.bf16 %v2076_v20, %v2071_v19  ;;  %v2086_v29 = vld [vmem:[%s2605_s19 + $0xa30] sm:$0xff] }
  0x9c   : > { %v2417_v30 = vpack.c.bf16 %v1977_v23, %v1972_v22  ;;  %v2451_v32 = vpack.c.bf16 %v2086_v29, %v2081_v28  ;;  %v2049_v19 = vld [vmem:[%s2605_s19 + $0x908] sm:$0xff]  ;;  %v3104_v20 = vld [vmem:[%s3409_s1] sm:$0xff]  ;;  %v3113_v23 = vld [vmem:[%s3409_s1 + $0x18] sm:$0xff] }
  0x9d   : > { %v2054_v29 = vld [vmem:[%s2605_s19 + $0x930] sm:$0xff] }
  0x9e   : > { %2363 = vmatpush1.bf16.msra.mxu0 %v2362_v34  ;;  %2399 = vmatpush1.bf16.msra.mxu1 %v2398_v35  ;;  %v2085_v34 = vld [vmem:[%s2605_s19 + $0xa28] sm:$0xff]  ;;  %v2096_v35 = vld [vmem:[%s2605_s19 + $0xa80] sm:$0xff] }
  0x9f   : > { %2365 = vmatprep.subr.bf16.mxu0 %v2364_v36  ;;  %2401 = vmatprep.subr.bf16.mxu1 %v2400_v39  ;;  %v2420_v36 = vpack.c.bf16 %v1987_v0, %v1982_v31  ;;  %v2453_v37 = vpack.c.bf16 %v2085_v34, %v2080_v33  ;;  %v1997_v39 = vld [vmem:[%s2605_s19 + $0x7c8] sm:$0xff]  ;;  %v2063_v31 = vld [vmem:[%s2605_s19 + $0x978] sm:$0xff]  ;;  %v2068_v0 = vld [vmem:[%s2605_s19 + $0x9a0] sm:$0xff] }
  0xa0   : > { %v3136_v33 = vld [vmem:[%s3409_s1 + $0x28] sm:$0xff] }
  0xa2   : > { %2367 = vmatpush1.bf16.msra.mxu0 %v2366_v44  ;;  %2403 = vmatpush1.bf16.msra.mxu1 %v2402_v45  ;;  %v2106_v44 = vld [vmem:[%s2605_s19 + $0xad0] sm:$0xff]  ;;  %v2423_v45 = vpack.c.bf16 %v1997_v39, %v1992_v38  ;;  %v2069_v38 = vld [vmem:[%s2605_s19 + $0x9a8] sm:$0xff] }
  0xa3   : > { %2404 = vmatprep.subr.bf16.mxu0 %v2560_v57  ;;  %2432 = vmatprep.subr.bf16.mxu1 %v2431_v48  ;;  %v2007_v48 = vld [vmem:[%s2605_s19 + $0x818] sm:$0xff]  ;;  %v2459_v49 = vpack.c.bf16 %v2106_v44, %v2101_v43  ;;  %v2073_v39 = vld [vmem:[%s2605_s19 + $0x9c8] sm:$0xff] }
  0xa4   : > { %v3159_v43 = vld [vmem:[%s3409_s1 + $0x38] sm:$0xff] }
  0xa5   : > { %1075 = vmatmul.mubr.f32.vlgmr.msra.gmra.mrb[24].mxu0 %v2690_v55  ;;  %1164 = vmatmul.mubr.f32.vlgmr.msra.gmra.mrb[24].mxu1 %v2690_v55  ;;  %v2050_v55 = vld [vmem:[%s2605_s19 + $0x910] sm:$0xff] }
  0xa6   : > { %2406 = vmatpush1.bf16.msra.mxu0 %v2405_v51  ;;  %2434 = vmatpush1.bf16.msra.mxu1 %v2433_v54  ;;  %v2105_v51 = vld [vmem:[%s2605_s19 + $0xac8] sm:$0xff]  ;;  %v2426_v54 = vpack.c.bf16 %v2007_v48, %v2002_v47  ;;  %v2074_v48 = vld [vmem:[%s2605_s19 + $0x9d0] sm:$0xff] }
  0xa7   : > { %2019 = vmatprep.mubr.msk.f32.mxu0 %vm269_vm0, %v2703_v3  ;;  %2023 = vmatprep.mubr.msk.f32.mxu1 %vm269_vm0, %v2703_v3  ;;  %v2441_v3 = vpack.c.bf16 %v2055_v8, %v2050_v55  ;;  %v2461_v56 = vpack.c.bf16 %v2105_v51, %v2100_v50  ;;  %v2032_v55 = vld [vmem:[%s2605_s19 + $0x880] sm:$0xff]  ;;  %v2037_v8 = vld [vmem:[%s2605_s19 + $0x8a8] sm:$0xff]  ;;  %v2083_v50 = vld [vmem:[%s2605_s19 + $0xa18] sm:$0xff] }
  0xa8   : > { %2407 = vmatprep.subr.bf16.mxu0 %v2560_v57  ;;  %2436 = vmatprep.subr.bf16.mxu1 %v2435_v62  ;;  %v2463_v62 = vpack.c.bf16 %v2116_v53, %v2111_v52  ;;  %v2077_v47 = vld [vmem:[%s2605_s19 + $0x9e8] sm:$0xff]  ;;  %v2088_v51 = vld [vmem:[%s2605_s19 + $0xa40] sm:$0xff]  ;;  %v3174_v52 = vld [vmem:[%s3409_s1 + $0x30] sm:$0xff] }
  0xa9   : > { %1081 = vmatmul.mubr.f32.gmra.mrb[26].mxu0 %v2709_v5  ;;  %1170 = vmatmul.mubr.f32.gmra.mrb[26].mxu1 %v2709_v5  ;;  %v2060_v5 = vld [vmem:[%s2605_s19 + $0x960] sm:$0xff] }
  0xaa   : > { %2409 = vmatpush1.bf16.msra.mxu0 %v2408_v63  ;;  %2438 = vmatpush1.bf16.msra.mxu1 %v2437_v4  ;;  %v2115_v63 = vld [vmem:[%s2605_s19 + $0xb18] sm:$0xff]  ;;  %v2429_v4 = vpack.c.bf16 %v2017_v59, %v2012_v58  ;;  %v2082_v58 = vld [vmem:[%s2605_s19 + $0xa10] sm:$0xff] }
  0xab   : > { %2020 = vmatprep.mubr.msk.f32.mxu0 %vm269_vm0, %v2726_v14  ;;  %2024 = vmatprep.mubr.msk.f32.mxu1 %vm269_vm0, %v2726_v14  ;;  %v2445_v14 = vpack.c.bf16 %v2065_v17, %v2060_v5  ;;  %v2465_v6 = vpack.c.bf16 %v2115_v63, %v2110_v60  ;;  %v2047_v5 = vld [vmem:[%s2605_s19 + $0x8f8] sm:$0xff]  ;;  %v2471_v17 = vpack.c.bf16 %v2048_v12, %v2043_v11  ;;  %v2084_v60 = vld [vmem:[%s2605_s19 + $0xa20] sm:$0xff]  ;;  %v2093_v63 = vld [vmem:[%s2605_s19 + $0xa68] sm:$0xff] }
  0xac   : > { %2410 = vmatprep.subr.bf16.mxu0 %v2560_v57  ;;  %2440 = vmatprep.subr.bf16.mxu1 %v2439_v9  ;;  %v2034_v9 = vld [vmem:[%s2605_s19 + $0x890] sm:$0xff]  ;;  %v2473_v22 = vpack.c.bf16 %v2047_v5, %v2042_v15  ;;  %v2087_v59 = vld [vmem:[%s2605_s19 + $0xa38] sm:$0xff]  ;;  %v2104_v5 = vld [vmem:[%s2605_s19 + $0xac0] sm:$0xff] }
  0xad   : > { %1087 = vmatmul.mubr.f32.gmra.mrb[28].mxu0 %v2732_v16  ;;  %1176 = vmatmul.mubr.f32.gmra.mrb[28].mxu1 %v2732_v16  ;;  %v2075_v16 = vld [vmem:[%s2605_s19 + $0x9d8] sm:$0xff]  ;;  %v2489_v2 = vpack.c.bf16 %v2087_v59, %v2082_v58 }
  0xae   : > { %2412 = vmatpush1.bf16.msra.mxu0 %v2411_v10  ;;  %2442 = vmatpush1.bf16.msra.mxu1 %v2441_v3  ;;  %v2039_v10 = vld [vmem:[%s2605_s19 + $0x8b8] sm:$0xff]  ;;  %v2469_v3 = vpack.c.bf16 %v2037_v8, %v2032_v55  ;;  %v2097_v55 = vld [vmem:[%s2605_s19 + $0xa88] sm:$0xff]  ;;  %v2094_v8 = vld [vmem:[%s2605_s19 + $0xa70] sm:$0xff] }
  0xaf   : > { %2021 = vmatprep.mubr.msk.f32.mxu0 %vm269_vm0, %v2749_v25  ;;  %2025 = vmatprep.mubr.msk.f32.mxu1 %vm269_vm0, %v2749_v25  ;;  %v2449_v25 = vpack.c.bf16 %v2075_v16, %v2070_v26  ;;  %v2504_v13 = vpack.c.bf16 %v2039_v10, %v2034_v9  ;;  %v2052_v26 = vld [vmem:[%s2605_s19 + $0x920] sm:$0xff]  ;;  %v2057_v16 = vld [vmem:[%s2605_s19 + $0x948] sm:$0xff]  ;;  %v2099_v9 = vld [vmem:[%s2605_s19 + $0xa98] sm:$0xff] }
  0xb0   : > { %2413 = vmatprep.subr.bf16.mxu0 %v2560_v57  ;;  %2444 = vmatprep.subr.bf16.mxu1 %v2443_v18  ;;  %v2044_v18 = vld [vmem:[%s2605_s19 + $0x8e0] sm:$0xff]  ;;  %v2103_v10 = vld [vmem:[%s2605_s19 + $0xab8] sm:$0xff]  ;;  %v2522_v12 = vpack.c.bf16 %v2099_v9, %v2094_v8 }
  0xb1   : > { %1093 = vmatmul.mubr.f32.gmra.mrb[30].mxu0 %v2755_v27  ;;  %1182 = vmatmul.mubr.f32.gmra.mrb[30].mxu1 %v2755_v27  ;;  %v2091_v27 = vld [vmem:[%s2605_s19 + $0xa58] sm:$0xff] }
  0xb2   : > { %2415 = vmatpush1.bf16.msra.mxu0 %v2414_v21  ;;  %2446 = vmatpush1.bf16.msra.mxu1 %v2445_v14  ;;  %v2455_v40 = vpack.c.bf16 %v2096_v35, %v2091_v27  ;;  %v2053_v21 = vld [vmem:[%s2605_s19 + $0x928] sm:$0xff]  ;;  %v2058_v14 = vld [vmem:[%s2605_s19 + $0x950] sm:$0xff]  ;;  %v2067_v35 = vld [vmem:[%s2605_s19 + $0x998] sm:$0xff] }
  0xb3   : > { %2416 = vmatprep.subr.bf16.mxu0 %v2560_v57  ;;  %2448 = vmatprep.subr.bf16.mxu1 %v2447_v24  ;;  %v2507_v24 = vpack.c.bf16 %v2049_v19, %v2044_v18  ;;  %v2475_v28 = vpack.c.bf16 %v2058_v14, %v2053_v21  ;;  %v2062_v27 = vld [vmem:[%s2605_s19 + $0x970] sm:$0xff]  ;;  %v2107_v15 = vld [vmem:[%s2605_s19 + $0xad8] sm:$0xff]  ;;  %v2113_v18 = vld [vmem:[%s2605_s19 + $0xb08] sm:$0xff] }
  0xb4   : > { %2026 = vmatprep.mubr.msk.f32.mxu0 %vm269_vm0, %v2964_v61  ;;  %2120 = vmatprep.mubr.msk.f32.mxu1 %vm269_vm0, %v2964_v61  ;;  %v2481_v42 = vpack.c.bf16 %v2067_v35, %v2062_v27  ;;  %v2118_v19 = vld [vmem:[%s2605_s19 + $0xb30] sm:$0xff] }
  0xb6   : > { %2418 = vmatpush1.bf16.msra.mxu0 %v2417_v30  ;;  %2450 = vmatpush1.bf16.msra.mxu1 %v2449_v25  ;;  %v2059_v30 = vld [vmem:[%s2605_s19 + $0x958] sm:$0xff]  ;;  %v3126_v25 = vld [vmem:[%s3409_s1 + $0x10] sm:$0xff] }
  0xb7   : > { %2419 = vmatprep.subr.bf16.mxu0 %v2560_v57  ;;  %2452 = vmatprep.subr.bf16.mxu1 %v2451_v32  ;;  %v2477_v32 = vpack.c.bf16 %v2057_v16, %v2052_v26  ;;  %v2510_v34 = vpack.c.bf16 %v2059_v30, %v2054_v29  ;;  %v2117_v26 = vld [vmem:[%s2605_s19 + $0xb28] sm:$0xff]  ;;  %v2114_v16 = vld [vmem:[%s2605_s19 + $0xb10] sm:$0xff] }
  0xba   : > { %2421 = vmatpush1.bf16.msra.mxu0 %v2420_v36  ;;  %2454 = vmatpush1.bf16.msra.mxu1 %v2453_v37  ;;  %v2064_v36 = vld [vmem:[%s2605_s19 + $0x980] sm:$0xff]  ;;  %v2479_v37 = vpack.c.bf16 %v2068_v0, %v2063_v31 }
  0xbb   : > { %2422 = vmatprep.subr.bf16.mxu0 %v2560_v57  ;;  %2456 = vmatprep.subr.bf16.mxu1 %v2455_v40  ;;  %v2078_v40 = vld [vmem:[%s2605_s19 + $0x9f0] sm:$0xff]  ;;  %v2513_v44 = vpack.c.bf16 %v2069_v38, %v2064_v36 }
  0xbe   : > { %2424 = vmatpush1.bf16.msra.mxu0 %v2423_v45  ;;  %2458 = vmatpush1.bf16.msra.mxu1 %v2457_v46  ;;  %v2483_v45 = vpack.c.bf16 %v2078_v40, %v2073_v39  ;;  %v2072_v46 = vld [vmem:[%s2605_s19 + $0x9c0] sm:$0xff] }
  0xbf   : > { %2425 = vmatprep.subr.bf16.mxu0 %v2560_v57  ;;  %2460 = vmatprep.subr.bf16.mxu1 %v2459_v49  ;;  %v2079_v49 = vld [vmem:[%s2605_s19 + $0x9f8] sm:$0xff]  ;;  %v2485_v53 = vpack.c.bf16 %v2077_v47, %v2072_v46 }
  0xc2   : > { %2427 = vmatpush1.bf16.msra.mxu0 %v2426_v54  ;;  %2462 = vmatpush1.bf16.msra.mxu1 %v2461_v56  ;;  %v2516_v54 = vpack.c.bf16 %v2079_v49, %v2074_v48  ;;  %v2487_v56 = vpack.c.bf16 %v2088_v51, %v2083_v50 }
  0xc3   : > { %2428 = vmatprep.subr.bf16.mxu0 %v2560_v57  ;;  %2464 = vmatprep.subr.bf16.mxu1 %v2463_v62  ;;  %v2089_v62 = vld [vmem:[%s2605_s19 + $0xa48] sm:$0xff] }
  0xc6   : > { %2430 = vmatpush1.bf16.msra.mxu0 %v2429_v4  ;;  %2466 = vmatpush1.bf16.msra.mxu1 %v2465_v6  ;;  %v2519_v4 = vpack.c.bf16 %v2089_v62, %v2084_v60  ;;  %v2491_v6 = vpack.c.bf16 %v2098_v1, %v2093_v63 }
  0xc7   : > { %2468 = vmatprep.subr.bf16.mxu0 %v2467_v7  ;;  %2503 = vmatprep.subr.bf16.mxu1 %v2560_v57  ;;  %v2092_v7 = vld [vmem:[%s2605_s19 + $0xa60] sm:$0xff] }
  0xc8   : > { %v2493_v11 = vpack.c.bf16 %v2097_v55, %v2092_v7 }
  0xc9   : > { %1253 = vmatmul.mubr.f32.vlgmr.msra.gmra.mrb[32].mxu0 %v3104_v20  ;;  %1449 = vmatmul.mubr.f32.vlgmr.msra.gmra.mrb[32].mxu1 %v3104_v20 }
  0xca   : > { %2470 = vmatpush1.bf16.msra.mxu0 %v2469_v3  ;;  %2505 = vmatpush1.bf16.msra.mxu1 %v2504_v13  ;;  %v2102_v13 = vld [vmem:[%s2605_s19 + $0xab0] sm:$0xff] }
  0xcb   : > { %2027 = vmatprep.mubr.msk.f32.mxu0 %vm269_vm0, %v3113_v23  ;;  %2121 = vmatprep.mubr.msk.f32.mxu1 %vm269_vm0, %v3113_v23  ;;  %v2497_v21 = vpack.c.bf16 %v2107_v15, %v2102_v13 }
  0xcc   : > { %2472 = vmatprep.subr.bf16.mxu0 %v2471_v17  ;;  %2506 = vmatprep.subr.bf16.mxu1 %v2560_v57  ;;  %v2109_v17 = vld [vmem:[%s2605_s19 + $0xae8] sm:$0xff] }
  0xcd   : > { %1258 = vmatmul.mubr.f32.gmra.mrb[34].mxu0 %v3126_v25  ;;  %1455 = vmatmul.mubr.f32.gmra.mrb[34].mxu1 %v3126_v25  ;;  %v2525_v14 = vpack.c.bf16 %v2109_v17, %v2104_v5 }
  0xce   : > { %2474 = vmatpush1.bf16.msra.mxu0 %v2473_v22  ;;  %2508 = vmatpush1.bf16.msra.mxu1 %v2507_v24  ;;  %v2499_v22 = vpack.c.bf16 %v2118_v19, %v2113_v18  ;;  %v2112_v24 = vld [vmem:[%s2605_s19 + $0xb00] sm:$0xff] }
  0xcf   : > { %2028 = vmatprep.mubr.msk.f32.mxu0 %vm269_vm0, %v3136_v33  ;;  %2122 = vmatprep.mubr.msk.f32.mxu1 %vm269_vm0, %v3136_v33  ;;  %v2501_v29 = vpack.c.bf16 %v2117_v26, %v2112_v24 }
  0xd0   : > { %2476 = vmatprep.subr.bf16.mxu0 %v2475_v28  ;;  %2509 = vmatprep.subr.bf16.mxu1 %v2560_v57  ;;  %v2119_v28 = vld [vmem:[%s2605_s19 + $0xb38] sm:$0xff] }
  0xd1   : > { %1263 = vmatmul.mubr.f32.gmra.mrb[36].mxu0 %v3151_v41  ;;  %1461 = vmatmul.mubr.f32.gmra.mrb[36].mxu1 %v3151_v41  ;;  %v2528_v30 = vpack.c.bf16 %v2119_v28, %v2114_v16 }
  0xd2   : > { %2478 = vmatpush1.bf16.msra.mxu0 %v2477_v32  ;;  %2511 = vmatpush1.bf16.msra.mxu1 %v2510_v34 }
  0xd3   : > { %2029 = vmatprep.mubr.msk.f32.mxu0 %vm269_vm0, %v3159_v43  ;;  %2123 = vmatprep.mubr.msk.f32.mxu1 %vm269_vm0, %v3159_v43 }
  0xd4   : > { %2480 = vmatprep.subr.bf16.mxu0 %v2479_v37  ;;  %2512 = vmatprep.subr.bf16.mxu1 %v2560_v57 }
  0xd5   : > { %1268 = vmatmul.mubr.f32.gmra.mrb[38].mxu0 %v3174_v52  ;;  %1467 = vmatmul.mubr.f32.gmra.mrb[38].mxu1 %v3174_v52 }
  0xd6   : > { %2482 = vmatpush1.bf16.msra.mxu0 %v2481_v42  ;;  %2514 = vmatpush1.bf16.msra.mxu1 %v2513_v44 }
  0xd7   : > { %2484 = vmatprep.subr.bf16.mxu0 %v2483_v45  ;;  %2515 = vmatprep.subr.bf16.mxu1 %v2560_v57 }
  0xd8   : > { %2124 = vmatprep.mubr.msk.f32.mxu0 %vm269_vm0, %v2964_v61  ;;  %2128 = vmatprep.mubr.msk.f32.mxu1 %vm269_vm0, %v2964_v61  ;;  %v2108_v61 = vld [vmem:[%s2605_s19 + $0xae0] sm:$0xff]  ;;  %s2531_s19 = smul.u32 160, %s3413_s13 }
  0xd9   : > { %v2495_v3 = vpack.c.bf16 %v2108_v61, %v2103_v10 }
  0xda   : > { %2486 = vmatpush1.bf16.msra.mxu0 %v2485_v53  ;;  %2517 = vmatpush1.bf16.msra.mxu1 %v2516_v54  ;;  %s3329_s9 = scalar_lea.vmem %s3411_s3, %s2531_s19 }
  0xdb   : > { %2488 = vmatprep.subr.bf16.mxu0 %v2487_v56  ;;  %2518 = vmatprep.subr.bf16.mxu1 %v2560_v57 }
  0xde   : > { %2490 = vmatpush1.bf16.msra.mxu0 %v2489_v2  ;;  %2520 = vmatpush1.bf16.msra.mxu1 %v2519_v4 }
  0xdf   : > { %2492 = vmatprep.subr.bf16.mxu0 %v2491_v6  ;;  %2521 = vmatprep.subr.bf16.mxu1 %v2560_v57 }
  0xe2   : > { %2494 = vmatpush1.bf16.msra.mxu0 %v2493_v11  ;;  %2523 = vmatpush1.bf16.msra.mxu1 %v2522_v12 }
  0xe3   : > { %2496 = vmatprep.subr.bf16.mxu0 %v2495_v3  ;;  %2524 = vmatprep.subr.bf16.mxu1 %v2560_v57 }
  0xe6   : > { %2498 = vmatpush1.bf16.msra.mxu0 %v2497_v21  ;;  %2526 = vmatpush1.bf16.msra.mxu1 %v2525_v14 }
  0xe7   : > { %2500 = vmatprep.subr.bf16.mxu0 %v2499_v22  ;;  %2527 = vmatprep.subr.bf16.mxu1 %v2560_v57 }
  0xea   : > { %2502 = vmatpush1.bf16.msra.mxu0 %v2501_v29  ;;  %2529 = vmatpush1.bf16.msra.mxu1 %v2528_v30 }
  0xed   : > { %1538 = vmatmul.mubr.f32.vlgmr.msra.gmra.mrb[40].mxu0 %v3104_v20  ;;  %1627 = vmatmul.mubr.f32.vlgmr.msra.gmra.mrb[40].mxu1 %v3104_v20 }
  0xee   : > { %2125 = vmatprep.mubr.msk.f32.mxu0 %vm269_vm0, %v3113_v23  ;;  %2129 = vmatprep.mubr.msk.f32.mxu1 %vm269_vm0, %v3113_v23 }
  0xf1   : > { %1544 = vmatmul.mubr.f32.gmra.mrb[42].mxu0 %v3126_v25  ;;  %1632 = vmatmul.mubr.f32.gmra.mrb[42].mxu1 %v3126_v25 }
  0xf2   : > { %2126 = vmatprep.mubr.msk.f32.mxu0 %vm269_vm0, %v3136_v33  ;;  %2130 = vmatprep.mubr.msk.f32.mxu1 %vm269_vm0, %v3136_v33 }
  0xf5   : > { %1550 = vmatmul.mubr.f32.gmra.mrb[44].mxu0 %v3151_v41  ;;  %1637 = vmatmul.mubr.f32.gmra.mrb[44].mxu1 %v3151_v41 }
  0xf6   : > { %2127 = vmatprep.mubr.msk.f32.mxu0 %vm269_vm0, %v3159_v43  ;;  %2131 = vmatprep.mubr.msk.f32.mxu1 %vm269_vm0, %v3159_v43 }
  0xf9   : > { %1556 = vmatmul.mubr.f32.gmra.mrb[46].mxu0 %v3174_v52  ;;  %1642 = vmatmul.mubr.f32.gmra.mrb[46].mxu1 %v3174_v52 }
 0x10c   : > { %v3230_v57 = vpop.f32.mrb[0].mxu0  ;;  %v3234_v23 = vpop.f32.mrb[0].mxu1 }
 0x10d   : > { %v3232_v20 = vpop.f32.mrb[1].mxu0  ;;  %v3236_v25 = vpop.f32.mrb[1].mxu1 }
 0x110   : > { %v3238_v31 = vpop.f32.mrb[2].mxu0  ;;  %v3242_v32 = vpop.f32.mrb[2].mxu1 }
 0x111   : > { %v3240_v0 = vpop.f32.mrb[3].mxu0  ;;  %v3244_v33 = vpop.f32.mrb[3].mxu1 }
 0x114   : > { %v3246_v34 = vpop.f32.mrb[4].mxu0  ;;  %v3250_v35 = vpop.f32.mrb[4].mxu1 }
 0x115   : > { %v3248_v27 = vpop.f32.mrb[5].mxu0  ;;  %v3252_v36 = vpop.f32.mrb[5].mxu1 }
 0x118   : > { %v3254_v37 = vpop.f32.mrb[6].mxu0  ;;  %v3258_v39 = vpop.f32.mrb[6].mxu1 }
 0x119   : > { %v3256_v38 = vpop.f32.mrb[7].mxu0  ;;  %v3260_v40 = vpop.f32.mrb[7].mxu1 }
 0x130   : > { %v3262_v41 = vpop.f32.mrb[8].mxu0  ;;  %v702_v42 = vpop.f32.mrb[8].mxu1 }
 0x131   : > { %v528_v43 = vpop.f32.mrb[9].mxu0  ;;  %v899_v44 = vmax.f32 %v3230_v57, %v702_v42  ;;  %v704_v45 = vpop.f32.mrb[9].mxu1 }
 0x132   : > { %v900_v46 = vmax.f32 %v3232_v20, %v704_v45 }
 0x134   : > { %v708_v47 = vpop.f32.mrb[10].mxu1  ;;  %v3268_v51 = vpop.f32.mrb[10].mxu0 }
 0x135   : > { %v904_v48 = vmax.f32 %v3238_v31, %v708_v47  ;;  %v710_v49 = vpop.f32.mrb[11].mxu1  ;;  %v533_v53 = vpop.f32.mrb[11].mxu0 }
 0x136   : > { %v905_v50 = vmax.f32 %v3240_v0, %v710_v49 }
 0x138   : > { %v714_v52 = vpop.f32.mrb[12].mxu1  ;;  %v3277_v1 = vpop.f32.mrb[12].mxu0 }
 0x139   : > { %v909_v54 = vmax.f32 %v3246_v34, %v714_v52  ;;  %v716_v56 = vpop.f32.mrb[13].mxu1  ;;  %v538_v2 = vpop.f32.mrb[13].mxu0 }
 0x13a   : > { %v910_v58 = vmax.f32 %v3248_v27, %v716_v56 }
 0x13c   : > { %v720_v59 = vpop.f32.mrb[14].mxu1  ;;  %v3279_v4 = vpop.f32.mrb[14].mxu0 }
 0x13d   : > { %v914_v60 = vmax.f32 %v3254_v37, %v720_v59  ;;  %v3273_v62 = vpop.f32.mrb[15].mxu1  ;;  %v543_v6 = vpop.f32.mrb[15].mxu0 }
 0x13e   : > { %v915_v63 = vmax.f32 %v3256_v38, %v3273_v62 }
 0x154   : > { %v791_v7 = vpop.f32.mrb[16].mxu0  ;;  %v880_v8 = vpop.f32.mrb[16].mxu1 }
 0x155   : > { %v901_v55 = vmax.f32 %v3234_v23, %v791_v7  ;;  %v793_v9 = vpop.f32.mrb[17].mxu0  ;;  %v903_v10 = vmax.f32 %v3262_v41, %v880_v8  ;;  %v882_v11 = vpop.f32.mrb[17].mxu1 }
 0x156   : > { %v902_v61 = vmax.f32 %v3236_v25, %v793_v9 }
 0x158   : > { %v797_v12 = vpop.f32.mrb[18].mxu0  ;;  %v3285_v13 = vpop.f32.mrb[18].mxu1 }
 0x159   : > { %v906_v3 = vmax.f32 %v3242_v32, %v797_v12  ;;  %v799_v15 = vpop.f32.mrb[19].mxu0  ;;  %v908_v5 = vmax.f32 %v3268_v51, %v3285_v13  ;;  %v887_v18 = vpop.f32.mrb[19].mxu1 }
 0x15a   : > { %v907_v17 = vmax.f32 %v3244_v33, %v799_v15 }
 0x15c   : > { %v803_v19 = vpop.f32.mrb[20].mxu0  ;;  %v3291_v14 = vpop.f32.mrb[20].mxu1 }
 0x15d   : > { %v911_v21 = vmax.f32 %v3250_v35, %v803_v19  ;;  %v805_v22 = vpop.f32.mrb[21].mxu0  ;;  %v913_v24 = vmax.f32 %v3277_v1, %v3291_v14  ;;  %v892_v16 = vpop.f32.mrb[21].mxu1 }
 0x15e   : > { %v912_v26 = vmax.f32 %v3252_v36, %v805_v22 }
 0x160   : > { %v809_v28 = vpop.f32.mrb[22].mxu0  ;;  %v3297_v30 = vpop.f32.mrb[22].mxu1 }
 0x161   : > { %v916_v29 = vmax.f32 %v3258_v39, %v809_v28  ;;  %v811_v57 = vpop.f32.mrb[23].mxu0  ;;  %v918_v20 = vmax.f32 %v3279_v4, %v3297_v30  ;;  %v897_v25 = vpop.f32.mrb[23].mxu1 }
 0x162   : > { %v917_v23 = vmax.f32 %v3260_v40, %v811_v57  ;;  %v3337_v28 = vpop.permute.xlu1 %1683 }
 0x178   : > { %v1076_v31 = vpop.f32.mrb[24].mxu0  ;;  %v1165_v32 = vpop.f32.mrb[24].mxu1 }
 0x179   : > { %v1273_v0 = vmax.f32 %v899_v44, %v1076_v31  ;;  %v1078_v33 = vpop.f32.mrb[25].mxu0  ;;  %v3302_v34 = vmax.f32 %v901_v55, %v1165_v32  ;;  %v1167_v35 = vpop.f32.mrb[25].mxu1 }
 0x17a   : > { %v1274_v27 = vmax.f32 %v900_v46, %v1078_v33  ;;  %v3304_v36 = vmax.f32 %v902_v61, %v1167_v35 }
 0x17c   : > { %v1082_v37 = vpop.f32.mrb[26].mxu0  ;;  %v1171_v39 = vpop.f32.mrb[26].mxu1 }
 0x17d   : > { %v1278_v38 = vmax.f32 %v904_v48, %v1082_v37  ;;  %v1084_v41 = vpop.f32.mrb[27].mxu0  ;;  %v3306_v42 = vmax.f32 %v906_v3, %v1171_v39  ;;  %v1173_v45 = vpop.f32.mrb[27].mxu1 }
 0x17e   : > { %v1279_v43 = vmax.f32 %v905_v50, %v1084_v41  ;;  %v3308_v40 = vmax.f32 %v907_v17, %v1173_v45  ;;  %v3350_v39 = vpop.permute.xlu1 %1688 }
 0x180   : > { %v1088_v47 = vpop.f32.mrb[28].mxu0  ;;  %v1177_v49 = vpop.f32.mrb[28].mxu1 }
 0x181   : > { %v1283_v44 = vmax.f32 %v909_v54, %v1088_v47  ;;  %v1090_v52 = vpop.f32.mrb[29].mxu0  ;;  %v3310_v53 = vmax.f32 %v911_v21, %v1177_v49  ;;  %v1179_v56 = vpop.f32.mrb[29].mxu1 }
 0x182   : > { %v1284_v46 = vmax.f32 %v910_v58, %v1090_v52  ;;  %v3312_v59 = vmax.f32 %v912_v26, %v1179_v56  ;;  %v3318_v54 = vpop.permute.xlu0 %1673 }
 0x184   : > { %v1094_v48 = vpop.f32.mrb[30].mxu0  ;;  %v1183_v2 = vpop.f32.mrb[30].mxu1 }
 0x185   : > { %v1288_v62 = vmax.f32 %v914_v60, %v1094_v48  ;;  %v1096_v6 = vpop.f32.mrb[31].mxu0  ;;  %v3314_v7 = vmax.f32 %v916_v29, %v1183_v2  ;;  %v1185_v55 = vpop.f32.mrb[31].mxu1 }
 0x186   : > { %v1289_v50 = vmax.f32 %v915_v63, %v1096_v6  ;;  %v3316_v8 = vmax.f32 %v917_v23, %v1185_v55  ;;  %v3324_v18 = vpop.permute.xlu0 %1678 }
 0x19c   : > { %v1254_v9 = vpop.f32.mrb[32].mxu0  ;;  %v1450_v58 = vpop.f32.mrb[32].mxu1 }
 0x19d   : > { %v3320_v61 = vmax.f32 %v903_v10, %v1254_v9  ;;  %v1256_v11 = vpop.f32.mrb[33].mxu0  ;;  %v1647_v12 = vmax.f32 %v1273_v0, %v1450_v58  ;;  %v1452_v3 = vpop.f32.mrb[33].mxu1 }
 0x19e   : > { %v1648_v15 = vmax.f32 %v1274_v27, %v1452_v3 }
 0x19f   : > { %v1691_v60 = vadd.f32 %v3318_v54, %v1647_v12 }
 0x1a0   : > { %v1259_v17 = vpop.f32.mrb[34].mxu0  ;;  %v1692_v63 = vadd.f32 %v3318_v54, %v1648_v15  ;;  %v1456_v19 = vpop.f32.mrb[34].mxu1 }
 0x1a1   : > { %v3335_v10 = vmax.f32 %v908_v5, %v1259_v17  ;;  %v1261_v21 = vpop.f32.mrb[35].mxu0  ;;  %v1711_v22 = vmax.f32 %v1691_v60, 0.0  ;;  %v1652_v26 = vmax.f32 %v1278_v38, %v1456_v19  ;;  %v1458_v16 = vpop.f32.mrb[35].mxu1 }
 0x1a2   : > { %v1712_v29 = vmax.f32 %v1692_v63, 0.0  ;;  %v1653_v57 = vmax.f32 %v1279_v43, %v1458_v16 }
 0x1a3   : > { %1731 = vst [vmem:[%s3329_s9] sm:$0xff] %v1711_v22  ;;  %v1696_v23 = vadd.f32 %v3324_v18, %v1652_v26 }
 0x1a4   : > { %v1264_v25 = vpop.f32.mrb[36].mxu0  ;;  %1732 = vst [vmem:[%s3329_s9 + $0x8] sm:$0xff] %v1712_v29  ;;  %v1697_v51 = vadd.f32 %v3324_v18, %v1653_v57  ;;  %v1462_v5 = vpop.f32.mrb[36].mxu1 }
 0x1a5   : > { %v3346_v13 = vmax.f32 %v913_v24, %v1264_v25  ;;  %v1266_v31 = vpop.f32.mrb[37].mxu0  ;;  %v1716_v0 = vmax.f32 %v1696_v23, 0.0  ;;  %v1657_v32 = vmax.f32 %v1283_v44, %v1462_v5  ;;  %v1464_v33 = vpop.f32.mrb[37].mxu1 }
 0x1a6   : > { %v1717_v27 = vmax.f32 %v1697_v51, 0.0  ;;  %v1658_v35 = vmax.f32 %v1284_v46, %v1464_v33 }
 0x1a7   : > { %1737 = vst [vmem:[%s3329_s9 + $0x28] sm:$0xff] %v1716_v0  ;;  %v1701_v37 = vadd.f32 %v3337_v28, %v1657_v32 }
 0x1a8   : > { %v1269_v38 = vpop.f32.mrb[38].mxu0  ;;  %1738 = vst [vmem:[%s3329_s9 + $0x30] sm:$0xff] %v1717_v27  ;;  %v1702_v1 = vadd.f32 %v3337_v28, %v1658_v35  ;;  %v1468_v24 = vpop.f32.mrb[38].mxu1 }
 0x1a9   : > { %v3357_v14 = vmax.f32 %v918_v20, %v1269_v38  ;;  %v1271_v41 = vpop.f32.mrb[39].mxu0  ;;  %v1721_v43 = vmax.f32 %v1701_v37, 0.0  ;;  %v1662_v45 = vmax.f32 %v1288_v62, %v1468_v24  ;;  %v1470_v47 = vpop.f32.mrb[39].mxu1 }
 0x1aa   : > { %v1722_v44 = vmax.f32 %v1702_v1, 0.0  ;;  %v1663_v49 = vmax.f32 %v1289_v50, %v1470_v47 }
 0x1ab   : > { %1742 = vst [vmem:[%s3329_s9 + $0x50] sm:$0xff] %v1721_v43  ;;  %v1706_v52 = vadd.f32 %v3350_v39, %v1662_v45 }
 0x1ac   : > { %1743 = vst [vmem:[%s3329_s9 + $0x58] sm:$0xff] %v1722_v44  ;;  %v1707_v46 = vadd.f32 %v3350_v39, %v1663_v49 }
 0x1ad   : > { %v1726_v56 = vmax.f32 %v1706_v52, 0.0 }
 0x1ae   : > { %v1727_v48 = vmax.f32 %v1707_v46, 0.0 }
 0x1af   : > { %1747 = vst [vmem:[%s3329_s9 + $0x78] sm:$0xff] %v1726_v56 }
 0x1b0   : > { %1748 = vst [vmem:[%s3329_s9 + $0x80] sm:$0xff] %v1727_v48 }
 0x1c0   : > { %v1539_v4 = vpop.f32.mrb[40].mxu0  ;;  %v1628_v20 = vpop.f32.mrb[40].mxu1 }
 0x1c1   : > { %v1649_v30 = vmax.f32 %v3302_v34, %v1539_v4  ;;  %v1541_v2 = vpop.f32.mrb[41].mxu0  ;;  %v1651_v62 = vmax.f32 %v3320_v61, %v1628_v20  ;;  %v1630_v50 = vpop.f32.mrb[41].mxu1 }
 0x1c2   : > { %v1650_v6 = vmax.f32 %v3304_v36, %v1541_v2 }
 0x1c3   : > { %v1693_v55 = vadd.f32 %v3318_v54, %v1649_v30  ;;  %v1695_v9 = vadd.f32 %v3318_v54, %v1651_v62 }
 0x1c4   : > { %v1694_v58 = vadd.f32 %v3318_v54, %v1650_v6  ;;  %v1545_v11 = vpop.f32.mrb[42].mxu0  ;;  %v1633_v3 = vpop.f32.mrb[42].mxu1 }
 0x1c5   : > { %v1713_v12 = vmax.f32 %v1693_v55, 0.0  ;;  %v1654_v34 = vmax.f32 %v3306_v42, %v1545_v11  ;;  %v1547_v15 = vpop.f32.mrb[43].mxu0  ;;  %v1715_v61 = vmax.f32 %v1695_v9, 0.0  ;;  %v1656_v36 = vmax.f32 %v3335_v10, %v1633_v3  ;;  %v1635_v63 = vpop.f32.mrb[43].mxu1 }
 0x1c6   : > { %v1714_v60 = vmax.f32 %v1694_v58, 0.0  ;;  %v1655_v17 = vmax.f32 %v3308_v40, %v1547_v15 }
 0x1c7   : > { %1733 = vst [vmem:[%s3329_s9 + $0x10] sm:$0xff] %v1713_v12  ;;  %v1698_v19 = vadd.f32 %v3324_v18, %v1654_v34  ;;  %1736 = vst.msk [vmem:[%s3329_s9 + $0x20] sm:$0xff] %vm1735_vm1, %v1715_v61  ;;  %v1700_v42 = vadd.f32 %v3324_v18, %v1656_v36 }
 0x1c8   : > { %1734 = vst [vmem:[%s3329_s9 + $0x18] sm:$0xff] %v1714_v60  ;;  %v1699_v54 = vadd.f32 %v3324_v18, %v1655_v17  ;;  %v1551_v21 = vpop.f32.mrb[44].mxu0  ;;  %v1638_v26 = vpop.f32.mrb[44].mxu1 }
 0x1c9   : > { %v1718_v22 = vmax.f32 %v1698_v19, 0.0  ;;  %v1659_v10 = vmax.f32 %v3310_v53, %v1551_v21  ;;  %v1553_v40 = vpop.f32.mrb[45].mxu0  ;;  %v1720_v16 = vmax.f32 %v1700_v42, 0.0  ;;  %v1661_v57 = vmax.f32 %v3346_v13, %v1638_v26  ;;  %v1640_v25 = vpop.f32.mrb[45].mxu1 }
 0x1ca   : > { %v1719_v29 = vmax.f32 %v1699_v54, 0.0  ;;  %v1660_v23 = vmax.f32 %v3312_v59, %v1553_v40 }
 0x1cb   : > { %1739 = vst [vmem:[%s3329_s9 + $0x38] sm:$0xff] %v1718_v22  ;;  %v1703_v51 = vadd.f32 %v3337_v28, %v1659_v10  ;;  %1741 = vst.msk [vmem:[%s3329_s9 + $0x48] sm:$0xff] %vm1735_vm1, %v1720_v16  ;;  %v1705_v53 = vadd.f32 %v3337_v28, %v1661_v57 }
 0x1cc   : > { %1740 = vst [vmem:[%s3329_s9 + $0x40] sm:$0xff] %v1719_v29  ;;  %v1704_v18 = vadd.f32 %v3337_v28, %v1660_v23  ;;  %v1557_v5 = vpop.f32.mrb[46].mxu0  ;;  %v1643_v0 = vpop.f32.mrb[46].mxu1 }
 0x1cd   : > { %v1723_v31 = vmax.f32 %v1703_v51, 0.0  ;;  %v1664_v13 = vmax.f32 %v3314_v7, %v1557_v5  ;;  %v1559_v59 = vpop.f32.mrb[47].mxu0  ;;  %v1725_v32 = vmax.f32 %v1705_v53, 0.0  ;;  %v1666_v27 = vmax.f32 %v3357_v14, %v1643_v0  ;;  %v1645_v37 = vpop.f32.mrb[47].mxu1 }
 0x1ce   : > { %v1724_v33 = vmax.f32 %v1704_v18, 0.0  ;;  %v1665_v35 = vmax.f32 %v3316_v8, %v1559_v59 }
 0x1cf   : > { %1744 = vst [vmem:[%s3329_s9 + $0x60] sm:$0xff] %v1723_v31  ;;  %v1708_v38 = vadd.f32 %v3350_v39, %v1664_v13  ;;  %1746 = vst.msk [vmem:[%s3329_s9 + $0x70] sm:$0xff] %vm1735_vm1, %v1725_v32  ;;  %v1710_v7 = vadd.f32 %v3350_v39, %v1666_v27 }
 0x1d0   : > { %1745 = vst [vmem:[%s3329_s9 + $0x68] sm:$0xff] %v1724_v33  ;;  %v1709_v28 = vadd.f32 %v3350_v39, %v1665_v35 }
 0x1d1   : > { %v1728_v1 = vmax.f32 %v1708_v38, 0.0  ;;  %v1730_v24 = vmax.f32 %v1710_v7, 0.0 }
 0x1d2   : > { %v1729_v41 = vmax.f32 %v1709_v28, 0.0 }
 0x1d3   : > { %1749 = vst [vmem:[%s3329_s9 + $0x88] sm:$0xff] %v1728_v1  ;;  %1751 = vst.msk [vmem:[%s3329_s9 + $0x98] sm:$0xff] %vm1735_vm1, %v1730_v24 }
 0x1d4   : > { %1750 = vst [vmem:[%s3329_s9 + $0x90] sm:$0xff] %v1729_v41 }
 0x1d5 PF: > { %s13_s12 = sadd.s32 1, %s2558_s12  }
 0x1d6   : > { %p10_p4 = scmp.ge.s32.totalorder %s13_s12, 4  }
 0x1d8   :  { %12 = sbr.rel (!%p10_p4) target bundleno = 1 (0x1), region = 65 }

// kernel: fruit_cnn_forward.5
= control target key start
LH: loop header
LB: loop body
LE: loop exit
PB: predicated region body
PF: predicated region fallthrough
CT: control target
= control target key end

     0   :  { %10 = vsyncpa [#allocation4], 0  ;;  %s3486_s18 = smov 0   ;;  %s3783_s0 = inlined_call_operand.vmem [shape: f32[2,20480], index: 0, kind: input, shape index: {}]   ;;  %s3784_s1 = inlined_call_operand.vmem [shape: bf16[20480,64], index: 1, kind: input, shape index: {}]   ;;  %s3785_s2 = inlined_call_operand.vmem [shape: f32[1,64], index: 2, kind: input, shape index: {}]   ;;  %s3786_s3 = inlined_call_operand.vmem [shape: f32[64,3], index: 3, kind: input, shape index: {}]   ;;  %s3787_s4 = inlined_call_operand.vmem [shape: f32[1,3], index: 4, kind: input, shape index: {}]   ;;  %s3788_s5 = inlined_call_operand.hbm [shape: f32[2,3], index: 5, kind: output, shape index: {}]  }
   0x1 LB: > { %s3492_s19 = sadd.s32 4294967295, %s3448_s18   ;;  %p1866_p0 = scmp.ge.s32.totalorder %s3448_s18, 1  ;;  %s3448_s18 = sphi %s3486_s18, %s16_s18  }
   0x2   : > { %p195_p1 = scmp.lt.s32.totalorder %s3448_s18, 9 }
   0x4   : > { %p196_p2 = pnand %p1866_p0, %p195_p1 }
   0x5   : > { %s223_s20 = smul.u32 (!%p196_p2), 20, %s3492_s19  ;;  %p1869_p5 = scmp.ne.s32.totalorder (!%p196_p2), %s3492_s19, 0 }
   0x6   : > { %199 = sbr.rel (%p196_p2) target bundleno = 658 (0x292), region = 40 }
   0x7   : > { %s229_s21 = smul.u32 (!%p196_p2), 320, %s3492_s19  ;;  %p224_p3 = scmp.lt.s32.totalorder (!%p196_p2), %s223_s20, 159 }
   0x9   : > { %p230_p4 = scmp.lt.s32.totalorder (!%p196_p2), %s229_s21, 2559 }
   0xd   : > { %s3790_s20 = smov (!%p224_p3, %s223_s20), 159  ;;  %s3792_s21 = smov (!%p230_p4, %s229_s21), 2559 }
   0xe   : > { %s1867_s22 = sshll.u32 %s3790_s20, 1  ;;  %s1868_s26 = sshll.u32 %s3792_s21, 2  ;;  %vm239_vm0 = vcmask (!%p1869_p5), 517120   ;;  %v3450_v0 = vmov (!%p1869_p5), 0.0  }
   0xf   : > { %s3501_s25 = scalar_lea.vmem %s3783_s0, %s1867_s22  ;;  %s3506_s29 = scalar_lea.vmem %s3784_s1, %s1868_s26  ;;  %240 = vst.msk [vmem:[#allocation2] sm:$0x3] (!%p1869_p5), %vm239_vm0, %v3450_v0 }
  0x10   : > { %238 = sbr.rel (%p1869_p5) target bundleno = 23 (0x17), region = 44 }
  0x17 PF: > { %v2525_v1 = vld [vmem:[%s3506_s29 + $0x40] sm:$0xff]   ;;  %v896_v4 = vlaneseq  ;;  %v2526_v6 = vld [vmem:[%s3506_s29 + $0x48] sm:$0xff]   ;;  %v3451_v8 = vmov 1983009808   ;;  %v2527_v14 = vld [vmem:[%s3506_s29 + $0x50] sm:$0xff]   ;;  %vm1698_vm1 = vcmask 517120  }
  0x18   : > { %v2541_v2 = vld [vmem:[%s3506_s29 + $0xc0] sm:$0xff]   ;;  %3056 = vmatprep.subr.bf16.mxu0 %v2525_v1  ;;  %v2542_v7 = vld [vmem:[%s3506_s29 + $0xc8] sm:$0xff]   ;;  %v894_v9 = vunpack.c.l.s4 %v3451_v8  ;;  %v2543_v15 = vld [vmem:[%s3506_s29 + $0xd0] sm:$0xff]   ;;  %p1870_p6 = scmp.ne.s32.totalorder %s3492_s19, 7 }
  0x19   : > { %v1879_v3 = vld [vmem:[%s3506_s29] sm:$0xff]   ;;  %3088 = vmatprep.subr.bf16.mxu1 %v2541_v2  ;;  %v2518_v10 = vld [vmem:[%s3506_s29 + $0x8] sm:$0xff]   ;;  %v897_v13 = vshrl.u32 %v896_v4, 7  ;;  %v2519_v16 = vld [vmem:[%s3506_s29 + $0x10] sm:$0xff]   ;;  %vm3453_vm2 = vmmov (!%p1870_p6), 0   ;;  %vm1729_vm3 = vcmask (!%p1870_p6), 523264  }
  0x1a   : > { %v2533_v5 = vld [vmem:[%s3506_s29 + $0x80] sm:$0xff]   ;;  %3058 = vmatpush3.bf16.msra.mxu0 %v1879_v3  ;;  %v2534_v11 = vld [vmem:[%s3506_s29 + $0x88] sm:$0xff]   ;;  %v895_v12 = vunpack.c.0.s8 %v894_v9  ;;  %v2535_v17 = vld [vmem:[%s3506_s29 + $0x90] sm:$0xff]   ;;  %vm1803_vm4 = vcmask (!%p1870_p6), 17408  }
  0x1b   : > { %3090 = vmatpush3.bf16.msra.mxu1 %v2533_v5  ;;  %3060 = vmatprep.subr.bf16.mxu0 %v2526_v6  ;;  %v2528_v19 = vld [vmem:[%s3506_s29 + $0x58] sm:$0xff]   ;;  %v242_v21 = vld [vmem:[%s3501_s25] sm:$0xff]  ;;  %v2530_v33 = vld [vmem:[%s3506_s29 + $0x68] sm:$0xff]  }
  0x1c   : > { %3092 = vmatprep.subr.bf16.mxu1 %v2542_v7  ;;  %v3521_v18 = vsub.s32 %v895_v12, %v897_v13  ;;  %v2544_v20 = vld [vmem:[%s3506_s29 + $0xd8] sm:$0xff]   ;;  %v892_v25 = vcombine.high %v242_v21, %v242_v21  ;;  %v2529_v26 = vld [vmem:[%s3506_s29 + $0x60] sm:$0xff]   ;;  %v2546_v34 = vld [vmem:[%s3506_s29 + $0xe8] sm:$0xff]  }
  0x1d   : > { %v2520_v22 = vld [vmem:[%s3506_s29 + $0x18] sm:$0xff]   ;;  %v2545_v27 = vld [vmem:[%s3506_s29 + $0xe0] sm:$0xff]   ;;  %v2522_v35 = vld [vmem:[%s3506_s29 + $0x28] sm:$0xff]  }
  0x1e   : > { %3062 = vmatpush3.bf16.msra.mxu0 %v2518_v10  ;;  %v2536_v23 = vld [vmem:[%s3506_s29 + $0x98] sm:$0xff]   ;;  %v899_v24 = vrot.slane %v242_v21, %v3521_v18  ;;  %v906_v29 = vrot.slane %v892_v25, %v3521_v18  ;;  %v2521_v30 = vld [vmem:[%s3506_s29 + $0x20] sm:$0xff]   ;;  %v2538_v36 = vld [vmem:[%s3506_s29 + $0xa8] sm:$0xff]  }
  0x1f   : > { %3094 = vmatpush3.bf16.msra.mxu1 %v2534_v11  ;;  %3064 = vmatprep.subr.bf16.mxu0 %v2527_v14  ;;  %v2537_v31 = vld [vmem:[%s3506_s29 + $0xa0] sm:$0xff]   ;;  %v2531_v37 = vld [vmem:[%s3506_s29 + $0x70] sm:$0xff]   ;;  %v243_v39 = vld [vmem:[%s3501_s25 + $0x8] sm:$0xff] }
  0x20   : > { %3096 = vmatprep.subr.bf16.mxu1 %v2543_v15  ;;  %v907_v28 = vcombine.high %v899_v24, %v899_v24  ;;  %v908_v32 = vcombine.high %v906_v29, %v906_v29  ;;  %v2547_v38 = vld [vmem:[%s3506_s29 + $0xf0] sm:$0xff]   ;;  %v2532_v42 = vld [vmem:[%s3506_s29 + $0x78] sm:$0xff]   ;;  %v909_v44 = vcombine.high %v243_v39, %v243_v39  ;;  %v2557_v47 = vld [vmem:[%s3506_s29 + $0x140] sm:$0xff]   ;;  %v3550_v49 = vrot.slane %v243_v39, %v3521_v18 }
  0x21   : > { %v2523_v40 = vld [vmem:[%s3506_s29 + $0x30] sm:$0xff]   ;;  %v2548_v43 = vld [vmem:[%s3506_s29 + $0xf8] sm:$0xff]   ;;  %v2573_v48 = vld [vmem:[%s3506_s29 + $0x1c0] sm:$0xff]  }
  0x22   : > { %3066 = vmatpush3.bf16.msra.mxu0 %v2519_v16  ;;  %1061 = vmatprep.mubr.f32.mxu0 %v907_v28  ;;  %v2539_v41 = vld [vmem:[%s3506_s29 + $0xb0] sm:$0xff]   ;;  %v2524_v45 = vld [vmem:[%s3506_s29 + $0x38] sm:$0xff]   ;;  %v3553_v50 = vrot.slane %v909_v44, %v3521_v18  ;;  %v2549_v51 = vld [vmem:[%s3506_s29 + $0x100] sm:$0xff]   ;;  %v924_v55 = vcombine.high %v3550_v49, %v3550_v49 }
  0x23   : > { %3098 = vmatpush3.bf16.msra.mxu1 %v2535_v17  ;;  %3068 = vmatprep.subr.bf16.mxu0 %v2528_v19  ;;  %v2540_v46 = vld [vmem:[%s3506_s29 + $0xb8] sm:$0xff]   ;;  %v2565_v52 = vld [vmem:[%s3506_s29 + $0x180] sm:$0xff]   ;;  %v2558_v53 = vld [vmem:[%s3506_s29 + $0x148] sm:$0xff]  }
  0x24   : > { %3100 = vmatprep.subr.bf16.mxu1 %v2544_v20  ;;  %1131 = vmatprep.mubr.f32.mxu1 %v908_v32  ;;  %v2574_v54 = vld [vmem:[%s3506_s29 + $0x1c8] sm:$0xff]   ;;  %v925_v56 = vcombine.high %v3553_v50, %v3553_v50  ;;  %v2559_v59 = vld [vmem:[%s3506_s29 + $0x150] sm:$0xff]   ;;  %v2560_v63 = vld [vmem:[%s3506_s29 + $0x158] sm:$0xff]  }
  0x25   : > { %v2550_v57 = vld [vmem:[%s3506_s29 + $0x108] sm:$0xff]   ;;  %v2575_v60 = vld [vmem:[%s3506_s29 + $0x1d0] sm:$0xff]   ;;  %v2576_v0 = vld [vmem:[%s3506_s29 + $0x1d8] sm:$0xff]  }
  0x26   : > { %3070 = vmatpush3.bf16.msra.mxu0 %v2520_v22  ;;  %v2566_v58 = vld [vmem:[%s3506_s29 + $0x188] sm:$0xff]   ;;  %v2551_v61 = vld [vmem:[%s3506_s29 + $0x110] sm:$0xff]   ;;  %v2552_v1 = vld [vmem:[%s3506_s29 + $0x118] sm:$0xff]  }
  0x27   : > { %3102 = vmatpush3.bf16.msra.mxu1 %v2536_v23  ;;  %3072 = vmatprep.subr.bf16.mxu0 %v2529_v26  ;;  %v2567_v62 = vld [vmem:[%s3506_s29 + $0x190] sm:$0xff]   ;;  %v2568_v2 = vld [vmem:[%s3506_s29 + $0x198] sm:$0xff]   ;;  %v2561_v3 = vld [vmem:[%s3506_s29 + $0x160] sm:$0xff]  }
  0x28   : > { %3104 = vmatprep.subr.bf16.mxu1 %v2545_v27  ;;  %v2577_v4 = vld [vmem:[%s3506_s29 + $0x1e0] sm:$0xff]   ;;  %v2562_v7 = vld [vmem:[%s3506_s29 + $0x168] sm:$0xff]   ;;  %v2563_v11 = vld [vmem:[%s3506_s29 + $0x170] sm:$0xff]  }
  0x29   : > { %v2553_v5 = vld [vmem:[%s3506_s29 + $0x120] sm:$0xff]   ;;  %v2578_v8 = vld [vmem:[%s3506_s29 + $0x1e8] sm:$0xff]   ;;  %v2579_v12 = vld [vmem:[%s3506_s29 + $0x1f0] sm:$0xff]  }
  0x2a   : > { %3074 = vmatpush3.bf16.msra.mxu0 %v2521_v30  ;;  %v2569_v6 = vld [vmem:[%s3506_s29 + $0x1a0] sm:$0xff]   ;;  %v2554_v9 = vld [vmem:[%s3506_s29 + $0x128] sm:$0xff]   ;;  %v244_v13 = vld [vmem:[%s3501_s25 + $0x10] sm:$0xff] }
  0x2b   : > { %3106 = vmatpush3.bf16.msra.mxu1 %v2537_v31  ;;  %3076 = vmatprep.subr.bf16.mxu0 %v2530_v33  ;;  %v2570_v10 = vld [vmem:[%s3506_s29 + $0x1a8] sm:$0xff]   ;;  %v2555_v14 = vld [vmem:[%s3506_s29 + $0x130] sm:$0xff]   ;;  %v2564_v16 = vld [vmem:[%s3506_s29 + $0x178] sm:$0xff]   ;;  %v926_v19 = vcombine.high %v244_v13, %v244_v13 }
  0x2c   : > { %3108 = vmatprep.subr.bf16.mxu1 %v2546_v34  ;;  %v2571_v15 = vld [vmem:[%s3506_s29 + $0x1b0] sm:$0xff]   ;;  %v2580_v17 = vld [vmem:[%s3506_s29 + $0x1f8] sm:$0xff]   ;;  %v2589_v22 = vld [vmem:[%s3506_s29 + $0x240] sm:$0xff]  }
  0x2d   : > { %v2556_v20 = vld [vmem:[%s3506_s29 + $0x138] sm:$0xff]   ;;  %v2605_v23 = vld [vmem:[%s3506_s29 + $0x2c0] sm:$0xff]   ;;  %v3596_v25 = vrot.slane %v926_v19, %v3521_v18  ;;  %v2590_v28 = vld [vmem:[%s3506_s29 + $0x248] sm:$0xff]  }
  0x2e   : > { %3078 = vmatpush3.bf16.msra.mxu0 %v2522_v35  ;;  %v2572_v21 = vld [vmem:[%s3506_s29 + $0x1b8] sm:$0xff]   ;;  %v2581_v26 = vld [vmem:[%s3506_s29 + $0x200] sm:$0xff]   ;;  %v2582_v32 = vld [vmem:[%s3506_s29 + $0x208] sm:$0xff]  }
  0x2f   : > { %3110 = vmatpush3.bf16.msra.mxu1 %v2538_v36  ;;  %3080 = vmatprep.subr.bf16.mxu0 %v2531_v37  ;;  %v2597_v27 = vld [vmem:[%s3506_s29 + $0x280] sm:$0xff]   ;;  %v942_v31 = vcombine.high %v3596_v25, %v3596_v25  ;;  %v2598_v33 = vld [vmem:[%s3506_s29 + $0x288] sm:$0xff]   ;;  %v2591_v34 = vld [vmem:[%s3506_s29 + $0x250] sm:$0xff]  }
  0x30   : > { %3112 = vmatprep.subr.bf16.mxu1 %v2547_v38  ;;  %v2607_v35 = vld [vmem:[%s3506_s29 + $0x2d0] sm:$0xff]   ;;  %v2592_v38 = vld [vmem:[%s3506_s29 + $0x258] sm:$0xff]   ;;  %v2585_v44 = vld [vmem:[%s3506_s29 + $0x220] sm:$0xff]  }
  0x31   : > { %v2583_v36 = vld [vmem:[%s3506_s29 + $0x210] sm:$0xff]   ;;  %v2608_v39 = vld [vmem:[%s3506_s29 + $0x2d8] sm:$0xff]   ;;  %v2617_v19 = vld [vmem:[%s3506_s29 + $0x320] sm:$0xff]  }
  0x32   : > { %3082 = vmatpush3.bf16.msra.mxu0 %v2523_v40  ;;  %v2599_v37 = vld [vmem:[%s3506_s29 + $0x290] sm:$0xff]   ;;  %v2584_v40 = vld [vmem:[%s3506_s29 + $0x218] sm:$0xff]  }
  0x33   : > { %3114 = vmatpush3.bf16.msra.mxu1 %v2539_v41  ;;  %3084 = vmatprep.subr.bf16.mxu0 %v2532_v42  ;;  %v2600_v41 = vld [vmem:[%s3506_s29 + $0x298] sm:$0xff]   ;;  %v2593_v42 = vld [vmem:[%s3506_s29 + $0x260] sm:$0xff]  }
  0x34   : > { %3116 = vmatprep.subr.bf16.mxu1 %v2548_v43  ;;  %v2609_v43 = vld [vmem:[%s3506_s29 + $0x2e0] sm:$0xff]  }
  0x36   : > { %3086 = vmatpush3.bf16.msra.mxu0 %v2524_v45  ;;  %v2601_v45 = vld [vmem:[%s3506_s29 + $0x2a0] sm:$0xff]  }
  0x37   : > { %3118 = vmatpush3.bf16.msra.mxu1 %v2540_v46  ;;  %3120 = vmatprep.subr.bf16.mxu0 %v2557_v47  ;;  %v2594_v46 = vld [vmem:[%s3506_s29 + $0x268] sm:$0xff]  }
  0x38   : > { %3152 = vmatprep.subr.bf16.mxu1 %v2573_v48  ;;  %v2610_v47 = vld [vmem:[%s3506_s29 + $0x2e8] sm:$0xff]  }
  0x39   : > { %1062 = vmatmul.mubr.f32.vlgmr.msra.gmra.mrb[0].mxu0 %v899_v24  ;;  %v3593_v24 = vrot.slane %v244_v13, %v3521_v18  ;;  %v2586_v48 = vld [vmem:[%s3506_s29 + $0x228] sm:$0xff]   ;;  %v2640_v13 = vld [vmem:[%s3506_s29 + $0x3d8] sm:$0xff]  }
  0x3a   : > { %1132 = vmatmul.mubr.f32.vlgmr.msra.gmra.mrb[0].mxu1 %v906_v29  ;;  %3122 = vmatpush3.bf16.msra.mxu0 %v2549_v51  ;;  %v2606_v29 = vld [vmem:[%s3506_s29 + $0x2c8] sm:$0xff]   ;;  %v2611_v51 = vld [vmem:[%s3506_s29 + $0x2f0] sm:$0xff]  }
  0x3b   : > { %3154 = vmatpush3.bf16.msra.mxu1 %v2565_v52  ;;  %3124 = vmatprep.subr.bf16.mxu0 %v2558_v53  ;;  %v941_v30 = vcombine.high %v3593_v24, %v3593_v24  ;;  %v245_v52 = vld [vmem:[%s3501_s25 + $0x18] sm:$0xff]  ;;  %v2587_v53 = vld [vmem:[%s3506_s29 + $0x230] sm:$0xff]  }
  0x3c   : > { %3156 = vmatprep.subr.bf16.mxu1 %v2574_v54  ;;  %1201 = vmatprep.mubr.f32.mxu0 %v924_v55  ;;  %v2603_v54 = vld [vmem:[%s3506_s29 + $0x2b0] sm:$0xff]   ;;  %v2596_v55 = vld [vmem:[%s3506_s29 + $0x278] sm:$0xff]  }
  0x3d   : > { %1271 = vmatprep.mubr.f32.mxu1 %v925_v56  ;;  %v2612_v56 = vld [vmem:[%s3506_s29 + $0x2f8] sm:$0xff]  }
  0x3e   : > { %3126 = vmatpush3.bf16.msra.mxu0 %v2550_v57  ;;  %v943_v57 = vcombine.high %v245_v52, %v245_v52 }
  0x3f   : > { %3158 = vmatpush3.bf16.msra.mxu1 %v2566_v58  ;;  %3128 = vmatprep.subr.bf16.mxu0 %v2559_v59  ;;  %v2588_v58 = vld [vmem:[%s3506_s29 + $0x238] sm:$0xff]  }
  0x40   : > { %3160 = vmatprep.subr.bf16.mxu1 %v2575_v60  ;;  %v2604_v59 = vld [vmem:[%s3506_s29 + $0x2b8] sm:$0xff]   ;;  %v2621_v60 = vld [vmem:[%s3506_s29 + $0x340] sm:$0xff]  }
  0x42   : > { %3130 = vmatpush3.bf16.msra.mxu0 %v2551_v61  ;;  %v2637_v61 = vld [vmem:[%s3506_s29 + $0x3c0] sm:$0xff]  }
  0x43   : > { %3162 = vmatpush3.bf16.msra.mxu1 %v2567_v62  ;;  %3132 = vmatprep.subr.bf16.mxu0 %v2560_v63  ;;  %v3638_v62 = vrot.slane %v245_v52, %v3521_v18  ;;  %v3641_v63 = vrot.slane %v943_v57, %v3521_v18  ;;  %v2648_v52 = vld [vmem:[%s3506_s29 + $0x418] sm:$0xff]   ;;  %v2665_v57 = vld [vmem:[%s3506_s29 + $0x4a0] sm:$0xff]  }
  0x44   : > { %3164 = vmatprep.subr.bf16.mxu1 %v2576_v0  ;;  %v2613_v0 = vld [vmem:[%s3506_s29 + $0x300] sm:$0xff]  }
  0x46   : > { %3134 = vmatpush3.bf16.msra.mxu0 %v2552_v1  ;;  %v2629_v1 = vld [vmem:[%s3506_s29 + $0x380] sm:$0xff]  }
  0x47   : > { %3166 = vmatpush3.bf16.msra.mxu1 %v2568_v2  ;;  %3136 = vmatprep.subr.bf16.mxu0 %v2561_v3  ;;  %v2622_v2 = vld [vmem:[%s3506_s29 + $0x348] sm:$0xff]  }
  0x48   : > { %3168 = vmatprep.subr.bf16.mxu1 %v2577_v4  ;;  %v2638_v3 = vld [vmem:[%s3506_s29 + $0x3c8] sm:$0xff]   ;;  %v958_v4 = vcombine.high %v3638_v62, %v3638_v62 }
  0x4a   : > { %3138 = vmatpush3.bf16.msra.mxu0 %v2553_v5  ;;  %v959_v5 = vcombine.high %v3641_v63, %v3641_v63 }
  0x4b   : > { %3170 = vmatpush3.bf16.msra.mxu1 %v2569_v6  ;;  %3140 = vmatprep.subr.bf16.mxu0 %v2562_v7  ;;  %v2614_v6 = vld [vmem:[%s3506_s29 + $0x308] sm:$0xff]  }
  0x4c   : > { %3172 = vmatprep.subr.bf16.mxu1 %v2578_v8  ;;  %v2630_v7 = vld [vmem:[%s3506_s29 + $0x388] sm:$0xff]   ;;  %v2623_v8 = vld [vmem:[%s3506_s29 + $0x350] sm:$0xff]  }
  0x4e   : > { %3142 = vmatpush3.bf16.msra.mxu0 %v2554_v9  ;;  %v2639_v9 = vld [vmem:[%s3506_s29 + $0x3d0] sm:$0xff]  }
  0x4f   : > { %3174 = vmatpush3.bf16.msra.mxu1 %v2570_v10  ;;  %3144 = vmatprep.subr.bf16.mxu0 %v2563_v11  ;;  %v2615_v10 = vld [vmem:[%s3506_s29 + $0x310] sm:$0xff]  }
  0x50   : > { %3176 = vmatprep.subr.bf16.mxu1 %v2579_v12  ;;  %v2631_v11 = vld [vmem:[%s3506_s29 + $0x390] sm:$0xff]   ;;  %v2624_v12 = vld [vmem:[%s3506_s29 + $0x358] sm:$0xff]  }
  0x52   : > { %3146 = vmatpush3.bf16.msra.mxu0 %v2555_v14  ;;  %v2616_v14 = vld [vmem:[%s3506_s29 + $0x318] sm:$0xff]  }
  0x53   : > { %3178 = vmatpush3.bf16.msra.mxu1 %v2571_v15  ;;  %3148 = vmatprep.subr.bf16.mxu0 %v2564_v16  ;;  %v2632_v15 = vld [vmem:[%s3506_s29 + $0x398] sm:$0xff]   ;;  %v2625_v16 = vld [vmem:[%s3506_s29 + $0x360] sm:$0xff]  }
  0x54   : > { %3180 = vmatprep.subr.bf16.mxu1 %v2580_v17  ;;  %v2641_v17 = vld [vmem:[%s3506_s29 + $0x3e0] sm:$0xff]  }
  0x56   : > { %3150 = vmatpush3.bf16.msra.mxu0 %v2556_v20  ;;  %v2633_v20 = vld [vmem:[%s3506_s29 + $0x3a0] sm:$0xff]  }
  0x57   : > { %3182 = vmatpush3.bf16.msra.mxu1 %v2572_v21  ;;  %3184 = vmatprep.subr.bf16.mxu0 %v2589_v22  ;;  %v2626_v21 = vld [vmem:[%s3506_s29 + $0x368] sm:$0xff]  }
  0x58   : > { %3216 = vmatprep.subr.bf16.mxu1 %v2605_v23  ;;  %v2642_v22 = vld [vmem:[%s3506_s29 + $0x3e8] sm:$0xff]  }
  0x59   : > { %1202 = vmatmul.mubr.f32.vlgmr.msra.gmra.mrb[2].mxu0 %v3550_v49  ;;  %v2602_v49 = vld [vmem:[%s3506_s29 + $0x2a8] sm:$0xff]  }
  0x5a   : > { %1272 = vmatmul.mubr.f32.vlgmr.msra.gmra.mrb[2].mxu1 %v3553_v50  ;;  %3186 = vmatpush3.bf16.msra.mxu0 %v2581_v26  ;;  %v2595_v50 = vld [vmem:[%s3506_s29 + $0x270] sm:$0xff]   ;;  %v2618_v23 = vld [vmem:[%s3506_s29 + $0x328] sm:$0xff]  }
  0x5b   : > { %3218 = vmatpush3.bf16.msra.mxu1 %v2597_v27  ;;  %3188 = vmatprep.subr.bf16.mxu0 %v2590_v28  ;;  %v2643_v26 = vld [vmem:[%s3506_s29 + $0x3f0] sm:$0xff]   ;;  %v246_v27 = vld [vmem:[%s3501_s25 + $0x20] sm:$0xff] }
  0x5c   : > { %3220 = vmatprep.subr.bf16.mxu1 %v2606_v29  ;;  %1341 = vmatprep.mubr.f32.mxu0 %v941_v30  ;;  %v2619_v28 = vld [vmem:[%s3506_s29 + $0x330] sm:$0xff]   ;;  %v2628_v30 = vld [vmem:[%s3506_s29 + $0x378] sm:$0xff]  }
  0x5d   : > { %1411 = vmatprep.mubr.f32.mxu1 %v942_v31  ;;  %v2635_v29 = vld [vmem:[%s3506_s29 + $0x3b0] sm:$0xff]   ;;  %v2644_v31 = vld [vmem:[%s3506_s29 + $0x3f8] sm:$0xff]  }
  0x5e   : > { %3190 = vmatpush3.bf16.msra.mxu0 %v2582_v32  ;;  %v960_v32 = vcombine.high %v246_v27, %v246_v27 }
  0x5f   : > { %3222 = vmatpush3.bf16.msra.mxu1 %v2598_v33  ;;  %3192 = vmatprep.subr.bf16.mxu0 %v2591_v34  ;;  %v2620_v33 = vld [vmem:[%s3506_s29 + $0x338] sm:$0xff]  }
  0x60   : > { %3224 = vmatprep.subr.bf16.mxu1 %v2607_v35  ;;  %v2636_v34 = vld [vmem:[%s3506_s29 + $0x3b8] sm:$0xff]   ;;  %v2653_v35 = vld [vmem:[%s3506_s29 + $0x440] sm:$0xff]  }
  0x62   : > { %3194 = vmatpush3.bf16.msra.mxu0 %v2583_v36  ;;  %v2669_v36 = vld [vmem:[%s3506_s29 + $0x4c0] sm:$0xff]  }
  0x63   : > { %3226 = vmatpush3.bf16.msra.mxu1 %v2599_v37  ;;  %3196 = vmatprep.subr.bf16.mxu0 %v2592_v38  ;;  %v3683_v37 = vrot.slane %v246_v27, %v3521_v18  ;;  %v3686_v38 = vrot.slane %v960_v32, %v3521_v18  ;;  %v2646_v18 = vld [vmem:[%s3506_s29 + $0x408] sm:$0xff]  }
  0x64   : > { %3228 = vmatprep.subr.bf16.mxu1 %v2608_v39  ;;  %v2645_v39 = vld [vmem:[%s3506_s29 + $0x400] sm:$0xff]  }
  0x66   : > { %3198 = vmatpush3.bf16.msra.mxu0 %v2584_v40  ;;  %v2661_v40 = vld [vmem:[%s3506_s29 + $0x480] sm:$0xff]  }
  0x67   : > { %3230 = vmatpush3.bf16.msra.mxu1 %v2600_v41  ;;  %3200 = vmatprep.subr.bf16.mxu0 %v2593_v42  ;;  %v2654_v41 = vld [vmem:[%s3506_s29 + $0x448] sm:$0xff]  }
  0x68   : > { %3232 = vmatprep.subr.bf16.mxu1 %v2609_v43  ;;  %v2670_v42 = vld [vmem:[%s3506_s29 + $0x4c8] sm:$0xff]   ;;  %v975_v43 = vcombine.high %v3683_v37, %v3683_v37 }
  0x6a   : > { %3202 = vmatpush3.bf16.msra.mxu0 %v2585_v44  ;;  %v976_v44 = vcombine.high %v3686_v38, %v3686_v38 }
  0x6b   : > { %3234 = vmatpush3.bf16.msra.mxu1 %v2601_v45  ;;  %3204 = vmatprep.subr.bf16.mxu0 %v2594_v46  ;;  %v2662_v45 = vld [vmem:[%s3506_s29 + $0x488] sm:$0xff]   ;;  %v2655_v46 = vld [vmem:[%s3506_s29 + $0x450] sm:$0xff]  }
  0x6c   : > { %3236 = vmatprep.subr.bf16.mxu1 %v2610_v47  ;;  %v2671_v47 = vld [vmem:[%s3506_s29 + $0x4d0] sm:$0xff]  }
  0x6e   : > { %3206 = vmatpush3.bf16.msra.mxu0 %v2586_v48  ;;  %v2647_v48 = vld [vmem:[%s3506_s29 + $0x410] sm:$0xff]  }
  0x6f   : > { %3238 = vmatpush3.bf16.msra.mxu1 %v2602_v49  ;;  %3208 = vmatprep.subr.bf16.mxu0 %v2595_v50  ;;  %v2663_v49 = vld [vmem:[%s3506_s29 + $0x490] sm:$0xff]   ;;  %v2656_v50 = vld [vmem:[%s3506_s29 + $0x458] sm:$0xff]  }
  0x70   : > { %3240 = vmatprep.subr.bf16.mxu1 %v2611_v51  ;;  %v2672_v51 = vld [vmem:[%s3506_s29 + $0x4d8] sm:$0xff]  }
  0x72   : > { %3210 = vmatpush3.bf16.msra.mxu0 %v2587_v53  ;;  %v2664_v53 = vld [vmem:[%s3506_s29 + $0x498] sm:$0xff]  }
  0x73   : > { %3242 = vmatpush3.bf16.msra.mxu1 %v2603_v54  ;;  %3212 = vmatprep.subr.bf16.mxu0 %v2596_v55  ;;  %v2657_v54 = vld [vmem:[%s3506_s29 + $0x460] sm:$0xff]  }
  0x74   : > { %3244 = vmatprep.subr.bf16.mxu1 %v2612_v56  ;;  %v2673_v55 = vld [vmem:[%s3506_s29 + $0x4e0] sm:$0xff]  }
  0x75   : > { %v2649_v56 = vld [vmem:[%s3506_s29 + $0x420] sm:$0xff]  }
  0x76   : > { %3214 = vmatpush3.bf16.msra.mxu0 %v2588_v58  ;;  %v2658_v58 = vld [vmem:[%s3506_s29 + $0x468] sm:$0xff]  }
  0x77   : > { %3246 = vmatpush3.bf16.msra.mxu1 %v2604_v59  ;;  %3248 = vmatprep.subr.bf16.mxu0 %v2621_v60  ;;  %v2674_v59 = vld [vmem:[%s3506_s29 + $0x4e8] sm:$0xff]  }
  0x78   : > { %3280 = vmatprep.subr.bf16.mxu1 %v2637_v61  ;;  %v2650_v60 = vld [vmem:[%s3506_s29 + $0x428] sm:$0xff]  }
  0x79   : > { %1342 = vmatmul.mubr.f32.vlgmr.msra.gmra.mrb[4].mxu0 %v3593_v24  ;;  %v2634_v24 = vld [vmem:[%s3506_s29 + $0x3a8] sm:$0xff]  }
  0x7a   : > { %1412 = vmatmul.mubr.f32.vlgmr.msra.gmra.mrb[4].mxu1 %v3596_v25  ;;  %3250 = vmatpush3.bf16.msra.mxu0 %v2613_v0  ;;  %v2627_v25 = vld [vmem:[%s3506_s29 + $0x370] sm:$0xff]   ;;  %v2666_v61 = vld [vmem:[%s3506_s29 + $0x4a8] sm:$0xff]  }
  0x7b   : > { %3282 = vmatpush3.bf16.msra.mxu1 %v2629_v1  ;;  %3252 = vmatprep.subr.bf16.mxu0 %v2622_v2  ;;  %v2651_v0 = vld [vmem:[%s3506_s29 + $0x430] sm:$0xff]   ;;  %v2660_v2 = vld [vmem:[%s3506_s29 + $0x478] sm:$0xff]  }
  0x7c   : > { %3284 = vmatprep.subr.bf16.mxu1 %v2638_v3  ;;  %1481 = vmatprep.mubr.f32.mxu0 %v958_v4  ;;  %v2667_v1 = vld [vmem:[%s3506_s29 + $0x4b0] sm:$0xff]   ;;  %v2676_v3 = vld [vmem:[%s3506_s29 + $0x4f8] sm:$0xff]  }
  0x7d   : > { %1551 = vmatprep.mubr.f32.mxu1 %v959_v5  ;;  %v2652_v4 = vld [vmem:[%s3506_s29 + $0x438] sm:$0xff]  }
  0x7e   : > { %3254 = vmatpush3.bf16.msra.mxu0 %v2614_v6  ;;  %v2668_v5 = vld [vmem:[%s3506_s29 + $0x4b8] sm:$0xff]  }
  0x7f   : > { %3286 = vmatpush3.bf16.msra.mxu1 %v2630_v7  ;;  %3256 = vmatprep.subr.bf16.mxu0 %v2623_v8 }
  0x80   : > { %3288 = vmatprep.subr.bf16.mxu1 %v2639_v9 }
  0x82   : > { %3258 = vmatpush3.bf16.msra.mxu0 %v2615_v10 }
  0x83   : > { %3290 = vmatpush3.bf16.msra.mxu1 %v2631_v11  ;;  %3260 = vmatprep.subr.bf16.mxu0 %v2624_v12 }
  0x84   : > { %3292 = vmatprep.subr.bf16.mxu1 %v2640_v13 }
  0x86   : > { %3262 = vmatpush3.bf16.msra.mxu0 %v2616_v14 }
  0x87   : > { %3294 = vmatpush3.bf16.msra.mxu1 %v2632_v15  ;;  %3264 = vmatprep.subr.bf16.mxu0 %v2625_v16 }
  0x88   : > { %3296 = vmatprep.subr.bf16.mxu1 %v2641_v17 }
  0x8a   : > { %3266 = vmatpush3.bf16.msra.mxu0 %v2617_v19 }
  0x8b   : > { %3298 = vmatpush3.bf16.msra.mxu1 %v2633_v20  ;;  %3268 = vmatprep.subr.bf16.mxu0 %v2626_v21 }
  0x8c   : > { %3300 = vmatprep.subr.bf16.mxu1 %v2642_v22 }
  0x8e   : > { %3270 = vmatpush3.bf16.msra.mxu0 %v2618_v23 }
  0x8f   : > { %3302 = vmatpush3.bf16.msra.mxu1 %v2634_v24  ;;  %3272 = vmatprep.subr.bf16.mxu0 %v2627_v25 }
  0x90   : > { %3304 = vmatprep.subr.bf16.mxu1 %v2643_v26 }
  0x92   : > { %3274 = vmatpush3.bf16.msra.mxu0 %v2619_v28 }
  0x93   : > { %3306 = vmatpush3.bf16.msra.mxu1 %v2635_v29  ;;  %3276 = vmatprep.subr.bf16.mxu0 %v2628_v30 }
  0x94   : > { %3308 = vmatprep.subr.bf16.mxu1 %v2644_v31 }
  0x96   : > { %3278 = vmatpush3.bf16.msra.mxu0 %v2620_v33 }
  0x97   : > { %3310 = vmatpush3.bf16.msra.mxu1 %v2636_v34  ;;  %3312 = vmatprep.subr.bf16.mxu0 %v2653_v35 }
  0x98   : > { %3344 = vmatprep.subr.bf16.mxu1 %v2669_v36 }
  0x99   : > { %1482 = vmatmul.mubr.f32.vlgmr.msra.gmra.mrb[6].mxu0 %v3638_v62  ;;  %v2659_v62 = vld [vmem:[%s3506_s29 + $0x470] sm:$0xff]  }
  0x9a   : > { %1552 = vmatmul.mubr.f32.vlgmr.msra.gmra.mrb[6].mxu1 %v3641_v63  ;;  %3314 = vmatpush3.bf16.msra.mxu0 %v2645_v39  ;;  %v2675_v63 = vld [vmem:[%s3506_s29 + $0x4f0] sm:$0xff]  }
  0x9b   : > { %3346 = vmatpush3.bf16.msra.mxu1 %v2661_v40  ;;  %3316 = vmatprep.subr.bf16.mxu0 %v2654_v41 }
  0x9c   : > { %3348 = vmatprep.subr.bf16.mxu1 %v2670_v42  ;;  %1621 = vmatprep.mubr.f32.mxu0 %v975_v43 }
  0x9d   : > { %1691 = vmatprep.mubr.f32.mxu1 %v976_v44 }
  0x9e   : > { %3318 = vmatpush3.bf16.msra.mxu0 %v2646_v18  ;;  %v241_v18 = vld [vmem:[#allocation2] sm:$0x3] }
  0x9f   : > { %3350 = vmatpush3.bf16.msra.mxu1 %v2662_v45  ;;  %3320 = vmatprep.subr.bf16.mxu0 %v2655_v46 }
  0xa0   : > { %3352 = vmatprep.subr.bf16.mxu1 %v2671_v47  ;;  %v1714_v47 = vld [vmem:[%s3786_s3] sm:$0xff] (!%p1870_p6) }
  0xa2   : > { %3322 = vmatpush3.bf16.msra.mxu0 %v2647_v48  ;;  %v1715_v48 = vld [vmem:[%s3786_s3 + $0x8] sm:$0xff] (!%p1870_p6) }
  0xa3   : > { %3354 = vmatpush3.bf16.msra.mxu1 %v2663_v49  ;;  %3324 = vmatprep.subr.bf16.mxu0 %v2656_v50  ;;  %v1716_v49 = vld [vmem:[%s3786_s3 + $0x10] sm:$0xff] (!%p1870_p6)  ;;  %v3452_v50 = vmov (!%p1870_p6), 0.0|0.0  }
  0xa4   : > { %3356 = vmatprep.subr.bf16.mxu1 %v2672_v51  ;;  %v3376_v51 = vpack.c.bf16 (!%p1870_p6), %v1715_v48, %v1714_v47 }
  0xa6   : > { %3326 = vmatpush3.bf16.msra.mxu0 %v2648_v52  ;;  %v1717_v52 = vld [vmem:[%s3786_s3 + $0x18] sm:$0xff] (!%p1870_p6) }
  0xa7   : > { %3358 = vmatpush3.bf16.msra.mxu1 %v2664_v53  ;;  %3328 = vmatprep.subr.bf16.mxu0 %v2657_v54  ;;  %v3454_v53 = vmov (!%p1870_p6), 0.0   ;;  %v3379_v54 = vpack.c.bf16 (!%p1870_p6), %v1717_v52, %v1716_v49 }
  0xa8   : > { %3360 = vmatprep.subr.bf16.mxu1 %v2673_v55  ;;  %v1718_v55 = vld [vmem:[%s3786_s3 + $0x20] sm:$0xff] (!%p1870_p6) }
  0xaa   : > { %3330 = vmatpush3.bf16.msra.mxu0 %v2649_v56  ;;  %v1719_v56 = vld [vmem:[%s3786_s3 + $0x28] sm:$0xff] (!%p1870_p6) }
  0xab   : > { %3362 = vmatpush3.bf16.msra.mxu1 %v2665_v57  ;;  %3332 = vmatprep.subr.bf16.mxu0 %v2658_v58  ;;  %v3382_v57 = vpack.c.bf16 (!%p1870_p6), %v1719_v56, %v1718_v55 }
  0xac   : > { %3364 = vmatprep.subr.bf16.mxu1 %v2674_v59  ;;  %v1871_v59 = vld [vmem:[%s3785_s2] ss:$0 sm:$0xff] (!%p1870_p6) }
  0xae   : > { %3334 = vmatpush3.bf16.msra.mxu0 %v2650_v60  ;;  %v1720_v60 = vld [vmem:[%s3786_s3 + $0x30] sm:$0xff] (!%p1870_p6) }
  0xaf   : > { %3366 = vmatpush3.bf16.msra.mxu1 %v2666_v61  ;;  %3336 = vmatprep.subr.bf16.mxu0 %v2659_v62  ;;  %v1721_v61 = vld [vmem:[%s3786_s3 + $0x38] sm:$0xff] (!%p1870_p6) }
  0xb0   : > { %3368 = vmatprep.subr.bf16.mxu1 %v2675_v63  ;;  %v3385_v63 = vpack.c.bf16 (!%p1870_p6), %v1721_v61, %v1720_v60 }
  0xb2   : > { %3338 = vmatpush3.bf16.msra.mxu0 %v2651_v0 }
  0xb3   : > { %3370 = vmatpush3.bf16.msra.mxu1 %v2667_v1  ;;  %3340 = vmatprep.subr.bf16.mxu0 %v2660_v2  ;;  %v1872_v1 = vld [vmem:[%s3787_s4] ss:$0 sm:$0xff] (!%p1870_p6) }
  0xb4   : > { %3372 = vmatprep.subr.bf16.mxu1 %v2676_v3 }
  0xb6   : > { %3342 = vmatpush3.bf16.msra.mxu0 %v2652_v4 }
  0xb7   : > { %3374 = vmatpush3.bf16.msra.mxu1 %v2668_v5  ;;  %3375 = vmatprep.subr.bf16.mxu0 (!%p1870_p6), %v3452_v50 }
  0xb9   : > { %1622 = vmatmul.mubr.f32.vlgmr.msra.gmra.mrb[8].mxu0 %v3683_v37 }
  0xba   : > { %1692 = vmatmul.mubr.f32.vlgmr.msra.gmra.mrb[8].mxu1 %v3686_v38  ;;  %3052 = vmatprep.mubr.msk.f32.mxu0 (!%p1870_p6), %vm3453_vm2, %v3454_v53 }
  0xbb   : > { %3377 = vmatpush3.bf16.msra.mxu0 (!%p1870_p6), %v3376_v51 }
  0xbc   : > { %3378 = vmatprep.subr.bf16.mxu0 (!%p1870_p6), %v3452_v50 }
  0xbf   : > { %3380 = vmatpush3.bf16.msra.mxu0 (!%p1870_p6), %v3379_v54 }
  0xc0   : > { %3381 = vmatprep.subr.bf16.mxu0 (!%p1870_p6), %v3452_v50 }
  0xc3   : > { %3383 = vmatpush3.bf16.msra.mxu0 (!%p1870_p6), %v3382_v57 }
  0xc4   : > { %3384 = vmatprep.subr.bf16.mxu0 (!%p1870_p6), %v3452_v50 }
  0xc7   : > { %3386 = vmatpush3.bf16.msra.mxu0 (!%p1870_p6), %v3385_v63 }
 0x10c   : > { %v2709_v6 = vpop.f32.mrb[0].mxu0 }
 0x10d   : > { %v2744_v7 = vpop.f32.mrb[0].mxu1  ;;  %v2710_v8 = vpop.f32.mrb[1].mxu0 }
 0x10e   : > { %v2745_v9 = vpop.f32.mrb[1].mxu1  ;;  %v2711_v10 = vadd.f32 %v2710_v8, %v2709_v6 }
 0x10f   : > { %v2746_v11 = vadd.f32 %v2745_v9, %v2744_v7 }
 0x111   : > { %v1134_v12 = vadd.f32 %v2746_v11, %v2711_v10 }
 0x12c   : > { %v2779_v13 = vpop.f32.mrb[2].mxu0 }
 0x12d   : > { %v2814_v14 = vpop.f32.mrb[2].mxu1  ;;  %v2780_v15 = vpop.f32.mrb[3].mxu0 }
 0x12e   : > { %v2815_v16 = vpop.f32.mrb[3].mxu1  ;;  %v2781_v17 = vadd.f32 %v2780_v15, %v2779_v13 }
 0x12f   : > { %v2816_v19 = vadd.f32 %v2815_v16, %v2814_v14 }
 0x130   : > { %v1204_v20 = vadd.f32 %v2781_v17, %v1134_v12 }
 0x132   : > { %v1274_v21 = vadd.f32 %v2816_v19, %v1204_v20 }
 0x14c   : > { %v2849_v22 = vpop.f32.mrb[4].mxu0 }
 0x14d   : > { %v2884_v23 = vpop.f32.mrb[4].mxu1  ;;  %v2850_v24 = vpop.f32.mrb[5].mxu0 }
 0x14e   : > { %v2885_v25 = vpop.f32.mrb[5].mxu1  ;;  %v2851_v26 = vadd.f32 %v2850_v24, %v2849_v22 }
 0x14f   : > { %v2886_v27 = vadd.f32 %v2885_v25, %v2884_v23 }
 0x150   : > { %v1344_v28 = vadd.f32 %v2851_v26, %v1274_v21 }
 0x152   : > { %v1414_v29 = vadd.f32 %v2886_v27, %v1344_v28 }
 0x16c   : > { %v2919_v30 = vpop.f32.mrb[6].mxu0 }
 0x16d   : > { %v2954_v31 = vpop.f32.mrb[6].mxu1  ;;  %v2920_v32 = vpop.f32.mrb[7].mxu0 }
 0x16e   : > { %v2955_v33 = vpop.f32.mrb[7].mxu1  ;;  %v2921_v34 = vadd.f32 %v2920_v32, %v2919_v30 }
 0x16f   : > { %v2956_v35 = vadd.f32 %v2955_v33, %v2954_v31 }
 0x170   : > { %v1484_v36 = vadd.f32 %v2921_v34, %v1414_v29 }
 0x172   : > { %v1554_v37 = vadd.f32 %v2956_v35, %v1484_v36 }
 0x18c   : > { %v2989_v38 = vpop.f32.mrb[8].mxu0 }
 0x18d   : > { %v3024_v39 = vpop.f32.mrb[8].mxu1  ;;  %v2990_v40 = vpop.f32.mrb[9].mxu0 }
 0x18e   : > { %v3025_v41 = vpop.f32.mrb[9].mxu1  ;;  %v2991_v42 = vadd.f32 %v2990_v40, %v2989_v38 }
 0x18f   : > { %v3026_v43 = vadd.f32 %v3025_v41, %v3024_v39 }
 0x190   : > { %v1624_v44 = vadd.f32 %v2991_v42, %v1554_v37  ;;  %1703 = sbr.rel (%p1870_p6) target bundleno = 633 (0x279), region = 48 }
 0x192   : > { %v1694_v45 = vadd.f32 %v3026_v43, %v1624_v44 }
 0x194   : > { %v1697_v46 = vadd.f32 %v1694_v45, %v241_v18 }
 0x196   : > { %1699 = vst.msk [vmem:[#allocation2] sm:$0x3] %vm1698_vm1, %v1697_v46 }
 0x19d   : > { %v1704_v58 = vld [vmem:[#allocation2] sm:$0x3] }
 0x19e   : > { %v1712_v62 = vadd.f32 %v1871_v59, %v1704_v58 }
 0x1a0   : > { %v1713_v0 = vmax.f32 %v1712_v62, 0.0 }
 0x1a2   : > { %3053 = vmatmul.mubr.msk.f32.vlgmr.msra.gmra.mrb[0].mxu0 %vm1729_vm3, %v1713_v0 }
 0x275   : > { %v1799_v2 = vpop.f32.mrb[0].mxu0 }
 0x276   : > { %v1800_v3 = vadd.f32 %v1872_v1, %v1799_v2  ;;  %v3054_v4 = vpop.f32.mrb[1].mxu0 }
 0x278   : > { %1804 = vst.msk [vmem:[#allocation3] sm:$0x3] %vm1803_vm4, %v1800_v3 }
 0x279 PF: > { %p3391_p7 = scmp.eq.s32.totalorder %s3492_s19, 7  ;;  %s3455_s27 = smov [#allocation3]  }
 0x27a   : > { %s1812_s28 = sshll.u32 %s3455_s27, 4  ;;  %s1813_s28 = int_to_ptr.vmem [resolvable:$true] %s1812_s28 }
 0x27b   : > { %s3412_s29 = scalar_lea.vmem %s1813_s28, 32  ;;  %p3419_p11 = scmp.lt.s32.totalorder %s1813_s28, %s1813_s28 }
 0x27c   : > { %p3413_p8 = scmp.ne.s32.totalorder %s1813_s28, %s3412_s29  ;;  %p3420_p12 = scmp.lt.s32.totalorder %s3412_s29, %s3412_s29 }
 0x27e   : > { %p3414_p9 = pnand %p3413_p8, %p3391_p7  ;;  %p3421_p13 = por %p3420_p12, %p3419_p11 }
 0x280   : > { %p3415_p10 = pneg %p3414_p9 }
 0x282   : > { %p3422_p0 = pnand %p3421_p13, %p3415_p10 }
 0x284   : > { %3425 = shalt.err (!%p3422_p0)
}
 0x285   : > { %s3426_s7 = scalar_lea.hbm %s3788_s5, 32 }
 0x286   : > { %p3427_p1 = scmp.ne.s32.totalorder %s3788_s5, %s3426_s7  ;;  %p3432_p4 = scmp.lt.u32.totalorder %s3426_s7, %s3788_s5 }
 0x288   : > { %p3428_p2 = pnand %p3427_p1, %p3391_p7 }
 0x28a   : > { %p3429_p3 = pneg %p3428_p2 }
 0x28c   : > { %p3434_p5 = pnand %p3432_p4, %p3429_p3 }
 0x28e   : > { %3437 = shalt.err (!%p3434_p5)
}
 0x28f   : > { %3388 = dma.vmem_to_hbm [thread:$0]  (%p3391_p7), %s1813_s28, 32, %s3788_s5, [#allocation4]  }
 0x290   : > { %3443 = dma.done.wait (%p3391_p7), [#allocation4], 32  }
 0x291   : > { %3445 = vsyncadd (%p3391_p7), [#allocation4], 4294967264 }
 0x292 PF: > { %s16_s18 = sadd.s32 1, %s3448_s18  }
 0x293   : > { %p13_p6 = scmp.ge.s32.totalorder %s16_s18, 10  }
 0x295   :  { %15 = sbr.rel (!%p13_p6) target bundleno = 1 (0x1), region = 78 }
 0x29c   :  { %1825 = vsyncpa [#allocation4], 1 }
 0x29d   :  { %1827 = vsyncpa [#allocation4 + $0x1], 1 }

</bundles_post_ra>
